<compile_context>
chip_gen: v7x
topology: tpu7x:2x2x1
jax: 0.10.0
libtpu: 0.0.40
codegen_flags: <defaults>
</compile_context>

<pallas_src>
import functools

import jax
import jax.numpy as jnp
import numpy as np
from jax import lax
from jax.experimental import pallas as pl
from jax.experimental.pallas import tpu as pltpu


def _aggregation_scale_kernel(inp_ref, w1_ref, b1_ref, tapw_ref, b2_ref,
                              wo_ref, out_ref, *, tap_groups, cin, cmid,
                              cout, nb, use_res):
    H, W = inp_ref.shape[2], inp_ref.shape[3]
    f32 = jnp.float32

    # Wrap-around masks for the roll-based shifts.  Built once per grid step
    # and shared by every channel / batch element in this block.  The shifts
    # themselves go to the XLU (roll); only the select + FMA hit the VPU, and
    # every vector load/store stays a full, lane-aligned tile.
    row_idx = lax.broadcasted_iota(jnp.int32, (H, W), 0)
    col_idx = lax.broadcasted_iota(jnp.int32, (H, W), 1)
    row_mask, col_mask = {}, {}
    for dy, grp in tap_groups:
        if dy != 0 and dy not in row_mask:
            row_mask[dy] = (row_idx < H - dy) if dy > 0 else (row_idx >= -dy)
        for dx, _ in grp:
            if dx != 0 and dx not in col_mask:
                col_mask[dx] = (col_idx < W - dx) if dx > 0 else (col_idx >= -dx)

    for b in range(nb):
        inp = [inp_ref[b, ci].astype(f32) for ci in range(cin)]
        out_acc = [jnp.zeros((H, W), f32) for _ in range(cout)]

        # Channel-outer: exactly one mid-channel plane is live at a time; its
        # dilated taps are in-register rolls of that plane.
        for cm in range(cmid):
            # --- 1x1 conv (BN1 scale pre-folded into weights) + BN1 bias ---
            p = w1_ref[cm * cin] * inp[0]
            for ci in range(1, cin):
                p = p + w1_ref[cm * cin + ci] * inp[ci]
            p = p + b1_ref[cm]

            # --- sum of three dilated depthwise 3x3 convs (dilation 1/2/3),
            #     BN2 scale pre-folded into the taps, duplicate (0,0) taps
            #     merged.  One sublane roll per row-group, one lane roll per
            #     tap; wrap rows/cols zeroed by a masked select. ---
            acc = None
            for dy, grp in tap_groups:
                if dy == 0:
                    pv = p
                else:
                    pv = pltpu.roll(p, (-dy) % H, axis=0)      # sublane roll
                    pv = jnp.where(row_mask[dy], pv, 0.0)      # kill wrapped rows
                for dx, t in grp:
                    if dx == 0:
                        ph = pv
                    else:
                        ph = pltpu.roll(pv, (-dx) % W, axis=1)  # lane roll
                        ph = jnp.where(col_mask[dx], ph, 0.0)   # kill wrapped cols
                    term = tapw_ref[t * cmid + cm] * ph
                    acc = term if acc is None else acc + term

            # --- BN2 bias (scale already folded) + ReLU, then 1x1 out conv ---
            intra = jnp.maximum(acc + b2_ref[cm], 0.0)
            for co in range(cout):
                out_acc[co] = out_acc[co] + wo_ref[cm * cout + co] * intra

        for co in range(cout):
            o = out_acc[co]
            if use_res:                      # in_dim == out_dim => residual
                o = o + inp_ref[b, co]       # residual re-read (short live range)
            out_ref[b, co] = o.astype(out_ref.dtype)


def aggregation_scale_forward(x_nchw, params, *, batch_block=None):
    """x_nchw: (N, in_dim, H, W) float32, matching the PyTorch module input."""
    N, Cin, H, W = x_nchw.shape
    wo = params["wo"]                                   # (Cout, Cmid, 1, 1)
    Cout, Cmid = wo.shape[0], wo.shape[1]
    use_res = (Cin == Cout)                             # module forces residual

    s1, b1 = params["s1"], params["b1"]
    s2 = params["s2"]
    # fold the three depthwise-conv biases into the BN2 bias (exact):
    #   BN2(conv_sum + b_a+b_b+b_c) = s2*conv_sum + (b2 + s2*(b_a+b_b+b_c))
    b2 = params["b2"] + s2 * (params["bd"][0] + params["bd"][1] + params["bd"][2])

    # Fold BN scales into the conv weights (exact trace-time constant fold)
    # and flatten every table to 1D so the SMEM footprint stays ~1 KiB.
    w1_flat = (params["w1"][:, :, 0, 0] * s1[:, None]).reshape(-1)   # [cm*Cin+ci]
    wo_flat = jnp.transpose(wo[:, :, 0, 0], (1, 0)).reshape(-1)      # [cm*Cout+co]

    # Depthwise taps: fold BN2 scale in, merge taps sharing the same (dy, dx)
    # shift (three dilation centers -> one tap), group by dy so one sublane
    # roll is reused by all taps in the row group.
    tap_map = {}
    for d, w in zip((1, 2, 3), params["wd"]):
        ws = w[:, 0] * s2[:, None, None]                             # (Cmid,3,3)
        for iy, ky in enumerate((-1, 0, 1)):
            for ix, kx in enumerate((-1, 0, 1)):
                key = (d * ky, d * kx)
                cur = tap_map.get(key)
                tap_map[key] = ws[:, iy, ix] if cur is None else cur + ws[:, iy, ix]
    tap_keys = sorted(tap_map.keys())
    tap_index = {k: i for i, k in enumerate(tap_keys)}
    tapw_flat = jnp.stack([tap_map[k] for k in tap_keys]).reshape(-1)  # [t*Cmid+cm]
    tap_groups = tuple(
        (dy, tuple((dx, tap_index[(dy2, dx)])
                   for (dy2, dx) in tap_keys if dy2 == dy))
        for dy in sorted({k[0] for k in tap_keys}))

    # Batch blocking: amortize per-grid-step overhead while keeping the
    # "parallel" axis length >= 2 (v7x megacore sharding).
    if batch_block is None:
        nb = 1
        for cand in range(max(N // 2, 1), 0, -1):
            if N % cand == 0:
                nb = cand
                break
    else:
        nb = batch_block
    assert N % nb == 0, (N, nb)

    kernel = functools.partial(
        _aggregation_scale_kernel, tap_groups=tap_groups, cin=Cin, cmid=Cmid,
        cout=Cout, nb=nb, use_res=use_res)

    smem = lambda: pl.BlockSpec(memory_space=pltpu.MemorySpace.SMEM)
    return pl.pallas_call(
        kernel,
        out_shape=jax.ShapeDtypeStruct((N, Cout, H, W), x_nchw.dtype),
        grid=(N // nb,),
        in_specs=[
            pl.BlockSpec((nb, Cin, H, W), lambda n: (n, 0, 0, 0)),  # activations
            smem(),   # w1_flat  (Cin*Cmid,)   BN1-scaled 1x1 weights
            smem(),   # b1       (Cmid,)       BN1 bias
            smem(),   # tapw     (T*Cmid,)     BN2-scaled depthwise taps
            smem(),   # b2       (Cmid,)       BN2 bias + folded conv biases
            smem(),   # wo_flat  (Cmid*Cout,)  1x1 out-conv weights
        ],
        out_specs=pl.BlockSpec((nb, Cout, H, W), lambda n: (n, 0, 0, 0)),
        compiler_params=pltpu.CompilerParams(
            dimension_semantics=("parallel",),
            vmem_limit_bytes=32 * 1024 * 1024),
    )(x_nchw, w1_flat, b1, tapw_flat, b2, wo_flat)


def reference_forward(x, params):
    """Pure-JAX (lax conv) reference mirroring the PyTorch module, f32."""
    dn = ("NCHW", "OIHW", "NCHW")
    hi = lax.Precision.HIGHEST
    mid = params["s1"].shape[0]
    h = lax.conv_general_dilated(x, params["w1"], (1, 1), "VALID",
                                 dimension_numbers=dn, precision=hi)
    h = h * params["s1"][None, :, None, None] + params["b1"][None, :, None, None]
    acc = 0.0
    for d, w, b in zip((1, 2, 3), params["wd"], params["bd"]):
        y = lax.conv_general_dilated(
            h, w, (1, 1), [(d, d), (d, d)], rhs_dilation=(d, d),
            dimension_numbers=dn, feature_group_count=mid, precision=hi)
        acc = acc + y + b[None, :, None, None]
    intra = jnp.maximum(acc * params["s2"][None, :, None, None]
                        + params["b2"][None, :, None, None], 0.0)
    out = lax.conv_general_dilated(intra, params["wo"], (1, 1), "VALID",
                                   dimension_numbers=dn, precision=hi)
    return x + out


def make_params(key, in_dim, out_dim):
    mid = out_dim * 2
    eps = 1e-5
    ks = jax.random.split(key, 16)
    # conv1: 1x1, no bias (PyTorch OIHW)
    w1 = 0.3 * jax.random.normal(ks[0], (mid, in_dim, 1, 1), jnp.float32)
    # bn1 params + running stats
    g1 = 1.0 + 0.1 * jax.random.normal(ks[1], (mid,), jnp.float32)
    be1 = 0.1 * jax.random.normal(ks[2], (mid,), jnp.float32)
    m1 = 0.1 * jax.random.normal(ks[3], (mid,), jnp.float32)
    v1 = 0.5 + jax.random.uniform(ks[4], (mid,), jnp.float32)
    # three depthwise 3x3 convs (groups=mid): weight (mid, 1, 3, 3), bias (mid,)
    wd = [0.3 * jax.random.normal(ks[5 + i], (mid, 1, 3, 3), jnp.float32)
          for i in range(3)]
    bd = [0.1 * jax.random.normal(ks[8 + i], (mid,), jnp.float32)
          for i in range(3)]
    # bn2 params + running stats
    g2 = 1.0 + 0.1 * jax.random.normal(ks[11], (mid,), jnp.float32)
    be2 = 0.1 * jax.random.normal(ks[12], (mid,), jnp.float32)
    m2 = 0.1 * jax.random.normal(ks[13], (mid,), jnp.float32)
    v2 = 0.5 + jax.random.uniform(ks[14], (mid,), jnp.float32)
    # out conv: 1x1, no bias
    wo = 0.3 * jax.random.normal(ks[15], (out_dim, mid, 1, 1), jnp.float32)
    s1 = g1 / jnp.sqrt(v1 + eps)
    b1 = be1 - m1 * s1
    s2 = g2 / jnp.sqrt(v2 + eps)
    b2 = be2 - m2 * s2
    return dict(w1=w1, wd=wd, bd=bd, wo=wo, s1=s1, b1=b1, s2=s2, b2=b2)


if __name__ == "__main__":
    key = jax.random.PRNGKey(0)
    k_x, k_p, k_x2 = jax.random.split(key, 3)

    in_dim = out_dim = 4                    # => residual path, mid_dim = 8
    params = make_params(k_p, in_dim, out_dim)

    # Primary shape: W = 128 so the minor (lane) dim of every plane is a full
    # 128-lane register -> dense, unmasked loads/stores and cheap lane rolls.
    x = jax.random.normal(k_x, (2, in_dim, 8, 128), jnp.float32)
    out = jax.block_until_ready(aggregation_scale_forward(x, params))
    ref = reference_forward(x, params)
    np.testing.assert_allclose(np.asarray(out), np.asarray(ref),
                               rtol=1e-4, atol=1e-4)

    # Secondary (lane-sparse) shape: shows the kernel is correct for any H, W.
    x2 = jax.random.normal(k_x2, (2, in_dim, 16, 16), jnp.float32)
    out2 = jax.block_until_ready(aggregation_scale_forward(x2, params))
    ref2 = reference_forward(x2, params)
    np.testing.assert_allclose(np.asarray(out2), np.asarray(ref2),
                               rtol=1e-4, atol=1e-4)

    print("KERNEL_OK")
</pallas_src>

<mosaic_0001>
module attributes {stable_mosaic.version = 11 : i64} {
  func.func @_aggregation_scale_kernel(%arg0: i32, %arg1: memref<1x4x8x128xf32, #tpu.memory_space<vmem>>, %arg2: memref<32xf32, #tpu.memory_space<smem>>, %arg3: memref<8xf32, #tpu.memory_space<smem>>, %arg4: memref<200xf32, #tpu.memory_space<smem>>, %arg5: memref<8xf32, #tpu.memory_space<smem>>, %arg6: memref<32xf32, #tpu.memory_space<smem>>, %arg7: memref<1x4x8x128xf32, #tpu.memory_space<vmem>>) attributes {dimension_semantics = [#tpu.dimension_semantics<parallel>], iteration_bounds = array<i64: 2>, scalar_prefetch = 0 : i64, scratch_operands = 0 : i64, tpu.core_type = #tpu.core_type<tc>, window_params = [{transform_indices = @transform_0, window_bounds = array<i64: 1, 4, 8, 128>}, {transform_indices = @transform_1, window_bounds = array<i64: 32>}, {transform_indices = @transform_2, window_bounds = array<i64: 8>}, {transform_indices = @transform_3, window_bounds = array<i64: 200>}, {transform_indices = @transform_4, window_bounds = array<i64: 8>}, {transform_indices = @transform_5, window_bounds = array<i64: 32>}, {transform_indices = @transform_6, window_bounds = array<i64: 1, 4, 8, 128>}]} {
    %0 = tpu.iota {dimensions = array<i32: 0>} : vector<8x128xi32>
    %1 = tpu.iota {dimensions = array<i32: 1>} : vector<8x128xi32>
    %c3_i32 = arith.constant 3 : i32
    %2 = vector.broadcast %c3_i32 : i32 to vector<8x128xi32>
    %3 = arith.cmpi sge, %0, %2 : vector<8x128xi32>
    %c3_i32_0 = arith.constant 3 : i32
    %4 = vector.broadcast %c3_i32_0 : i32 to vector<8x128xi32>
    %5 = arith.cmpi sge, %1, %4 : vector<8x128xi32>
    %c125_i32 = arith.constant 125 : i32
    %6 = vector.broadcast %c125_i32 : i32 to vector<8x128xi32>
    %7 = arith.cmpi slt, %1, %6 : vector<8x128xi32>
    %c2_i32 = arith.constant 2 : i32
    %8 = vector.broadcast %c2_i32 : i32 to vector<8x128xi32>
    %9 = arith.cmpi sge, %0, %8 : vector<8x128xi32>
    %c2_i32_1 = arith.constant 2 : i32
    %10 = vector.broadcast %c2_i32_1 : i32 to vector<8x128xi32>
    %11 = arith.cmpi sge, %1, %10 : vector<8x128xi32>
    %c126_i32 = arith.constant 126 : i32
    %12 = vector.broadcast %c126_i32 : i32 to vector<8x128xi32>
    %13 = arith.cmpi slt, %1, %12 : vector<8x128xi32>
    %c1_i32 = arith.constant 1 : i32
    %14 = vector.broadcast %c1_i32 : i32 to vector<8x128xi32>
    %15 = arith.cmpi sge, %0, %14 : vector<8x128xi32>
    %c1_i32_2 = arith.constant 1 : i32
    %16 = vector.broadcast %c1_i32_2 : i32 to vector<8x128xi32>
    %17 = arith.cmpi sge, %1, %16 : vector<8x128xi32>
    %c127_i32 = arith.constant 127 : i32
    %18 = vector.broadcast %c127_i32 : i32 to vector<8x128xi32>
    %19 = arith.cmpi slt, %1, %18 : vector<8x128xi32>
    %c7_i32 = arith.constant 7 : i32
    %20 = vector.broadcast %c7_i32 : i32 to vector<8x128xi32>
    %21 = arith.cmpi slt, %0, %20 : vector<8x128xi32>
    %c6_i32 = arith.constant 6 : i32
    %22 = vector.broadcast %c6_i32 : i32 to vector<8x128xi32>
    %23 = arith.cmpi slt, %0, %22 : vector<8x128xi32>
    %c5_i32 = arith.constant 5 : i32
    %24 = vector.broadcast %c5_i32 : i32 to vector<8x128xi32>
    %25 = arith.cmpi slt, %0, %24 : vector<8x128xi32>
    %c0 = arith.constant 0 : index
    %c0_3 = arith.constant 0 : index
    %c0_4 = arith.constant 0 : index
    %c0_5 = arith.constant 0 : index
    %26 = vector.load %arg1[%c0, %c0_3, %c0_4, %c0_5] : memref<1x4x8x128xf32, #tpu.memory_space<vmem>>, vector<1x1x8x128xf32>
    %27 = vector.shape_cast %26 : vector<1x1x8x128xf32> to vector<8x128xf32>
    %c0_6 = arith.constant 0 : index
    %c1 = arith.constant 1 : index
    %c0_7 = arith.constant 0 : index
    %c0_8 = arith.constant 0 : index
    %28 = vector.load %arg1[%c0_6, %c1, %c0_7, %c0_8] : memref<1x4x8x128xf32, #tpu.memory_space<vmem>>, vector<1x1x8x128xf32>
    %29 = vector.shape_cast %28 : vector<1x1x8x128xf32> to vector<8x128xf32>
    %c0_9 = arith.constant 0 : index
    %c2 = arith.constant 2 : index
    %c0_10 = arith.constant 0 : index
    %c0_11 = arith.constant 0 : index
    %30 = vector.load %arg1[%c0_9, %c2, %c0_10, %c0_11] : memref<1x4x8x128xf32, #tpu.memory_space<vmem>>, vector<1x1x8x128xf32>
    %31 = vector.shape_cast %30 : vector<1x1x8x128xf32> to vector<8x128xf32>
    %c0_12 = arith.constant 0 : index
    %c3 = arith.constant 3 : index
    %c0_13 = arith.constant 0 : index
    %c0_14 = arith.constant 0 : index
    %32 = vector.load %arg1[%c0_12, %c3, %c0_13, %c0_14] : memref<1x4x8x128xf32, #tpu.memory_space<vmem>>, vector<1x1x8x128xf32>
    %33 = vector.shape_cast %32 : vector<1x1x8x128xf32> to vector<8x128xf32>
    %cst = arith.constant 0.000000e+00 : f32
    %34 = vector.broadcast %cst : f32 to vector<8x128xf32>
    %cst_15 = arith.constant 0.000000e+00 : f32
    %35 = vector.broadcast %cst_15 : f32 to vector<8x128xf32>
    %cst_16 = arith.constant 0.000000e+00 : f32
    %36 = vector.broadcast %cst_16 : f32 to vector<8x128xf32>
    %cst_17 = arith.constant 0.000000e+00 : f32
    %37 = vector.broadcast %cst_17 : f32 to vector<8x128xf32>
    %c0_18 = arith.constant 0 : index
    %38 = memref.load %arg2[%c0_18] : memref<32xf32, #tpu.memory_space<smem>>
    %39 = vector.broadcast %38 : f32 to vector<8x128xf32>
    %40 = arith.mulf %39, %27 : vector<8x128xf32>
    %c1_19 = arith.constant 1 : index
    %41 = memref.load %arg2[%c1_19] : memref<32xf32, #tpu.memory_space<smem>>
    %42 = vector.broadcast %41 : f32 to vector<8x128xf32>
    %43 = arith.mulf %42, %29 : vector<8x128xf32>
    %44 = arith.addf %40, %43 : vector<8x128xf32>
    %c2_20 = arith.constant 2 : index
    %45 = memref.load %arg2[%c2_20] : memref<32xf32, #tpu.memory_space<smem>>
    %46 = vector.broadcast %45 : f32 to vector<8x128xf32>
    %47 = arith.mulf %46, %31 : vector<8x128xf32>
    %48 = arith.addf %44, %47 : vector<8x128xf32>
    %c3_21 = arith.constant 3 : index
    %49 = memref.load %arg2[%c3_21] : memref<32xf32, #tpu.memory_space<smem>>
    %50 = vector.broadcast %49 : f32 to vector<8x128xf32>
    %51 = arith.mulf %50, %33 : vector<8x128xf32>
    %52 = arith.addf %48, %51 : vector<8x128xf32>
    %c0_22 = arith.constant 0 : index
    %53 = memref.load %arg3[%c0_22] : memref<8xf32, #tpu.memory_space<smem>>
    %54 = vector.broadcast %53 : f32 to vector<8x128xf32>
    %55 = arith.addf %52, %54 : vector<8x128xf32>
    %c3_i32_23 = arith.constant 3 : i32
    %56 = tpu.dynamic_rotate %55 by %c3_i32_23 dim 0 : vector<8x128xf32>, i32 -> vector<8x128xf32>
    %cst_24 = arith.constant 0.000000e+00 : f32
    %57 = vector.broadcast %cst_24 : f32 to vector<8x128xf32>
    %58 = arith.select %3, %56, %57 : vector<8x128xi1>, vector<8x128xf32>
    %c3_i32_25 = arith.constant 3 : i32
    %59 = tpu.dynamic_rotate %58 by %c3_i32_25 dim 1 : vector<8x128xf32>, i32 -> vector<8x128xf32>
    %cst_26 = arith.constant 0.000000e+00 : f32
    %60 = vector.broadcast %cst_26 : f32 to vector<8x128xf32>
    %61 = arith.select %5, %59, %60 : vector<8x128xi1>, vector<8x128xf32>
    %c0_27 = arith.constant 0 : index
    %62 = memref.load %arg4[%c0_27] : memref<200xf32, #tpu.memory_space<smem>>
    %63 = vector.broadcast %62 : f32 to vector<8x128xf32>
    %64 = arith.mulf %63, %61 : vector<8x128xf32>
    %c8 = arith.constant 8 : index
    %65 = memref.load %arg4[%c8] : memref<200xf32, #tpu.memory_space<smem>>
    %66 = vector.broadcast %65 : f32 to vector<8x128xf32>
    %67 = arith.mulf %66, %58 : vector<8x128xf32>
    %68 = arith.addf %64, %67 : vector<8x128xf32>
    %c125_i32_28 = arith.constant 125 : i32
    %69 = tpu.dynamic_rotate %58 by %c125_i32_28 dim 1 : vector<8x128xf32>, i32 -> vector<8x128xf32>
    %cst_29 = arith.constant 0.000000e+00 : f32
    %70 = vector.broadcast %cst_29 : f32 to vector<8x128xf32>
    %71 = arith.select %7, %69, %70 : vector<8x128xi1>, vector<8x128xf32>
    %c16 = arith.constant 16 : index
    %72 = memref.load %arg4[%c16] : memref<200xf32, #tpu.memory_space<smem>>
    %73 = vector.broadcast %72 : f32 to vector<8x128xf32>
    %74 = arith.mulf %73, %71 : vector<8x128xf32>
    %75 = arith.addf %68, %74 : vector<8x128xf32>
    %c2_i32_30 = arith.constant 2 : i32
    %76 = tpu.dynamic_rotate %55 by %c2_i32_30 dim 0 : vector<8x128xf32>, i32 -> vector<8x128xf32>
    %cst_31 = arith.constant 0.000000e+00 : f32
    %77 = vector.broadcast %cst_31 : f32 to vector<8x128xf32>
    %78 = arith.select %9, %76, %77 : vector<8x128xi1>, vector<8x128xf32>
    %c2_i32_32 = arith.constant 2 : i32
    %79 = tpu.dynamic_rotate %78 by %c2_i32_32 dim 1 : vector<8x128xf32>, i32 -> vector<8x128xf32>
    %cst_33 = arith.constant 0.000000e+00 : f32
    %80 = vector.broadcast %cst_33 : f32 to vector<8x128xf32>
    %81 = arith.select %11, %79, %80 : vector<8x128xi1>, vector<8x128xf32>
    %c24 = arith.constant 24 : index
    %82 = memref.load %arg4[%c24] : memref<200xf32, #tpu.memory_space<smem>>
    %83 = vector.broadcast %82 : f32 to vector<8x128xf32>
    %84 = arith.mulf %83, %81 : vector<8x128xf32>
    %85 = arith.addf %75, %84 : vector<8x128xf32>
    %c32 = arith.constant 32 : index
    %86 = memref.load %arg4[%c32] : memref<200xf32, #tpu.memory_space<smem>>
    %87 = vector.broadcast %86 : f32 to vector<8x128xf32>
    %88 = arith.mulf %87, %78 : vector<8x128xf32>
    %89 = arith.addf %85, %88 : vector<8x128xf32>
    %c126_i32_34 = arith.constant 126 : i32
    %90 = tpu.dynamic_rotate %78 by %c126_i32_34 dim 1 : vector<8x128xf32>, i32 -> vector<8x128xf32>
    %cst_35 = arith.constant 0.000000e+00 : f32
    %91 = vector.broadcast %cst_35 : f32 to vector<8x128xf32>
    %92 = arith.select %13, %90, %91 : vector<8x128xi1>, vector<8x128xf32>
    %c40 = arith.constant 40 : index
    %93 = memref.load %arg4[%c40] : memref<200xf32, #tpu.memory_space<smem>>
    %94 = vector.broadcast %93 : f32 to vector<8x128xf32>
    %95 = arith.mulf %94, %92 : vector<8x128xf32>
    %96 = arith.addf %89, %95 : vector<8x128xf32>
    %c1_i32_36 = arith.constant 1 : i32
    %97 = tpu.dynamic_rotate %55 by %c1_i32_36 dim 0 : vector<8x128xf32>, i32 -> vector<8x128xf32>
    %cst_37 = arith.constant 0.000000e+00 : f32
    %98 = vector.broadcast %cst_37 : f32 to vector<8x128xf32>
    %99 = arith.select %15, %97, %98 : vector<8x128xi1>, vector<8x128xf32>
    %c1_i32_38 = arith.constant 1 : i32
    %100 = tpu.dynamic_rotate %99 by %c1_i32_38 dim 1 : vector<8x128xf32>, i32 -> vector<8x128xf32>
    %cst_39 = arith.constant 0.000000e+00 : f32
    %101 = vector.broadcast %cst_39 : f32 to vector<8x128xf32>
    %102 = arith.select %17, %100, %101 : vector<8x128xi1>, vector<8x128xf32>
    %c48 = arith.constant 48 : index
    %103 = memref.load %arg4[%c48] : memref<200xf32, #tpu.memory_space<smem>>
    %104 = vector.broadcast %103 : f32 to vector<8x128xf32>
    %105 = arith.mulf %104, %102 : vector<8x128xf32>
    %106 = arith.addf %96, %105 : vector<8x128xf32>
    %c56 = arith.constant 56 : index
    %107 = memref.load %arg4[%c56] : memref<200xf32, #tpu.memory_space<smem>>
    %108 = vector.broadcast %107 : f32 to vector<8x128xf32>
    %109 = arith.mulf %108, %99 : vector<8x128xf32>
    %110 = arith.addf %106, %109 : vector<8x128xf32>
    %c127_i32_40 = arith.constant 127 : i32
    %111 = tpu.dynamic_rotate %99 by %c127_i32_40 dim 1 : vector<8x128xf32>, i32 -> vector<8x128xf32>
    %cst_41 = arith.constant 0.000000e+00 : f32
    %112 = vector.broadcast %cst_41 : f32 to vector<8x128xf32>
    %113 = arith.select %19, %111, %112 : vector<8x128xi1>, vector<8x128xf32>
    %c64 = arith.constant 64 : index
    %114 = memref.load %arg4[%c64] : memref<200xf32, #tpu.memory_space<smem>>
    %115 = vector.broadcast %114 : f32 to vector<8x128xf32>
    %116 = arith.mulf %115, %113 : vector<8x128xf32>
    %117 = arith.addf %110, %116 : vector<8x128xf32>
    %c3_i32_42 = arith.constant 3 : i32
    %118 = tpu.dynamic_rotate %55 by %c3_i32_42 dim 1 : vector<8x128xf32>, i32 -> vector<8x128xf32>
    %cst_43 = arith.constant 0.000000e+00 : f32
    %119 = vector.broadcast %cst_43 : f32 to vector<8x128xf32>
    %120 = arith.select %5, %118, %119 : vector<8x128xi1>, vector<8x128xf32>
    %c72 = arith.constant 72 : index
    %121 = memref.load %arg4[%c72] : memref<200xf32, #tpu.memory_space<smem>>
    %122 = vector.broadcast %121 : f32 to vector<8x128xf32>
    %123 = arith.mulf %122, %120 : vector<8x128xf32>
    %124 = arith.addf %117, %123 : vector<8x128xf32>
    %c2_i32_44 = arith.constant 2 : i32
    %125 = tpu.dynamic_rotate %55 by %c2_i32_44 dim 1 : vector<8x128xf32>, i32 -> vector<8x128xf32>
    %cst_45 = arith.constant 0.000000e+00 : f32
    %126 = vector.broadcast %cst_45 : f32 to vector<8x128xf32>
    %127 = arith.select %11, %125, %126 : vector<8x128xi1>, vector<8x128xf32>
    %c80 = arith.constant 80 : index
    %128 = memref.load %arg4[%c80] : memref<200xf32, #tpu.memory_space<smem>>
    %129 = vector.broadcast %128 : f32 to vector<8x128xf32>
    %130 = arith.mulf %129, %127 : vector<8x128xf32>
    %131 = arith.addf %124, %130 : vector<8x128xf32>
    %c1_i32_46 = arith.constant 1 : i32
    %132 = tpu.dynamic_rotate %55 by %c1_i32_46 dim 1 : vector<8x128xf32>, i32 -> vector<8x128xf32>
    %cst_47 = arith.constant 0.000000e+00 : f32
    %133 = vector.broadcast %cst_47 : f32 to vector<8x128xf32>
    %134 = arith.select %17, %132, %133 : vector<8x128xi1>, vector<8x128xf32>
    %c88 = arith.constant 88 : index
    %135 = memref.load %arg4[%c88] : memref<200xf32, #tpu.memory_space<smem>>
    %136 = vector.broadcast %135 : f32 to vector<8x128xf32>
    %137 = arith.mulf %136, %134 : vector<8x128xf32>
    %138 = arith.addf %131, %137 : vector<8x128xf32>
    %c96 = arith.constant 96 : index
    %139 = memref.load %arg4[%c96] : memref<200xf32, #tpu.memory_space<smem>>
    %140 = vector.broadcast %139 : f32 to vector<8x128xf32>
    %141 = arith.mulf %140, %55 : vector<8x128xf32>
    %142 = arith.addf %138, %141 : vector<8x128xf32>
    %c127_i32_48 = arith.constant 127 : i32
    %143 = tpu.dynamic_rotate %55 by %c127_i32_48 dim 1 : vector<8x128xf32>, i32 -> vector<8x128xf32>
    %cst_49 = arith.constant 0.000000e+00 : f32
    %144 = vector.broadcast %cst_49 : f32 to vector<8x128xf32>
    %145 = arith.select %19, %143, %144 : vector<8x128xi1>, vector<8x128xf32>
    %c104 = arith.constant 104 : index
    %146 = memref.load %arg4[%c104] : memref<200xf32, #tpu.memory_space<smem>>
    %147 = vector.broadcast %146 : f32 to vector<8x128xf32>
    %148 = arith.mulf %147, %145 : vector<8x128xf32>
    %149 = arith.addf %142, %148 : vector<8x128xf32>
    %c126_i32_50 = arith.constant 126 : i32
    %150 = tpu.dynamic_rotate %55 by %c126_i32_50 dim 1 : vector<8x128xf32>, i32 -> vector<8x128xf32>
    %cst_51 = arith.constant 0.000000e+00 : f32
    %151 = vector.broadcast %cst_51 : f32 to vector<8x128xf32>
    %152 = arith.select %13, %150, %151 : vector<8x128xi1>, vector<8x128xf32>
    %c112 = arith.constant 112 : index
    %153 = memref.load %arg4[%c112] : memref<200xf32, #tpu.memory_space<smem>>
    %154 = vector.broadcast %153 : f32 to vector<8x128xf32>
    %155 = arith.mulf %154, %152 : vector<8x128xf32>
    %156 = arith.addf %149, %155 : vector<8x128xf32>
    %c125_i32_52 = arith.constant 125 : i32
    %157 = tpu.dynamic_rotate %55 by %c125_i32_52 dim 1 : vector<8x128xf32>, i32 -> vector<8x128xf32>
    %cst_53 = arith.constant 0.000000e+00 : f32
    %158 = vector.broadcast %cst_53 : f32 to vector<8x128xf32>
    %159 = arith.select %7, %157, %158 : vector<8x128xi1>, vector<8x128xf32>
    %c120 = arith.constant 120 : index
    %160 = memref.load %arg4[%c120] : memref<200xf32, #tpu.memory_space<smem>>
    %161 = vector.broadcast %160 : f32 to vector<8x128xf32>
    %162 = arith.mulf %161, %159 : vector<8x128xf32>
    %163 = arith.addf %156, %162 : vector<8x128xf32>
    %c7_i32_54 = arith.constant 7 : i32
    %164 = tpu.dynamic_rotate %55 by %c7_i32_54 dim 0 : vector<8x128xf32>, i32 -> vector<8x128xf32>
    %cst_55 = arith.constant 0.000000e+00 : f32
    %165 = vector.broadcast %cst_55 : f32 to vector<8x128xf32>
    %166 = arith.select %21, %164, %165 : vector<8x128xi1>, vector<8x128xf32>
    %c1_i32_56 = arith.constant 1 : i32
    %167 = tpu.dynamic_rotate %166 by %c1_i32_56 dim 1 : vector<8x128xf32>, i32 -> vector<8x128xf32>
    %cst_57 = arith.constant 0.000000e+00 : f32
    %168 = vector.broadcast %cst_57 : f32 to vector<8x128xf32>
    %169 = arith.select %17, %167, %168 : vector<8x128xi1>, vector<8x128xf32>
    %c128 = arith.constant 128 : index
    %170 = memref.load %arg4[%c128] : memref<200xf32, #tpu.memory_space<smem>>
    %171 = vector.broadcast %170 : f32 to vector<8x128xf32>
    %172 = arith.mulf %171, %169 : vector<8x128xf32>
    %173 = arith.addf %163, %172 : vector<8x128xf32>
    %c136 = arith.constant 136 : index
    %174 = memref.load %arg4[%c136] : memref<200xf32, #tpu.memory_space<smem>>
    %175 = vector.broadcast %174 : f32 to vector<8x128xf32>
    %176 = arith.mulf %175, %166 : vector<8x128xf32>
    %177 = arith.addf %173, %176 : vector<8x128xf32>
    %c127_i32_58 = arith.constant 127 : i32
    %178 = tpu.dynamic_rotate %166 by %c127_i32_58 dim 1 : vector<8x128xf32>, i32 -> vector<8x128xf32>
    %cst_59 = arith.constant 0.000000e+00 : f32
    %179 = vector.broadcast %cst_59 : f32 to vector<8x128xf32>
    %180 = arith.select %19, %178, %179 : vector<8x128xi1>, vector<8x128xf32>
    %c144 = arith.constant 144 : index
    %181 = memref.load %arg4[%c144] : memref<200xf32, #tpu.memory_space<smem>>
    %182 = vector.broadcast %181 : f32 to vector<8x128xf32>
    %183 = arith.mulf %182, %180 : vector<8x128xf32>
    %184 = arith.addf %177, %183 : vector<8x128xf32>
    %c6_i32_60 = arith.constant 6 : i32
    %185 = tpu.dynamic_rotate %55 by %c6_i32_60 dim 0 : vector<8x128xf32>, i32 -> vector<8x128xf32>
    %cst_61 = arith.constant 0.000000e+00 : f32
    %186 = vector.broadcast %cst_61 : f32 to vector<8x128xf32>
    %187 = arith.select %23, %185, %186 : vector<8x128xi1>, vector<8x128xf32>
    %c2_i32_62 = arith.constant 2 : i32
    %188 = tpu.dynamic_rotate %187 by %c2_i32_62 dim 1 : vector<8x128xf32>, i32 -> vector<8x128xf32>
    %cst_63 = arith.constant 0.000000e+00 : f32
    %189 = vector.broadcast %cst_63 : f32 to vector<8x128xf32>
    %190 = arith.select %11, %188, %189 : vector<8x128xi1>, vector<8x128xf32>
    %c152 = arith.constant 152 : index
    %191 = memref.load %arg4[%c152] : memref<200xf32, #tpu.memory_space<smem>>
    %192 = vector.broadcast %191 : f32 to vector<8x128xf32>
    %193 = arith.mulf %192, %190 : vector<8x128xf32>
    %194 = arith.addf %184, %193 : vector<8x128xf32>
    %c160 = arith.constant 160 : index
    %195 = memref.load %arg4[%c160] : memref<200xf32, #tpu.memory_space<smem>>
    %196 = vector.broadcast %195 : f32 to vector<8x128xf32>
    %197 = arith.mulf %196, %187 : vector<8x128xf32>
    %198 = arith.addf %194, %197 : vector<8x128xf32>
    %c126_i32_64 = arith.constant 126 : i32
    %199 = tpu.dynamic_rotate %187 by %c126_i32_64 dim 1 : vector<8x128xf32>, i32 -> vector<8x128xf32>
    %cst_65 = arith.constant 0.000000e+00 : f32
    %200 = vector.broadcast %cst_65 : f32 to vector<8x128xf32>
    %201 = arith.select %13, %199, %200 : vector<8x128xi1>, vector<8x128xf32>
    %c168 = arith.constant 168 : index
    %202 = memref.load %arg4[%c168] : memref<200xf32, #tpu.memory_space<smem>>
    %203 = vector.broadcast %202 : f32 to vector<8x128xf32>
    %204 = arith.mulf %203, %201 : vector<8x128xf32>
    %205 = arith.addf %198, %204 : vector<8x128xf32>
    %c5_i32_66 = arith.constant 5 : i32
    %206 = tpu.dynamic_rotate %55 by %c5_i32_66 dim 0 : vector<8x128xf32>, i32 -> vector<8x128xf32>
    %cst_67 = arith.constant 0.000000e+00 : f32
    %207 = vector.broadcast %cst_67 : f32 to vector<8x128xf32>
    %208 = arith.select %25, %206, %207 : vector<8x128xi1>, vector<8x128xf32>
    %c3_i32_68 = arith.constant 3 : i32
    %209 = tpu.dynamic_rotate %208 by %c3_i32_68 dim 1 : vector<8x128xf32>, i32 -> vector<8x128xf32>
    %cst_69 = arith.constant 0.000000e+00 : f32
    %210 = vector.broadcast %cst_69 : f32 to vector<8x128xf32>
    %211 = arith.select %5, %209, %210 : vector<8x128xi1>, vector<8x128xf32>
    %c176 = arith.constant 176 : index
    %212 = memref.load %arg4[%c176] : memref<200xf32, #tpu.memory_space<smem>>
    %213 = vector.broadcast %212 : f32 to vector<8x128xf32>
    %214 = arith.mulf %213, %211 : vector<8x128xf32>
    %215 = arith.addf %205, %214 : vector<8x128xf32>
    %c184 = arith.constant 184 : index
    %216 = memref.load %arg4[%c184] : memref<200xf32, #tpu.memory_space<smem>>
    %217 = vector.broadcast %216 : f32 to vector<8x128xf32>
    %218 = arith.mulf %217, %208 : vector<8x128xf32>
    %219 = arith.addf %215, %218 : vector<8x128xf32>
    %c125_i32_70 = arith.constant 125 : i32
    %220 = tpu.dynamic_rotate %208 by %c125_i32_70 dim 1 : vector<8x128xf32>, i32 -> vector<8x128xf32>
    %cst_71 = arith.constant 0.000000e+00 : f32
    %221 = vector.broadcast %cst_71 : f32 to vector<8x128xf32>
    %222 = arith.select %7, %220, %221 : vector<8x128xi1>, vector<8x128xf32>
    %c192 = arith.constant 192 : index
    %223 = memref.load %arg4[%c192] : memref<200xf32, #tpu.memory_space<smem>>
    %224 = vector.broadcast %223 : f32 to vector<8x128xf32>
    %225 = arith.mulf %224, %222 : vector<8x128xf32>
    %226 = arith.addf %219, %225 : vector<8x128xf32>
    %c0_72 = arith.constant 0 : index
    %227 = memref.load %arg5[%c0_72] : memref<8xf32, #tpu.memory_space<smem>>
    %228 = vector.broadcast %227 : f32 to vector<8x128xf32>
    %229 = arith.addf %226, %228 : vector<8x128xf32>
    %cst_73 = arith.constant 0.000000e+00 : f32
    %230 = vector.broadcast %cst_73 : f32 to vector<8x128xf32>
    %231 = arith.maximumf %229, %230 : vector<8x128xf32>
    %c0_74 = arith.constant 0 : index
    %232 = memref.load %arg6[%c0_74] : memref<32xf32, #tpu.memory_space<smem>>
    %233 = vector.broadcast %232 : f32 to vector<8x128xf32>
    %234 = arith.mulf %233, %231 : vector<8x128xf32>
    %235 = arith.addf %34, %234 : vector<8x128xf32>
    %c1_75 = arith.constant 1 : index
    %236 = memref.load %arg6[%c1_75] : memref<32xf32, #tpu.memory_space<smem>>
    %237 = vector.broadcast %236 : f32 to vector<8x128xf32>
    %238 = arith.mulf %237, %231 : vector<8x128xf32>
    %239 = arith.addf %35, %238 : vector<8x128xf32>
    %c2_76 = arith.constant 2 : index
    %240 = memref.load %arg6[%c2_76] : memref<32xf32, #tpu.memory_space<smem>>
    %241 = vector.broadcast %240 : f32 to vector<8x128xf32>
    %242 = arith.mulf %241, %231 : vector<8x128xf32>
    %243 = arith.addf %36, %242 : vector<8x128xf32>
    %c3_77 = arith.constant 3 : index
    %244 = memref.load %arg6[%c3_77] : memref<32xf32, #tpu.memory_space<smem>>
    %245 = vector.broadcast %244 : f32 to vector<8x128xf32>
    %246 = arith.mulf %245, %231 : vector<8x128xf32>
    %247 = arith.addf %37, %246 : vector<8x128xf32>
    %c4 = arith.constant 4 : index
    %248 = memref.load %arg2[%c4] : memref<32xf32, #tpu.memory_space<smem>>
    %249 = vector.broadcast %248 : f32 to vector<8x128xf32>
    %250 = arith.mulf %249, %27 : vector<8x128xf32>
    %c5 = arith.constant 5 : index
    %251 = memref.load %arg2[%c5] : memref<32xf32, #tpu.memory_space<smem>>
    %252 = vector.broadcast %251 : f32 to vector<8x128xf32>
    %253 = arith.mulf %252, %29 : vector<8x128xf32>
    %254 = arith.addf %250, %253 : vector<8x128xf32>
    %c6 = arith.constant 6 : index
    %255 = memref.load %arg2[%c6] : memref<32xf32, #tpu.memory_space<smem>>
    %256 = vector.broadcast %255 : f32 to vector<8x128xf32>
    %257 = arith.mulf %256, %31 : vector<8x128xf32>
    %258 = arith.addf %254, %257 : vector<8x128xf32>
    %c7 = arith.constant 7 : index
    %259 = memref.load %arg2[%c7] : memref<32xf32, #tpu.memory_space<smem>>
    %260 = vector.broadcast %259 : f32 to vector<8x128xf32>
    %261 = arith.mulf %260, %33 : vector<8x128xf32>
    %262 = arith.addf %258, %261 : vector<8x128xf32>
    %c1_78 = arith.constant 1 : index
    %263 = memref.load %arg3[%c1_78] : memref<8xf32, #tpu.memory_space<smem>>
    %264 = vector.broadcast %263 : f32 to vector<8x128xf32>
    %265 = arith.addf %262, %264 : vector<8x128xf32>
    %c3_i32_79 = arith.constant 3 : i32
    %266 = tpu.dynamic_rotate %265 by %c3_i32_79 dim 0 : vector<8x128xf32>, i32 -> vector<8x128xf32>
    %cst_80 = arith.constant 0.000000e+00 : f32
    %267 = vector.broadcast %cst_80 : f32 to vector<8x128xf32>
    %268 = arith.select %3, %266, %267 : vector<8x128xi1>, vector<8x128xf32>
    %c3_i32_81 = arith.constant 3 : i32
    %269 = tpu.dynamic_rotate %268 by %c3_i32_81 dim 1 : vector<8x128xf32>, i32 -> vector<8x128xf32>
    %cst_82 = arith.constant 0.000000e+00 : f32
    %270 = vector.broadcast %cst_82 : f32 to vector<8x128xf32>
    %271 = arith.select %5, %269, %270 : vector<8x128xi1>, vector<8x128xf32>
    %c1_83 = arith.constant 1 : index
    %272 = memref.load %arg4[%c1_83] : memref<200xf32, #tpu.memory_space<smem>>
    %273 = vector.broadcast %272 : f32 to vector<8x128xf32>
    %274 = arith.mulf %273, %271 : vector<8x128xf32>
    %c9 = arith.constant 9 : index
    %275 = memref.load %arg4[%c9] : memref<200xf32, #tpu.memory_space<smem>>
    %276 = vector.broadcast %275 : f32 to vector<8x128xf32>
    %277 = arith.mulf %276, %268 : vector<8x128xf32>
    %278 = arith.addf %274, %277 : vector<8x128xf32>
    %c125_i32_84 = arith.constant 125 : i32
    %279 = tpu.dynamic_rotate %268 by %c125_i32_84 dim 1 : vector<8x128xf32>, i32 -> vector<8x128xf32>
    %cst_85 = arith.constant 0.000000e+00 : f32
    %280 = vector.broadcast %cst_85 : f32 to vector<8x128xf32>
    %281 = arith.select %7, %279, %280 : vector<8x128xi1>, vector<8x128xf32>
    %c17 = arith.constant 17 : index
    %282 = memref.load %arg4[%c17] : memref<200xf32, #tpu.memory_space<smem>>
    %283 = vector.broadcast %282 : f32 to vector<8x128xf32>
    %284 = arith.mulf %283, %281 : vector<8x128xf32>
    %285 = arith.addf %278, %284 : vector<8x128xf32>
    %c2_i32_86 = arith.constant 2 : i32
    %286 = tpu.dynamic_rotate %265 by %c2_i32_86 dim 0 : vector<8x128xf32>, i32 -> vector<8x128xf32>
    %cst_87 = arith.constant 0.000000e+00 : f32
    %287 = vector.broadcast %cst_87 : f32 to vector<8x128xf32>
    %288 = arith.select %9, %286, %287 : vector<8x128xi1>, vector<8x128xf32>
    %c2_i32_88 = arith.constant 2 : i32
    %289 = tpu.dynamic_rotate %288 by %c2_i32_88 dim 1 : vector<8x128xf32>, i32 -> vector<8x128xf32>
    %cst_89 = arith.constant 0.000000e+00 : f32
    %290 = vector.broadcast %cst_89 : f32 to vector<8x128xf32>
    %291 = arith.select %11, %289, %290 : vector<8x128xi1>, vector<8x128xf32>
    %c25 = arith.constant 25 : index
    %292 = memref.load %arg4[%c25] : memref<200xf32, #tpu.memory_space<smem>>
    %293 = vector.broadcast %292 : f32 to vector<8x128xf32>
    %294 = arith.mulf %293, %291 : vector<8x128xf32>
    %295 = arith.addf %285, %294 : vector<8x128xf32>
    %c33 = arith.constant 33 : index
    %296 = memref.load %arg4[%c33] : memref<200xf32, #tpu.memory_space<smem>>
    %297 = vector.broadcast %296 : f32 to vector<8x128xf32>
    %298 = arith.mulf %297, %288 : vector<8x128xf32>
    %299 = arith.addf %295, %298 : vector<8x128xf32>
    %c126_i32_90 = arith.constant 126 : i32
    %300 = tpu.dynamic_rotate %288 by %c126_i32_90 dim 1 : vector<8x128xf32>, i32 -> vector<8x128xf32>
    %cst_91 = arith.constant 0.000000e+00 : f32
    %301 = vector.broadcast %cst_91 : f32 to vector<8x128xf32>
    %302 = arith.select %13, %300, %301 : vector<8x128xi1>, vector<8x128xf32>
    %c41 = arith.constant 41 : index
    %303 = memref.load %arg4[%c41] : memref<200xf32, #tpu.memory_space<smem>>
    %304 = vector.broadcast %303 : f32 to vector<8x128xf32>
    %305 = arith.mulf %304, %302 : vector<8x128xf32>
    %306 = arith.addf %299, %305 : vector<8x128xf32>
    %c1_i32_92 = arith.constant 1 : i32
    %307 = tpu.dynamic_rotate %265 by %c1_i32_92 dim 0 : vector<8x128xf32>, i32 -> vector<8x128xf32>
    %cst_93 = arith.constant 0.000000e+00 : f32
    %308 = vector.broadcast %cst_93 : f32 to vector<8x128xf32>
    %309 = arith.select %15, %307, %308 : vector<8x128xi1>, vector<8x128xf32>
    %c1_i32_94 = arith.constant 1 : i32
    %310 = tpu.dynamic_rotate %309 by %c1_i32_94 dim 1 : vector<8x128xf32>, i32 -> vector<8x128xf32>
    %cst_95 = arith.constant 0.000000e+00 : f32
    %311 = vector.broadcast %cst_95 : f32 to vector<8x128xf32>
    %312 = arith.select %17, %310, %311 : vector<8x128xi1>, vector<8x128xf32>
    %c49 = arith.constant 49 : index
    %313 = memref.load %arg4[%c49] : memref<200xf32, #tpu.memory_space<smem>>
    %314 = vector.broadcast %313 : f32 to vector<8x128xf32>
    %315 = arith.mulf %314, %312 : vector<8x128xf32>
    %316 = arith.addf %306, %315 : vector<8x128xf32>
    %c57 = arith.constant 57 : index
    %317 = memref.load %arg4[%c57] : memref<200xf32, #tpu.memory_space<smem>>
    %318 = vector.broadcast %317 : f32 to vector<8x128xf32>
    %319 = arith.mulf %318, %309 : vector<8x128xf32>
    %320 = arith.addf %316, %319 : vector<8x128xf32>
    %c127_i32_96 = arith.constant 127 : i32
    %321 = tpu.dynamic_rotate %309 by %c127_i32_96 dim 1 : vector<8x128xf32>, i32 -> vector<8x128xf32>
    %cst_97 = arith.constant 0.000000e+00 : f32
    %322 = vector.broadcast %cst_97 : f32 to vector<8x128xf32>
    %323 = arith.select %19, %321, %322 : vector<8x128xi1>, vector<8x128xf32>
    %c65 = arith.constant 65 : index
    %324 = memref.load %arg4[%c65] : memref<200xf32, #tpu.memory_space<smem>>
    %325 = vector.broadcast %324 : f32 to vector<8x128xf32>
    %326 = arith.mulf %325, %323 : vector<8x128xf32>
    %327 = arith.addf %320, %326 : vector<8x128xf32>
    %c3_i32_98 = arith.constant 3 : i32
    %328 = tpu.dynamic_rotate %265 by %c3_i32_98 dim 1 : vector<8x128xf32>, i32 -> vector<8x128xf32>
    %cst_99 = arith.constant 0.000000e+00 : f32
    %329 = vector.broadcast %cst_99 : f32 to vector<8x128xf32>
    %330 = arith.select %5, %328, %329 : vector<8x128xi1>, vector<8x128xf32>
    %c73 = arith.constant 73 : index
    %331 = memref.load %arg4[%c73] : memref<200xf32, #tpu.memory_space<smem>>
    %332 = vector.broadcast %331 : f32 to vector<8x128xf32>
    %333 = arith.mulf %332, %330 : vector<8x128xf32>
    %334 = arith.addf %327, %333 : vector<8x128xf32>
    %c2_i32_100 = arith.constant 2 : i32
    %335 = tpu.dynamic_rotate %265 by %c2_i32_100 dim 1 : vector<8x128xf32>, i32 -> vector<8x128xf32>
    %cst_101 = arith.constant 0.000000e+00 : f32
    %336 = vector.broadcast %cst_101 : f32 to vector<8x128xf32>
    %337 = arith.select %11, %335, %336 : vector<8x128xi1>, vector<8x128xf32>
    %c81 = arith.constant 81 : index
    %338 = memref.load %arg4[%c81] : memref<200xf32, #tpu.memory_space<smem>>
    %339 = vector.broadcast %338 : f32 to vector<8x128xf32>
    %340 = arith.mulf %339, %337 : vector<8x128xf32>
    %341 = arith.addf %334, %340 : vector<8x128xf32>
    %c1_i32_102 = arith.constant 1 : i32
    %342 = tpu.dynamic_rotate %265 by %c1_i32_102 dim 1 : vector<8x128xf32>, i32 -> vector<8x128xf32>
    %cst_103 = arith.constant 0.000000e+00 : f32
    %343 = vector.broadcast %cst_103 : f32 to vector<8x128xf32>
    %344 = arith.select %17, %342, %343 : vector<8x128xi1>, vector<8x128xf32>
    %c89 = arith.constant 89 : index
    %345 = memref.load %arg4[%c89] : memref<200xf32, #tpu.memory_space<smem>>
    %346 = vector.broadcast %345 : f32 to vector<8x128xf32>
    %347 = arith.mulf %346, %344 : vector<8x128xf32>
    %348 = arith.addf %341, %347 : vector<8x128xf32>
    %c97 = arith.constant 97 : index
    %349 = memref.load %arg4[%c97] : memref<200xf32, #tpu.memory_space<smem>>
    %350 = vector.broadcast %349 : f32 to vector<8x128xf32>
    %351 = arith.mulf %350, %265 : vector<8x128xf32>
    %352 = arith.addf %348, %351 : vector<8x128xf32>
    %c127_i32_104 = arith.constant 127 : i32
    %353 = tpu.dynamic_rotate %265 by %c127_i32_104 dim 1 : vector<8x128xf32>, i32 -> vector<8x128xf32>
    %cst_105 = arith.constant 0.000000e+00 : f32
    %354 = vector.broadcast %cst_105 : f32 to vector<8x128xf32>
    %355 = arith.select %19, %353, %354 : vector<8x128xi1>, vector<8x128xf32>
    %c105 = arith.constant 105 : index
    %356 = memref.load %arg4[%c105] : memref<200xf32, #tpu.memory_space<smem>>
    %357 = vector.broadcast %356 : f32 to vector<8x128xf32>
    %358 = arith.mulf %357, %355 : vector<8x128xf32>
    %359 = arith.addf %352, %358 : vector<8x128xf32>
    %c126_i32_106 = arith.constant 126 : i32
    %360 = tpu.dynamic_rotate %265 by %c126_i32_106 dim 1 : vector<8x128xf32>, i32 -> vector<8x128xf32>
    %cst_107 = arith.constant 0.000000e+00 : f32
    %361 = vector.broadcast %cst_107 : f32 to vector<8x128xf32>
    %362 = arith.select %13, %360, %361 : vector<8x128xi1>, vector<8x128xf32>
    %c113 = arith.constant 113 : index
    %363 = memref.load %arg4[%c113] : memref<200xf32, #tpu.memory_space<smem>>
    %364 = vector.broadcast %363 : f32 to vector<8x128xf32>
    %365 = arith.mulf %364, %362 : vector<8x128xf32>
    %366 = arith.addf %359, %365 : vector<8x128xf32>
    %c125_i32_108 = arith.constant 125 : i32
    %367 = tpu.dynamic_rotate %265 by %c125_i32_108 dim 1 : vector<8x128xf32>, i32 -> vector<8x128xf32>
    %cst_109 = arith.constant 0.000000e+00 : f32
    %368 = vector.broadcast %cst_109 : f32 to vector<8x128xf32>
    %369 = arith.select %7, %367, %368 : vector<8x128xi1>, vector<8x128xf32>
    %c121 = arith.constant 121 : index
    %370 = memref.load %arg4[%c121] : memref<200xf32, #tpu.memory_space<smem>>
    %371 = vector.broadcast %370 : f32 to vector<8x128xf32>
    %372 = arith.mulf %371, %369 : vector<8x128xf32>
    %373 = arith.addf %366, %372 : vector<8x128xf32>
    %c7_i32_110 = arith.constant 7 : i32
    %374 = tpu.dynamic_rotate %265 by %c7_i32_110 dim 0 : vector<8x128xf32>, i32 -> vector<8x128xf32>
    %cst_111 = arith.constant 0.000000e+00 : f32
    %375 = vector.broadcast %cst_111 : f32 to vector<8x128xf32>
    %376 = arith.select %21, %374, %375 : vector<8x128xi1>, vector<8x128xf32>
    %c1_i32_112 = arith.constant 1 : i32
    %377 = tpu.dynamic_rotate %376 by %c1_i32_112 dim 1 : vector<8x128xf32>, i32 -> vector<8x128xf32>
    %cst_113 = arith.constant 0.000000e+00 : f32
    %378 = vector.broadcast %cst_113 : f32 to vector<8x128xf32>
    %379 = arith.select %17, %377, %378 : vector<8x128xi1>, vector<8x128xf32>
    %c129 = arith.constant 129 : index
    %380 = memref.load %arg4[%c129] : memref<200xf32, #tpu.memory_space<smem>>
    %381 = vector.broadcast %380 : f32 to vector<8x128xf32>
    %382 = arith.mulf %381, %379 : vector<8x128xf32>
    %383 = arith.addf %373, %382 : vector<8x128xf32>
    %c137 = arith.constant 137 : index
    %384 = memref.load %arg4[%c137] : memref<200xf32, #tpu.memory_space<smem>>
    %385 = vector.broadcast %384 : f32 to vector<8x128xf32>
    %386 = arith.mulf %385, %376 : vector<8x128xf32>
    %387 = arith.addf %383, %386 : vector<8x128xf32>
    %c127_i32_114 = arith.constant 127 : i32
    %388 = tpu.dynamic_rotate %376 by %c127_i32_114 dim 1 : vector<8x128xf32>, i32 -> vector<8x128xf32>
    %cst_115 = arith.constant 0.000000e+00 : f32
    %389 = vector.broadcast %cst_115 : f32 to vector<8x128xf32>
    %390 = arith.select %19, %388, %389 : vector<8x128xi1>, vector<8x128xf32>
    %c145 = arith.constant 145 : index
    %391 = memref.load %arg4[%c145] : memref<200xf32, #tpu.memory_space<smem>>
    %392 = vector.broadcast %391 : f32 to vector<8x128xf32>
    %393 = arith.mulf %392, %390 : vector<8x128xf32>
    %394 = arith.addf %387, %393 : vector<8x128xf32>
    %c6_i32_116 = arith.constant 6 : i32
    %395 = tpu.dynamic_rotate %265 by %c6_i32_116 dim 0 : vector<8x128xf32>, i32 -> vector<8x128xf32>
    %cst_117 = arith.constant 0.000000e+00 : f32
    %396 = vector.broadcast %cst_117 : f32 to vector<8x128xf32>
    %397 = arith.select %23, %395, %396 : vector<8x128xi1>, vector<8x128xf32>
    %c2_i32_118 = arith.constant 2 : i32
    %398 = tpu.dynamic_rotate %397 by %c2_i32_118 dim 1 : vector<8x128xf32>, i32 -> vector<8x128xf32>
    %cst_119 = arith.constant 0.000000e+00 : f32
    %399 = vector.broadcast %cst_119 : f32 to vector<8x128xf32>
    %400 = arith.select %11, %398, %399 : vector<8x128xi1>, vector<8x128xf32>
    %c153 = arith.constant 153 : index
    %401 = memref.load %arg4[%c153] : memref<200xf32, #tpu.memory_space<smem>>
    %402 = vector.broadcast %401 : f32 to vector<8x128xf32>
    %403 = arith.mulf %402, %400 : vector<8x128xf32>
    %404 = arith.addf %394, %403 : vector<8x128xf32>
    %c161 = arith.constant 161 : index
    %405 = memref.load %arg4[%c161] : memref<200xf32, #tpu.memory_space<smem>>
    %406 = vector.broadcast %405 : f32 to vector<8x128xf32>
    %407 = arith.mulf %406, %397 : vector<8x128xf32>
    %408 = arith.addf %404, %407 : vector<8x128xf32>
    %c126_i32_120 = arith.constant 126 : i32
    %409 = tpu.dynamic_rotate %397 by %c126_i32_120 dim 1 : vector<8x128xf32>, i32 -> vector<8x128xf32>
    %cst_121 = arith.constant 0.000000e+00 : f32
    %410 = vector.broadcast %cst_121 : f32 to vector<8x128xf32>
    %411 = arith.select %13, %409, %410 : vector<8x128xi1>, vector<8x128xf32>
    %c169 = arith.constant 169 : index
    %412 = memref.load %arg4[%c169] : memref<200xf32, #tpu.memory_space<smem>>
    %413 = vector.broadcast %412 : f32 to vector<8x128xf32>
    %414 = arith.mulf %413, %411 : vector<8x128xf32>
    %415 = arith.addf %408, %414 : vector<8x128xf32>
    %c5_i32_122 = arith.constant 5 : i32
    %416 = tpu.dynamic_rotate %265 by %c5_i32_122 dim 0 : vector<8x128xf32>, i32 -> vector<8x128xf32>
    %cst_123 = arith.constant 0.000000e+00 : f32
    %417 = vector.broadcast %cst_123 : f32 to vector<8x128xf32>
    %418 = arith.select %25, %416, %417 : vector<8x128xi1>, vector<8x128xf32>
    %c3_i32_124 = arith.constant 3 : i32
    %419 = tpu.dynamic_rotate %418 by %c3_i32_124 dim 1 : vector<8x128xf32>, i32 -> vector<8x128xf32>
    %cst_125 = arith.constant 0.000000e+00 : f32
    %420 = vector.broadcast %cst_125 : f32 to vector<8x128xf32>
    %421 = arith.select %5, %419, %420 : vector<8x128xi1>, vector<8x128xf32>
    %c177 = arith.constant 177 : index
    %422 = memref.load %arg4[%c177] : memref<200xf32, #tpu.memory_space<smem>>
    %423 = vector.broadcast %422 : f32 to vector<8x128xf32>
    %424 = arith.mulf %423, %421 : vector<8x128xf32>
    %425 = arith.addf %415, %424 : vector<8x128xf32>
    %c185 = arith.constant 185 : index
    %426 = memref.load %arg4[%c185] : memref<200xf32, #tpu.memory_space<smem>>
    %427 = vector.broadcast %426 : f32 to vector<8x128xf32>
    %428 = arith.mulf %427, %418 : vector<8x128xf32>
    %429 = arith.addf %425, %428 : vector<8x128xf32>
    %c125_i32_126 = arith.constant 125 : i32
    %430 = tpu.dynamic_rotate %418 by %c125_i32_126 dim 1 : vector<8x128xf32>, i32 -> vector<8x128xf32>
    %cst_127 = arith.constant 0.000000e+00 : f32
    %431 = vector.broadcast %cst_127 : f32 to vector<8x128xf32>
    %432 = arith.select %7, %430, %431 : vector<8x128xi1>, vector<8x128xf32>
    %c193 = arith.constant 193 : index
    %433 = memref.load %arg4[%c193] : memref<200xf32, #tpu.memory_space<smem>>
    %434 = vector.broadcast %433 : f32 to vector<8x128xf32>
    %435 = arith.mulf %434, %432 : vector<8x128xf32>
    %436 = arith.addf %429, %435 : vector<8x128xf32>
    %c1_128 = arith.constant 1 : index
    %437 = memref.load %arg5[%c1_128] : memref<8xf32, #tpu.memory_space<smem>>
    %438 = vector.broadcast %437 : f32 to vector<8x128xf32>
    %439 = arith.addf %436, %438 : vector<8x128xf32>
    %cst_129 = arith.constant 0.000000e+00 : f32
    %440 = vector.broadcast %cst_129 : f32 to vector<8x128xf32>
    %441 = arith.maximumf %439, %440 : vector<8x128xf32>
    %c4_130 = arith.constant 4 : index
    %442 = memref.load %arg6[%c4_130] : memref<32xf32, #tpu.memory_space<smem>>
    %443 = vector.broadcast %442 : f32 to vector<8x128xf32>
    %444 = arith.mulf %443, %441 : vector<8x128xf32>
    %445 = arith.addf %235, %444 : vector<8x128xf32>
    %c5_131 = arith.constant 5 : index
    %446 = memref.load %arg6[%c5_131] : memref<32xf32, #tpu.memory_space<smem>>
    %447 = vector.broadcast %446 : f32 to vector<8x128xf32>
    %448 = arith.mulf %447, %441 : vector<8x128xf32>
    %449 = arith.addf %239, %448 : vector<8x128xf32>
    %c6_132 = arith.constant 6 : index
    %450 = memref.load %arg6[%c6_132] : memref<32xf32, #tpu.memory_space<smem>>
    %451 = vector.broadcast %450 : f32 to vector<8x128xf32>
    %452 = arith.mulf %451, %441 : vector<8x128xf32>
    %453 = arith.addf %243, %452 : vector<8x128xf32>
    %c7_133 = arith.constant 7 : index
    %454 = memref.load %arg6[%c7_133] : memref<32xf32, #tpu.memory_space<smem>>
    %455 = vector.broadcast %454 : f32 to vector<8x128xf32>
    %456 = arith.mulf %455, %441 : vector<8x128xf32>
    %457 = arith.addf %247, %456 : vector<8x128xf32>
    %c8_134 = arith.constant 8 : index
    %458 = memref.load %arg2[%c8_134] : memref<32xf32, #tpu.memory_space<smem>>
    %459 = vector.broadcast %458 : f32 to vector<8x128xf32>
    %460 = arith.mulf %459, %27 : vector<8x128xf32>
    %c9_135 = arith.constant 9 : index
    %461 = memref.load %arg2[%c9_135] : memref<32xf32, #tpu.memory_space<smem>>
    %462 = vector.broadcast %461 : f32 to vector<8x128xf32>
    %463 = arith.mulf %462, %29 : vector<8x128xf32>
    %464 = arith.addf %460, %463 : vector<8x128xf32>
    %c10 = arith.constant 10 : index
    %465 = memref.load %arg2[%c10] : memref<32xf32, #tpu.memory_space<smem>>
    %466 = vector.broadcast %465 : f32 to vector<8x128xf32>
    %467 = arith.mulf %466, %31 : vector<8x128xf32>
    %468 = arith.addf %464, %467 : vector<8x128xf32>
    %c11 = arith.constant 11 : index
    %469 = memref.load %arg2[%c11] : memref<32xf32, #tpu.memory_space<smem>>
    %470 = vector.broadcast %469 : f32 to vector<8x128xf32>
    %471 = arith.mulf %470, %33 : vector<8x128xf32>
    %472 = arith.addf %468, %471 : vector<8x128xf32>
    %c2_136 = arith.constant 2 : index
    %473 = memref.load %arg3[%c2_136] : memref<8xf32, #tpu.memory_space<smem>>
    %474 = vector.broadcast %473 : f32 to vector<8x128xf32>
    %475 = arith.addf %472, %474 : vector<8x128xf32>
    %c3_i32_137 = arith.constant 3 : i32
    %476 = tpu.dynamic_rotate %475 by %c3_i32_137 dim 0 : vector<8x128xf32>, i32 -> vector<8x128xf32>
    %cst_138 = arith.constant 0.000000e+00 : f32
    %477 = vector.broadcast %cst_138 : f32 to vector<8x128xf32>
    %478 = arith.select %3, %476, %477 : vector<8x128xi1>, vector<8x128xf32>
    %c3_i32_139 = arith.constant 3 : i32
    %479 = tpu.dynamic_rotate %478 by %c3_i32_139 dim 1 : vector<8x128xf32>, i32 -> vector<8x128xf32>
    %cst_140 = arith.constant 0.000000e+00 : f32
    %480 = vector.broadcast %cst_140 : f32 to vector<8x128xf32>
    %481 = arith.select %5, %479, %480 : vector<8x128xi1>, vector<8x128xf32>
    %c2_141 = arith.constant 2 : index
    %482 = memref.load %arg4[%c2_141] : memref<200xf32, #tpu.memory_space<smem>>
    %483 = vector.broadcast %482 : f32 to vector<8x128xf32>
    %484 = arith.mulf %483, %481 : vector<8x128xf32>
    %c10_142 = arith.constant 10 : index
    %485 = memref.load %arg4[%c10_142] : memref<200xf32, #tpu.memory_space<smem>>
    %486 = vector.broadcast %485 : f32 to vector<8x128xf32>
    %487 = arith.mulf %486, %478 : vector<8x128xf32>
    %488 = arith.addf %484, %487 : vector<8x128xf32>
    %c125_i32_143 = arith.constant 125 : i32
    %489 = tpu.dynamic_rotate %478 by %c125_i32_143 dim 1 : vector<8x128xf32>, i32 -> vector<8x128xf32>
    %cst_144 = arith.constant 0.000000e+00 : f32
    %490 = vector.broadcast %cst_144 : f32 to vector<8x128xf32>
    %491 = arith.select %7, %489, %490 : vector<8x128xi1>, vector<8x128xf32>
    %c18 = arith.constant 18 : index
    %492 = memref.load %arg4[%c18] : memref<200xf32, #tpu.memory_space<smem>>
    %493 = vector.broadcast %492 : f32 to vector<8x128xf32>
    %494 = arith.mulf %493, %491 : vector<8x128xf32>
    %495 = arith.addf %488, %494 : vector<8x128xf32>
    %c2_i32_145 = arith.constant 2 : i32
    %496 = tpu.dynamic_rotate %475 by %c2_i32_145 dim 0 : vector<8x128xf32>, i32 -> vector<8x128xf32>
    %cst_146 = arith.constant 0.000000e+00 : f32
    %497 = vector.broadcast %cst_146 : f32 to vector<8x128xf32>
    %498 = arith.select %9, %496, %497 : vector<8x128xi1>, vector<8x128xf32>
    %c2_i32_147 = arith.constant 2 : i32
    %499 = tpu.dynamic_rotate %498 by %c2_i32_147 dim 1 : vector<8x128xf32>, i32 -> vector<8x128xf32>
    %cst_148 = arith.constant 0.000000e+00 : f32
    %500 = vector.broadcast %cst_148 : f32 to vector<8x128xf32>
    %501 = arith.select %11, %499, %500 : vector<8x128xi1>, vector<8x128xf32>
    %c26 = arith.constant 26 : index
    %502 = memref.load %arg4[%c26] : memref<200xf32, #tpu.memory_space<smem>>
    %503 = vector.broadcast %502 : f32 to vector<8x128xf32>
    %504 = arith.mulf %503, %501 : vector<8x128xf32>
    %505 = arith.addf %495, %504 : vector<8x128xf32>
    %c34 = arith.constant 34 : index
    %506 = memref.load %arg4[%c34] : memref<200xf32, #tpu.memory_space<smem>>
    %507 = vector.broadcast %506 : f32 to vector<8x128xf32>
    %508 = arith.mulf %507, %498 : vector<8x128xf32>
    %509 = arith.addf %505, %508 : vector<8x128xf32>
    %c126_i32_149 = arith.constant 126 : i32
    %510 = tpu.dynamic_rotate %498 by %c126_i32_149 dim 1 : vector<8x128xf32>, i32 -> vector<8x128xf32>
    %cst_150 = arith.constant 0.000000e+00 : f32
    %511 = vector.broadcast %cst_150 : f32 to vector<8x128xf32>
    %512 = arith.select %13, %510, %511 : vector<8x128xi1>, vector<8x128xf32>
    %c42 = arith.constant 42 : index
    %513 = memref.load %arg4[%c42] : memref<200xf32, #tpu.memory_space<smem>>
    %514 = vector.broadcast %513 : f32 to vector<8x128xf32>
    %515 = arith.mulf %514, %512 : vector<8x128xf32>
    %516 = arith.addf %509, %515 : vector<8x128xf32>
    %c1_i32_151 = arith.constant 1 : i32
    %517 = tpu.dynamic_rotate %475 by %c1_i32_151 dim 0 : vector<8x128xf32>, i32 -> vector<8x128xf32>
    %cst_152 = arith.constant 0.000000e+00 : f32
    %518 = vector.broadcast %cst_152 : f32 to vector<8x128xf32>
    %519 = arith.select %15, %517, %518 : vector<8x128xi1>, vector<8x128xf32>
    %c1_i32_153 = arith.constant 1 : i32
    %520 = tpu.dynamic_rotate %519 by %c1_i32_153 dim 1 : vector<8x128xf32>, i32 -> vector<8x128xf32>
    %cst_154 = arith.constant 0.000000e+00 : f32
    %521 = vector.broadcast %cst_154 : f32 to vector<8x128xf32>
    %522 = arith.select %17, %520, %521 : vector<8x128xi1>, vector<8x128xf32>
    %c50 = arith.constant 50 : index
    %523 = memref.load %arg4[%c50] : memref<200xf32, #tpu.memory_space<smem>>
    %524 = vector.broadcast %523 : f32 to vector<8x128xf32>
    %525 = arith.mulf %524, %522 : vector<8x128xf32>
    %526 = arith.addf %516, %525 : vector<8x128xf32>
    %c58 = arith.constant 58 : index
    %527 = memref.load %arg4[%c58] : memref<200xf32, #tpu.memory_space<smem>>
    %528 = vector.broadcast %527 : f32 to vector<8x128xf32>
    %529 = arith.mulf %528, %519 : vector<8x128xf32>
    %530 = arith.addf %526, %529 : vector<8x128xf32>
    %c127_i32_155 = arith.constant 127 : i32
    %531 = tpu.dynamic_rotate %519 by %c127_i32_155 dim 1 : vector<8x128xf32>, i32 -> vector<8x128xf32>
    %cst_156 = arith.constant 0.000000e+00 : f32
    %532 = vector.broadcast %cst_156 : f32 to vector<8x128xf32>
    %533 = arith.select %19, %531, %532 : vector<8x128xi1>, vector<8x128xf32>
    %c66 = arith.constant 66 : index
    %534 = memref.load %arg4[%c66] : memref<200xf32, #tpu.memory_space<smem>>
    %535 = vector.broadcast %534 : f32 to vector<8x128xf32>
    %536 = arith.mulf %535, %533 : vector<8x128xf32>
    %537 = arith.addf %530, %536 : vector<8x128xf32>
    %c3_i32_157 = arith.constant 3 : i32
    %538 = tpu.dynamic_rotate %475 by %c3_i32_157 dim 1 : vector<8x128xf32>, i32 -> vector<8x128xf32>
    %cst_158 = arith.constant 0.000000e+00 : f32
    %539 = vector.broadcast %cst_158 : f32 to vector<8x128xf32>
    %540 = arith.select %5, %538, %539 : vector<8x128xi1>, vector<8x128xf32>
    %c74 = arith.constant 74 : index
    %541 = memref.load %arg4[%c74] : memref<200xf32, #tpu.memory_space<smem>>
    %542 = vector.broadcast %541 : f32 to vector<8x128xf32>
    %543 = arith.mulf %542, %540 : vector<8x128xf32>
    %544 = arith.addf %537, %543 : vector<8x128xf32>
    %c2_i32_159 = arith.constant 2 : i32
    %545 = tpu.dynamic_rotate %475 by %c2_i32_159 dim 1 : vector<8x128xf32>, i32 -> vector<8x128xf32>
    %cst_160 = arith.constant 0.000000e+00 : f32
    %546 = vector.broadcast %cst_160 : f32 to vector<8x128xf32>
    %547 = arith.select %11, %545, %546 : vector<8x128xi1>, vector<8x128xf32>
    %c82 = arith.constant 82 : index
    %548 = memref.load %arg4[%c82] : memref<200xf32, #tpu.memory_space<smem>>
    %549 = vector.broadcast %548 : f32 to vector<8x128xf32>
    %550 = arith.mulf %549, %547 : vector<8x128xf32>
    %551 = arith.addf %544, %550 : vector<8x128xf32>
    %c1_i32_161 = arith.constant 1 : i32
    %552 = tpu.dynamic_rotate %475 by %c1_i32_161 dim 1 : vector<8x128xf32>, i32 -> vector<8x128xf32>
    %cst_162 = arith.constant 0.000000e+00 : f32
    %553 = vector.broadcast %cst_162 : f32 to vector<8x128xf32>
    %554 = arith.select %17, %552, %553 : vector<8x128xi1>, vector<8x128xf32>
    %c90 = arith.constant 90 : index
    %555 = memref.load %arg4[%c90] : memref<200xf32, #tpu.memory_space<smem>>
    %556 = vector.broadcast %555 : f32 to vector<8x128xf32>
    %557 = arith.mulf %556, %554 : vector<8x128xf32>
    %558 = arith.addf %551, %557 : vector<8x128xf32>
    %c98 = arith.constant 98 : index
    %559 = memref.load %arg4[%c98] : memref<200xf32, #tpu.memory_space<smem>>
    %560 = vector.broadcast %559 : f32 to vector<8x128xf32>
    %561 = arith.mulf %560, %475 : vector<8x128xf32>
    %562 = arith.addf %558, %561 : vector<8x128xf32>
    %c127_i32_163 = arith.constant 127 : i32
    %563 = tpu.dynamic_rotate %475 by %c127_i32_163 dim 1 : vector<8x128xf32>, i32 -> vector<8x128xf32>
    %cst_164 = arith.constant 0.000000e+00 : f32
    %564 = vector.broadcast %cst_164 : f32 to vector<8x128xf32>
    %565 = arith.select %19, %563, %564 : vector<8x128xi1>, vector<8x128xf32>
    %c106 = arith.constant 106 : index
    %566 = memref.load %arg4[%c106] : memref<200xf32, #tpu.memory_space<smem>>
    %567 = vector.broadcast %566 : f32 to vector<8x128xf32>
    %568 = arith.mulf %567, %565 : vector<8x128xf32>
    %569 = arith.addf %562, %568 : vector<8x128xf32>
    %c126_i32_165 = arith.constant 126 : i32
    %570 = tpu.dynamic_rotate %475 by %c126_i32_165 dim 1 : vector<8x128xf32>, i32 -> vector<8x128xf32>
    %cst_166 = arith.constant 0.000000e+00 : f32
    %571 = vector.broadcast %cst_166 : f32 to vector<8x128xf32>
    %572 = arith.select %13, %570, %571 : vector<8x128xi1>, vector<8x128xf32>
    %c114 = arith.constant 114 : index
    %573 = memref.load %arg4[%c114] : memref<200xf32, #tpu.memory_space<smem>>
    %574 = vector.broadcast %573 : f32 to vector<8x128xf32>
    %575 = arith.mulf %574, %572 : vector<8x128xf32>
    %576 = arith.addf %569, %575 : vector<8x128xf32>
    %c125_i32_167 = arith.constant 125 : i32
    %577 = tpu.dynamic_rotate %475 by %c125_i32_167 dim 1 : vector<8x128xf32>, i32 -> vector<8x128xf32>
    %cst_168 = arith.constant 0.000000e+00 : f32
    %578 = vector.broadcast %cst_168 : f32 to vector<8x128xf32>
    %579 = arith.select %7, %577, %578 : vector<8x128xi1>, vector<8x128xf32>
    %c122 = arith.constant 122 : index
    %580 = memref.load %arg4[%c122] : memref<200xf32, #tpu.memory_space<smem>>
    %581 = vector.broadcast %580 : f32 to vector<8x128xf32>
    %582 = arith.mulf %581, %579 : vector<8x128xf32>
    %583 = arith.addf %576, %582 : vector<8x128xf32>
    %c7_i32_169 = arith.constant 7 : i32
    %584 = tpu.dynamic_rotate %475 by %c7_i32_169 dim 0 : vector<8x128xf32>, i32 -> vector<8x128xf32>
    %cst_170 = arith.constant 0.000000e+00 : f32
    %585 = vector.broadcast %cst_170 : f32 to vector<8x128xf32>
    %586 = arith.select %21, %584, %585 : vector<8x128xi1>, vector<8x128xf32>
    %c1_i32_171 = arith.constant 1 : i32
    %587 = tpu.dynamic_rotate %586 by %c1_i32_171 dim 1 : vector<8x128xf32>, i32 -> vector<8x128xf32>
    %cst_172 = arith.constant 0.000000e+00 : f32
    %588 = vector.broadcast %cst_172 : f32 to vector<8x128xf32>
    %589 = arith.select %17, %587, %588 : vector<8x128xi1>, vector<8x128xf32>
    %c130 = arith.constant 130 : index
    %590 = memref.load %arg4[%c130] : memref<200xf32, #tpu.memory_space<smem>>
    %591 = vector.broadcast %590 : f32 to vector<8x128xf32>
    %592 = arith.mulf %591, %589 : vector<8x128xf32>
    %593 = arith.addf %583, %592 : vector<8x128xf32>
    %c138 = arith.constant 138 : index
    %594 = memref.load %arg4[%c138] : memref<200xf32, #tpu.memory_space<smem>>
    %595 = vector.broadcast %594 : f32 to vector<8x128xf32>
    %596 = arith.mulf %595, %586 : vector<8x128xf32>
    %597 = arith.addf %593, %596 : vector<8x128xf32>
    %c127_i32_173 = arith.constant 127 : i32
    %598 = tpu.dynamic_rotate %586 by %c127_i32_173 dim 1 : vector<8x128xf32>, i32 -> vector<8x128xf32>
    %cst_174 = arith.constant 0.000000e+00 : f32
    %599 = vector.broadcast %cst_174 : f32 to vector<8x128xf32>
    %600 = arith.select %19, %598, %599 : vector<8x128xi1>, vector<8x128xf32>
    %c146 = arith.constant 146 : index
    %601 = memref.load %arg4[%c146] : memref<200xf32, #tpu.memory_space<smem>>
    %602 = vector.broadcast %601 : f32 to vector<8x128xf32>
    %603 = arith.mulf %602, %600 : vector<8x128xf32>
    %604 = arith.addf %597, %603 : vector<8x128xf32>
    %c6_i32_175 = arith.constant 6 : i32
    %605 = tpu.dynamic_rotate %475 by %c6_i32_175 dim 0 : vector<8x128xf32>, i32 -> vector<8x128xf32>
    %cst_176 = arith.constant 0.000000e+00 : f32
    %606 = vector.broadcast %cst_176 : f32 to vector<8x128xf32>
    %607 = arith.select %23, %605, %606 : vector<8x128xi1>, vector<8x128xf32>
    %c2_i32_177 = arith.constant 2 : i32
    %608 = tpu.dynamic_rotate %607 by %c2_i32_177 dim 1 : vector<8x128xf32>, i32 -> vector<8x128xf32>
    %cst_178 = arith.constant 0.000000e+00 : f32
    %609 = vector.broadcast %cst_178 : f32 to vector<8x128xf32>
    %610 = arith.select %11, %608, %609 : vector<8x128xi1>, vector<8x128xf32>
    %c154 = arith.constant 154 : index
    %611 = memref.load %arg4[%c154] : memref<200xf32, #tpu.memory_space<smem>>
    %612 = vector.broadcast %611 : f32 to vector<8x128xf32>
    %613 = arith.mulf %612, %610 : vector<8x128xf32>
    %614 = arith.addf %604, %613 : vector<8x128xf32>
    %c162 = arith.constant 162 : index
    %615 = memref.load %arg4[%c162] : memref<200xf32, #tpu.memory_space<smem>>
    %616 = vector.broadcast %615 : f32 to vector<8x128xf32>
    %617 = arith.mulf %616, %607 : vector<8x128xf32>
    %618 = arith.addf %614, %617 : vector<8x128xf32>
    %c126_i32_179 = arith.constant 126 : i32
    %619 = tpu.dynamic_rotate %607 by %c126_i32_179 dim 1 : vector<8x128xf32>, i32 -> vector<8x128xf32>
    %cst_180 = arith.constant 0.000000e+00 : f32
    %620 = vector.broadcast %cst_180 : f32 to vector<8x128xf32>
    %621 = arith.select %13, %619, %620 : vector<8x128xi1>, vector<8x128xf32>
    %c170 = arith.constant 170 : index
    %622 = memref.load %arg4[%c170] : memref<200xf32, #tpu.memory_space<smem>>
    %623 = vector.broadcast %622 : f32 to vector<8x128xf32>
    %624 = arith.mulf %623, %621 : vector<8x128xf32>
    %625 = arith.addf %618, %624 : vector<8x128xf32>
    %c5_i32_181 = arith.constant 5 : i32
    %626 = tpu.dynamic_rotate %475 by %c5_i32_181 dim 0 : vector<8x128xf32>, i32 -> vector<8x128xf32>
    %cst_182 = arith.constant 0.000000e+00 : f32
    %627 = vector.broadcast %cst_182 : f32 to vector<8x128xf32>
    %628 = arith.select %25, %626, %627 : vector<8x128xi1>, vector<8x128xf32>
    %c3_i32_183 = arith.constant 3 : i32
    %629 = tpu.dynamic_rotate %628 by %c3_i32_183 dim 1 : vector<8x128xf32>, i32 -> vector<8x128xf32>
    %cst_184 = arith.constant 0.000000e+00 : f32
    %630 = vector.broadcast %cst_184 : f32 to vector<8x128xf32>
    %631 = arith.select %5, %629, %630 : vector<8x128xi1>, vector<8x128xf32>
    %c178 = arith.constant 178 : index
    %632 = memref.load %arg4[%c178] : memref<200xf32, #tpu.memory_space<smem>>
    %633 = vector.broadcast %632 : f32 to vector<8x128xf32>
    %634 = arith.mulf %633, %631 : vector<8x128xf32>
    %635 = arith.addf %625, %634 : vector<8x128xf32>
    %c186 = arith.constant 186 : index
    %636 = memref.load %arg4[%c186] : memref<200xf32, #tpu.memory_space<smem>>
    %637 = vector.broadcast %636 : f32 to vector<8x128xf32>
    %638 = arith.mulf %637, %628 : vector<8x128xf32>
    %639 = arith.addf %635, %638 : vector<8x128xf32>
    %c125_i32_185 = arith.constant 125 : i32
    %640 = tpu.dynamic_rotate %628 by %c125_i32_185 dim 1 : vector<8x128xf32>, i32 -> vector<8x128xf32>
    %cst_186 = arith.constant 0.000000e+00 : f32
    %641 = vector.broadcast %cst_186 : f32 to vector<8x128xf32>
    %642 = arith.select %7, %640, %641 : vector<8x128xi1>, vector<8x128xf32>
    %c194 = arith.constant 194 : index
    %643 = memref.load %arg4[%c194] : memref<200xf32, #tpu.memory_space<smem>>
    %644 = vector.broadcast %643 : f32 to vector<8x128xf32>
    %645 = arith.mulf %644, %642 : vector<8x128xf32>
    %646 = arith.addf %639, %645 : vector<8x128xf32>
    %c2_187 = arith.constant 2 : index
    %647 = memref.load %arg5[%c2_187] : memref<8xf32, #tpu.memory_space<smem>>
    %648 = vector.broadcast %647 : f32 to vector<8x128xf32>
    %649 = arith.addf %646, %648 : vector<8x128xf32>
    %cst_188 = arith.constant 0.000000e+00 : f32
    %650 = vector.broadcast %cst_188 : f32 to vector<8x128xf32>
    %651 = arith.maximumf %649, %650 : vector<8x128xf32>
    %c8_189 = arith.constant 8 : index
    %652 = memref.load %arg6[%c8_189] : memref<32xf32, #tpu.memory_space<smem>>
    %653 = vector.broadcast %652 : f32 to vector<8x128xf32>
    %654 = arith.mulf %653, %651 : vector<8x128xf32>
    %655 = arith.addf %445, %654 : vector<8x128xf32>
    %c9_190 = arith.constant 9 : index
    %656 = memref.load %arg6[%c9_190] : memref<32xf32, #tpu.memory_space<smem>>
    %657 = vector.broadcast %656 : f32 to vector<8x128xf32>
    %658 = arith.mulf %657, %651 : vector<8x128xf32>
    %659 = arith.addf %449, %658 : vector<8x128xf32>
    %c10_191 = arith.constant 10 : index
    %660 = memref.load %arg6[%c10_191] : memref<32xf32, #tpu.memory_space<smem>>
    %661 = vector.broadcast %660 : f32 to vector<8x128xf32>
    %662 = arith.mulf %661, %651 : vector<8x128xf32>
    %663 = arith.addf %453, %662 : vector<8x128xf32>
    %c11_192 = arith.constant 11 : index
    %664 = memref.load %arg6[%c11_192] : memref<32xf32, #tpu.memory_space<smem>>
    %665 = vector.broadcast %664 : f32 to vector<8x128xf32>
    %666 = arith.mulf %665, %651 : vector<8x128xf32>
    %667 = arith.addf %457, %666 : vector<8x128xf32>
    %c12 = arith.constant 12 : index
    %668 = memref.load %arg2[%c12] : memref<32xf32, #tpu.memory_space<smem>>
    %669 = vector.broadcast %668 : f32 to vector<8x128xf32>
    %670 = arith.mulf %669, %27 : vector<8x128xf32>
    %c13 = arith.constant 13 : index
    %671 = memref.load %arg2[%c13] : memref<32xf32, #tpu.memory_space<smem>>
    %672 = vector.broadcast %671 : f32 to vector<8x128xf32>
    %673 = arith.mulf %672, %29 : vector<8x128xf32>
    %674 = arith.addf %670, %673 : vector<8x128xf32>
    %c14 = arith.constant 14 : index
    %675 = memref.load %arg2[%c14] : memref<32xf32, #tpu.memory_space<smem>>
    %676 = vector.broadcast %675 : f32 to vector<8x128xf32>
    %677 = arith.mulf %676, %31 : vector<8x128xf32>
    %678 = arith.addf %674, %677 : vector<8x128xf32>
    %c15 = arith.constant 15 : index
    %679 = memref.load %arg2[%c15] : memref<32xf32, #tpu.memory_space<smem>>
    %680 = vector.broadcast %679 : f32 to vector<8x128xf32>
    %681 = arith.mulf %680, %33 : vector<8x128xf32>
    %682 = arith.addf %678, %681 : vector<8x128xf32>
    %c3_193 = arith.constant 3 : index
    %683 = memref.load %arg3[%c3_193] : memref<8xf32, #tpu.memory_space<smem>>
    %684 = vector.broadcast %683 : f32 to vector<8x128xf32>
    %685 = arith.addf %682, %684 : vector<8x128xf32>
    %c3_i32_194 = arith.constant 3 : i32
    %686 = tpu.dynamic_rotate %685 by %c3_i32_194 dim 0 : vector<8x128xf32>, i32 -> vector<8x128xf32>
    %cst_195 = arith.constant 0.000000e+00 : f32
    %687 = vector.broadcast %cst_195 : f32 to vector<8x128xf32>
    %688 = arith.select %3, %686, %687 : vector<8x128xi1>, vector<8x128xf32>
    %c3_i32_196 = arith.constant 3 : i32
    %689 = tpu.dynamic_rotate %688 by %c3_i32_196 dim 1 : vector<8x128xf32>, i32 -> vector<8x128xf32>
    %cst_197 = arith.constant 0.000000e+00 : f32
    %690 = vector.broadcast %cst_197 : f32 to vector<8x128xf32>
    %691 = arith.select %5, %689, %690 : vector<8x128xi1>, vector<8x128xf32>
    %c3_198 = arith.constant 3 : index
    %692 = memref.load %arg4[%c3_198] : memref<200xf32, #tpu.memory_space<smem>>
    %693 = vector.broadcast %692 : f32 to vector<8x128xf32>
    %694 = arith.mulf %693, %691 : vector<8x128xf32>
    %c11_199 = arith.constant 11 : index
    %695 = memref.load %arg4[%c11_199] : memref<200xf32, #tpu.memory_space<smem>>
    %696 = vector.broadcast %695 : f32 to vector<8x128xf32>
    %697 = arith.mulf %696, %688 : vector<8x128xf32>
    %698 = arith.addf %694, %697 : vector<8x128xf32>
    %c125_i32_200 = arith.constant 125 : i32
    %699 = tpu.dynamic_rotate %688 by %c125_i32_200 dim 1 : vector<8x128xf32>, i32 -> vector<8x128xf32>
    %cst_201 = arith.constant 0.000000e+00 : f32
    %700 = vector.broadcast %cst_201 : f32 to vector<8x128xf32>
    %701 = arith.select %7, %699, %700 : vector<8x128xi1>, vector<8x128xf32>
    %c19 = arith.constant 19 : index
    %702 = memref.load %arg4[%c19] : memref<200xf32, #tpu.memory_space<smem>>
    %703 = vector.broadcast %702 : f32 to vector<8x128xf32>
    %704 = arith.mulf %703, %701 : vector<8x128xf32>
    %705 = arith.addf %698, %704 : vector<8x128xf32>
    %c2_i32_202 = arith.constant 2 : i32
    %706 = tpu.dynamic_rotate %685 by %c2_i32_202 dim 0 : vector<8x128xf32>, i32 -> vector<8x128xf32>
    %cst_203 = arith.constant 0.000000e+00 : f32
    %707 = vector.broadcast %cst_203 : f32 to vector<8x128xf32>
    %708 = arith.select %9, %706, %707 : vector<8x128xi1>, vector<8x128xf32>
    %c2_i32_204 = arith.constant 2 : i32
    %709 = tpu.dynamic_rotate %708 by %c2_i32_204 dim 1 : vector<8x128xf32>, i32 -> vector<8x128xf32>
    %cst_205 = arith.constant 0.000000e+00 : f32
    %710 = vector.broadcast %cst_205 : f32 to vector<8x128xf32>
    %711 = arith.select %11, %709, %710 : vector<8x128xi1>, vector<8x128xf32>
    %c27 = arith.constant 27 : index
    %712 = memref.load %arg4[%c27] : memref<200xf32, #tpu.memory_space<smem>>
    %713 = vector.broadcast %712 : f32 to vector<8x128xf32>
    %714 = arith.mulf %713, %711 : vector<8x128xf32>
    %715 = arith.addf %705, %714 : vector<8x128xf32>
    %c35 = arith.constant 35 : index
    %716 = memref.load %arg4[%c35] : memref<200xf32, #tpu.memory_space<smem>>
    %717 = vector.broadcast %716 : f32 to vector<8x128xf32>
    %718 = arith.mulf %717, %708 : vector<8x128xf32>
    %719 = arith.addf %715, %718 : vector<8x128xf32>
    %c126_i32_206 = arith.constant 126 : i32
    %720 = tpu.dynamic_rotate %708 by %c126_i32_206 dim 1 : vector<8x128xf32>, i32 -> vector<8x128xf32>
    %cst_207 = arith.constant 0.000000e+00 : f32
    %721 = vector.broadcast %cst_207 : f32 to vector<8x128xf32>
    %722 = arith.select %13, %720, %721 : vector<8x128xi1>, vector<8x128xf32>
    %c43 = arith.constant 43 : index
    %723 = memref.load %arg4[%c43] : memref<200xf32, #tpu.memory_space<smem>>
    %724 = vector.broadcast %723 : f32 to vector<8x128xf32>
    %725 = arith.mulf %724, %722 : vector<8x128xf32>
    %726 = arith.addf %719, %725 : vector<8x128xf32>
    %c1_i32_208 = arith.constant 1 : i32
    %727 = tpu.dynamic_rotate %685 by %c1_i32_208 dim 0 : vector<8x128xf32>, i32 -> vector<8x128xf32>
    %cst_209 = arith.constant 0.000000e+00 : f32
    %728 = vector.broadcast %cst_209 : f32 to vector<8x128xf32>
    %729 = arith.select %15, %727, %728 : vector<8x128xi1>, vector<8x128xf32>
    %c1_i32_210 = arith.constant 1 : i32
    %730 = tpu.dynamic_rotate %729 by %c1_i32_210 dim 1 : vector<8x128xf32>, i32 -> vector<8x128xf32>
    %cst_211 = arith.constant 0.000000e+00 : f32
    %731 = vector.broadcast %cst_211 : f32 to vector<8x128xf32>
    %732 = arith.select %17, %730, %731 : vector<8x128xi1>, vector<8x128xf32>
    %c51 = arith.constant 51 : index
    %733 = memref.load %arg4[%c51] : memref<200xf32, #tpu.memory_space<smem>>
    %734 = vector.broadcast %733 : f32 to vector<8x128xf32>
    %735 = arith.mulf %734, %732 : vector<8x128xf32>
    %736 = arith.addf %726, %735 : vector<8x128xf32>
    %c59 = arith.constant 59 : index
    %737 = memref.load %arg4[%c59] : memref<200xf32, #tpu.memory_space<smem>>
    %738 = vector.broadcast %737 : f32 to vector<8x128xf32>
    %739 = arith.mulf %738, %729 : vector<8x128xf32>
    %740 = arith.addf %736, %739 : vector<8x128xf32>
    %c127_i32_212 = arith.constant 127 : i32
    %741 = tpu.dynamic_rotate %729 by %c127_i32_212 dim 1 : vector<8x128xf32>, i32 -> vector<8x128xf32>
    %cst_213 = arith.constant 0.000000e+00 : f32
    %742 = vector.broadcast %cst_213 : f32 to vector<8x128xf32>
    %743 = arith.select %19, %741, %742 : vector<8x128xi1>, vector<8x128xf32>
    %c67 = arith.constant 67 : index
    %744 = memref.load %arg4[%c67] : memref<200xf32, #tpu.memory_space<smem>>
    %745 = vector.broadcast %744 : f32 to vector<8x128xf32>
    %746 = arith.mulf %745, %743 : vector<8x128xf32>
    %747 = arith.addf %740, %746 : vector<8x128xf32>
    %c3_i32_214 = arith.constant 3 : i32
    %748 = tpu.dynamic_rotate %685 by %c3_i32_214 dim 1 : vector<8x128xf32>, i32 -> vector<8x128xf32>
    %cst_215 = arith.constant 0.000000e+00 : f32
    %749 = vector.broadcast %cst_215 : f32 to vector<8x128xf32>
    %750 = arith.select %5, %748, %749 : vector<8x128xi1>, vector<8x128xf32>
    %c75 = arith.constant 75 : index
    %751 = memref.load %arg4[%c75] : memref<200xf32, #tpu.memory_space<smem>>
    %752 = vector.broadcast %751 : f32 to vector<8x128xf32>
    %753 = arith.mulf %752, %750 : vector<8x128xf32>
    %754 = arith.addf %747, %753 : vector<8x128xf32>
    %c2_i32_216 = arith.constant 2 : i32
    %755 = tpu.dynamic_rotate %685 by %c2_i32_216 dim 1 : vector<8x128xf32>, i32 -> vector<8x128xf32>
    %cst_217 = arith.constant 0.000000e+00 : f32
    %756 = vector.broadcast %cst_217 : f32 to vector<8x128xf32>
    %757 = arith.select %11, %755, %756 : vector<8x128xi1>, vector<8x128xf32>
    %c83 = arith.constant 83 : index
    %758 = memref.load %arg4[%c83] : memref<200xf32, #tpu.memory_space<smem>>
    %759 = vector.broadcast %758 : f32 to vector<8x128xf32>
    %760 = arith.mulf %759, %757 : vector<8x128xf32>
    %761 = arith.addf %754, %760 : vector<8x128xf32>
    %c1_i32_218 = arith.constant 1 : i32
    %762 = tpu.dynamic_rotate %685 by %c1_i32_218 dim 1 : vector<8x128xf32>, i32 -> vector<8x128xf32>
    %cst_219 = arith.constant 0.000000e+00 : f32
    %763 = vector.broadcast %cst_219 : f32 to vector<8x128xf32>
    %764 = arith.select %17, %762, %763 : vector<8x128xi1>, vector<8x128xf32>
    %c91 = arith.constant 91 : index
    %765 = memref.load %arg4[%c91] : memref<200xf32, #tpu.memory_space<smem>>
    %766 = vector.broadcast %765 : f32 to vector<8x128xf32>
    %767 = arith.mulf %766, %764 : vector<8x128xf32>
    %768 = arith.addf %761, %767 : vector<8x128xf32>
    %c99 = arith.constant 99 : index
    %769 = memref.load %arg4[%c99] : memref<200xf32, #tpu.memory_space<smem>>
    %770 = vector.broadcast %769 : f32 to vector<8x128xf32>
    %771 = arith.mulf %770, %685 : vector<8x128xf32>
    %772 = arith.addf %768, %771 : vector<8x128xf32>
    %c127_i32_220 = arith.constant 127 : i32
    %773 = tpu.dynamic_rotate %685 by %c127_i32_220 dim 1 : vector<8x128xf32>, i32 -> vector<8x128xf32>
    %cst_221 = arith.constant 0.000000e+00 : f32
    %774 = vector.broadcast %cst_221 : f32 to vector<8x128xf32>
    %775 = arith.select %19, %773, %774 : vector<8x128xi1>, vector<8x128xf32>
    %c107 = arith.constant 107 : index
    %776 = memref.load %arg4[%c107] : memref<200xf32, #tpu.memory_space<smem>>
    %777 = vector.broadcast %776 : f32 to vector<8x128xf32>
    %778 = arith.mulf %777, %775 : vector<8x128xf32>
    %779 = arith.addf %772, %778 : vector<8x128xf32>
    %c126_i32_222 = arith.constant 126 : i32
    %780 = tpu.dynamic_rotate %685 by %c126_i32_222 dim 1 : vector<8x128xf32>, i32 -> vector<8x128xf32>
    %cst_223 = arith.constant 0.000000e+00 : f32
    %781 = vector.broadcast %cst_223 : f32 to vector<8x128xf32>
    %782 = arith.select %13, %780, %781 : vector<8x128xi1>, vector<8x128xf32>
    %c115 = arith.constant 115 : index
    %783 = memref.load %arg4[%c115] : memref<200xf32, #tpu.memory_space<smem>>
    %784 = vector.broadcast %783 : f32 to vector<8x128xf32>
    %785 = arith.mulf %784, %782 : vector<8x128xf32>
    %786 = arith.addf %779, %785 : vector<8x128xf32>
    %c125_i32_224 = arith.constant 125 : i32
    %787 = tpu.dynamic_rotate %685 by %c125_i32_224 dim 1 : vector<8x128xf32>, i32 -> vector<8x128xf32>
    %cst_225 = arith.constant 0.000000e+00 : f32
    %788 = vector.broadcast %cst_225 : f32 to vector<8x128xf32>
    %789 = arith.select %7, %787, %788 : vector<8x128xi1>, vector<8x128xf32>
    %c123 = arith.constant 123 : index
    %790 = memref.load %arg4[%c123] : memref<200xf32, #tpu.memory_space<smem>>
    %791 = vector.broadcast %790 : f32 to vector<8x128xf32>
    %792 = arith.mulf %791, %789 : vector<8x128xf32>
    %793 = arith.addf %786, %792 : vector<8x128xf32>
    %c7_i32_226 = arith.constant 7 : i32
    %794 = tpu.dynamic_rotate %685 by %c7_i32_226 dim 0 : vector<8x128xf32>, i32 -> vector<8x128xf32>
    %cst_227 = arith.constant 0.000000e+00 : f32
    %795 = vector.broadcast %cst_227 : f32 to vector<8x128xf32>
    %796 = arith.select %21, %794, %795 : vector<8x128xi1>, vector<8x128xf32>
    %c1_i32_228 = arith.constant 1 : i32
    %797 = tpu.dynamic_rotate %796 by %c1_i32_228 dim 1 : vector<8x128xf32>, i32 -> vector<8x128xf32>
    %cst_229 = arith.constant 0.000000e+00 : f32
    %798 = vector.broadcast %cst_229 : f32 to vector<8x128xf32>
    %799 = arith.select %17, %797, %798 : vector<8x128xi1>, vector<8x128xf32>
    %c131 = arith.constant 131 : index
    %800 = memref.load %arg4[%c131] : memref<200xf32, #tpu.memory_space<smem>>
    %801 = vector.broadcast %800 : f32 to vector<8x128xf32>
    %802 = arith.mulf %801, %799 : vector<8x128xf32>
    %803 = arith.addf %793, %802 : vector<8x128xf32>
    %c139 = arith.constant 139 : index
    %804 = memref.load %arg4[%c139] : memref<200xf32, #tpu.memory_space<smem>>
    %805 = vector.broadcast %804 : f32 to vector<8x128xf32>
    %806 = arith.mulf %805, %796 : vector<8x128xf32>
    %807 = arith.addf %803, %806 : vector<8x128xf32>
    %c127_i32_230 = arith.constant 127 : i32
    %808 = tpu.dynamic_rotate %796 by %c127_i32_230 dim 1 : vector<8x128xf32>, i32 -> vector<8x128xf32>
    %cst_231 = arith.constant 0.000000e+00 : f32
    %809 = vector.broadcast %cst_231 : f32 to vector<8x128xf32>
    %810 = arith.select %19, %808, %809 : vector<8x128xi1>, vector<8x128xf32>
    %c147 = arith.constant 147 : index
    %811 = memref.load %arg4[%c147] : memref<200xf32, #tpu.memory_space<smem>>
    %812 = vector.broadcast %811 : f32 to vector<8x128xf32>
    %813 = arith.mulf %812, %810 : vector<8x128xf32>
    %814 = arith.addf %807, %813 : vector<8x128xf32>
    %c6_i32_232 = arith.constant 6 : i32
    %815 = tpu.dynamic_rotate %685 by %c6_i32_232 dim 0 : vector<8x128xf32>, i32 -> vector<8x128xf32>
    %cst_233 = arith.constant 0.000000e+00 : f32
    %816 = vector.broadcast %cst_233 : f32 to vector<8x128xf32>
    %817 = arith.select %23, %815, %816 : vector<8x128xi1>, vector<8x128xf32>
    %c2_i32_234 = arith.constant 2 : i32
    %818 = tpu.dynamic_rotate %817 by %c2_i32_234 dim 1 : vector<8x128xf32>, i32 -> vector<8x128xf32>
    %cst_235 = arith.constant 0.000000e+00 : f32
    %819 = vector.broadcast %cst_235 : f32 to vector<8x128xf32>
    %820 = arith.select %11, %818, %819 : vector<8x128xi1>, vector<8x128xf32>
    %c155 = arith.constant 155 : index
    %821 = memref.load %arg4[%c155] : memref<200xf32, #tpu.memory_space<smem>>
    %822 = vector.broadcast %821 : f32 to vector<8x128xf32>
    %823 = arith.mulf %822, %820 : vector<8x128xf32>
    %824 = arith.addf %814, %823 : vector<8x128xf32>
    %c163 = arith.constant 163 : index
    %825 = memref.load %arg4[%c163] : memref<200xf32, #tpu.memory_space<smem>>
    %826 = vector.broadcast %825 : f32 to vector<8x128xf32>
    %827 = arith.mulf %826, %817 : vector<8x128xf32>
    %828 = arith.addf %824, %827 : vector<8x128xf32>
    %c126_i32_236 = arith.constant 126 : i32
    %829 = tpu.dynamic_rotate %817 by %c126_i32_236 dim 1 : vector<8x128xf32>, i32 -> vector<8x128xf32>
    %cst_237 = arith.constant 0.000000e+00 : f32
    %830 = vector.broadcast %cst_237 : f32 to vector<8x128xf32>
    %831 = arith.select %13, %829, %830 : vector<8x128xi1>, vector<8x128xf32>
    %c171 = arith.constant 171 : index
    %832 = memref.load %arg4[%c171] : memref<200xf32, #tpu.memory_space<smem>>
    %833 = vector.broadcast %832 : f32 to vector<8x128xf32>
    %834 = arith.mulf %833, %831 : vector<8x128xf32>
    %835 = arith.addf %828, %834 : vector<8x128xf32>
    %c5_i32_238 = arith.constant 5 : i32
    %836 = tpu.dynamic_rotate %685 by %c5_i32_238 dim 0 : vector<8x128xf32>, i32 -> vector<8x128xf32>
    %cst_239 = arith.constant 0.000000e+00 : f32
    %837 = vector.broadcast %cst_239 : f32 to vector<8x128xf32>
    %838 = arith.select %25, %836, %837 : vector<8x128xi1>, vector<8x128xf32>
    %c3_i32_240 = arith.constant 3 : i32
    %839 = tpu.dynamic_rotate %838 by %c3_i32_240 dim 1 : vector<8x128xf32>, i32 -> vector<8x128xf32>
    %cst_241 = arith.constant 0.000000e+00 : f32
    %840 = vector.broadcast %cst_241 : f32 to vector<8x128xf32>
    %841 = arith.select %5, %839, %840 : vector<8x128xi1>, vector<8x128xf32>
    %c179 = arith.constant 179 : index
    %842 = memref.load %arg4[%c179] : memref<200xf32, #tpu.memory_space<smem>>
    %843 = vector.broadcast %842 : f32 to vector<8x128xf32>
    %844 = arith.mulf %843, %841 : vector<8x128xf32>
    %845 = arith.addf %835, %844 : vector<8x128xf32>
    %c187 = arith.constant 187 : index
    %846 = memref.load %arg4[%c187] : memref<200xf32, #tpu.memory_space<smem>>
    %847 = vector.broadcast %846 : f32 to vector<8x128xf32>
    %848 = arith.mulf %847, %838 : vector<8x128xf32>
    %849 = arith.addf %845, %848 : vector<8x128xf32>
    %c125_i32_242 = arith.constant 125 : i32
    %850 = tpu.dynamic_rotate %838 by %c125_i32_242 dim 1 : vector<8x128xf32>, i32 -> vector<8x128xf32>
    %cst_243 = arith.constant 0.000000e+00 : f32
    %851 = vector.broadcast %cst_243 : f32 to vector<8x128xf32>
    %852 = arith.select %7, %850, %851 : vector<8x128xi1>, vector<8x128xf32>
    %c195 = arith.constant 195 : index
    %853 = memref.load %arg4[%c195] : memref<200xf32, #tpu.memory_space<smem>>
    %854 = vector.broadcast %853 : f32 to vector<8x128xf32>
    %855 = arith.mulf %854, %852 : vector<8x128xf32>
    %856 = arith.addf %849, %855 : vector<8x128xf32>
    %c3_244 = arith.constant 3 : index
    %857 = memref.load %arg5[%c3_244] : memref<8xf32, #tpu.memory_space<smem>>
    %858 = vector.broadcast %857 : f32 to vector<8x128xf32>
    %859 = arith.addf %856, %858 : vector<8x128xf32>
    %cst_245 = arith.constant 0.000000e+00 : f32
    %860 = vector.broadcast %cst_245 : f32 to vector<8x128xf32>
    %861 = arith.maximumf %859, %860 : vector<8x128xf32>
    %c12_246 = arith.constant 12 : index
    %862 = memref.load %arg6[%c12_246] : memref<32xf32, #tpu.memory_space<smem>>
    %863 = vector.broadcast %862 : f32 to vector<8x128xf32>
    %864 = arith.mulf %863, %861 : vector<8x128xf32>
    %865 = arith.addf %655, %864 : vector<8x128xf32>
    %c13_247 = arith.constant 13 : index
    %866 = memref.load %arg6[%c13_247] : memref<32xf32, #tpu.memory_space<smem>>
    %867 = vector.broadcast %866 : f32 to vector<8x128xf32>
    %868 = arith.mulf %867, %861 : vector<8x128xf32>
    %869 = arith.addf %659, %868 : vector<8x128xf32>
    %c14_248 = arith.constant 14 : index
    %870 = memref.load %arg6[%c14_248] : memref<32xf32, #tpu.memory_space<smem>>
    %871 = vector.broadcast %870 : f32 to vector<8x128xf32>
    %872 = arith.mulf %871, %861 : vector<8x128xf32>
    %873 = arith.addf %663, %872 : vector<8x128xf32>
    %c15_249 = arith.constant 15 : index
    %874 = memref.load %arg6[%c15_249] : memref<32xf32, #tpu.memory_space<smem>>
    %875 = vector.broadcast %874 : f32 to vector<8x128xf32>
    %876 = arith.mulf %875, %861 : vector<8x128xf32>
    %877 = arith.addf %667, %876 : vector<8x128xf32>
    %c16_250 = arith.constant 16 : index
    %878 = memref.load %arg2[%c16_250] : memref<32xf32, #tpu.memory_space<smem>>
    %879 = vector.broadcast %878 : f32 to vector<8x128xf32>
    %880 = arith.mulf %879, %27 : vector<8x128xf32>
    %c17_251 = arith.constant 17 : index
    %881 = memref.load %arg2[%c17_251] : memref<32xf32, #tpu.memory_space<smem>>
    %882 = vector.broadcast %881 : f32 to vector<8x128xf32>
    %883 = arith.mulf %882, %29 : vector<8x128xf32>
    %884 = arith.addf %880, %883 : vector<8x128xf32>
    %c18_252 = arith.constant 18 : index
    %885 = memref.load %arg2[%c18_252] : memref<32xf32, #tpu.memory_space<smem>>
    %886 = vector.broadcast %885 : f32 to vector<8x128xf32>
    %887 = arith.mulf %886, %31 : vector<8x128xf32>
    %888 = arith.addf %884, %887 : vector<8x128xf32>
    %c19_253 = arith.constant 19 : index
    %889 = memref.load %arg2[%c19_253] : memref<32xf32, #tpu.memory_space<smem>>
    %890 = vector.broadcast %889 : f32 to vector<8x128xf32>
    %891 = arith.mulf %890, %33 : vector<8x128xf32>
    %892 = arith.addf %888, %891 : vector<8x128xf32>
    %c4_254 = arith.constant 4 : index
    %893 = memref.load %arg3[%c4_254] : memref<8xf32, #tpu.memory_space<smem>>
    %894 = vector.broadcast %893 : f32 to vector<8x128xf32>
    %895 = arith.addf %892, %894 : vector<8x128xf32>
    %c3_i32_255 = arith.constant 3 : i32
    %896 = tpu.dynamic_rotate %895 by %c3_i32_255 dim 0 : vector<8x128xf32>, i32 -> vector<8x128xf32>
    %cst_256 = arith.constant 0.000000e+00 : f32
    %897 = vector.broadcast %cst_256 : f32 to vector<8x128xf32>
    %898 = arith.select %3, %896, %897 : vector<8x128xi1>, vector<8x128xf32>
    %c3_i32_257 = arith.constant 3 : i32
    %899 = tpu.dynamic_rotate %898 by %c3_i32_257 dim 1 : vector<8x128xf32>, i32 -> vector<8x128xf32>
    %cst_258 = arith.constant 0.000000e+00 : f32
    %900 = vector.broadcast %cst_258 : f32 to vector<8x128xf32>
    %901 = arith.select %5, %899, %900 : vector<8x128xi1>, vector<8x128xf32>
    %c4_259 = arith.constant 4 : index
    %902 = memref.load %arg4[%c4_259] : memref<200xf32, #tpu.memory_space<smem>>
    %903 = vector.broadcast %902 : f32 to vector<8x128xf32>
    %904 = arith.mulf %903, %901 : vector<8x128xf32>
    %c12_260 = arith.constant 12 : index
    %905 = memref.load %arg4[%c12_260] : memref<200xf32, #tpu.memory_space<smem>>
    %906 = vector.broadcast %905 : f32 to vector<8x128xf32>
    %907 = arith.mulf %906, %898 : vector<8x128xf32>
    %908 = arith.addf %904, %907 : vector<8x128xf32>
    %c125_i32_261 = arith.constant 125 : i32
    %909 = tpu.dynamic_rotate %898 by %c125_i32_261 dim 1 : vector<8x128xf32>, i32 -> vector<8x128xf32>
    %cst_262 = arith.constant 0.000000e+00 : f32
    %910 = vector.broadcast %cst_262 : f32 to vector<8x128xf32>
    %911 = arith.select %7, %909, %910 : vector<8x128xi1>, vector<8x128xf32>
    %c20 = arith.constant 20 : index
    %912 = memref.load %arg4[%c20] : memref<200xf32, #tpu.memory_space<smem>>
    %913 = vector.broadcast %912 : f32 to vector<8x128xf32>
    %914 = arith.mulf %913, %911 : vector<8x128xf32>
    %915 = arith.addf %908, %914 : vector<8x128xf32>
    %c2_i32_263 = arith.constant 2 : i32
    %916 = tpu.dynamic_rotate %895 by %c2_i32_263 dim 0 : vector<8x128xf32>, i32 -> vector<8x128xf32>
    %cst_264 = arith.constant 0.000000e+00 : f32
    %917 = vector.broadcast %cst_264 : f32 to vector<8x128xf32>
    %918 = arith.select %9, %916, %917 : vector<8x128xi1>, vector<8x128xf32>
    %c2_i32_265 = arith.constant 2 : i32
    %919 = tpu.dynamic_rotate %918 by %c2_i32_265 dim 1 : vector<8x128xf32>, i32 -> vector<8x128xf32>
    %cst_266 = arith.constant 0.000000e+00 : f32
    %920 = vector.broadcast %cst_266 : f32 to vector<8x128xf32>
    %921 = arith.select %11, %919, %920 : vector<8x128xi1>, vector<8x128xf32>
    %c28 = arith.constant 28 : index
    %922 = memref.load %arg4[%c28] : memref<200xf32, #tpu.memory_space<smem>>
    %923 = vector.broadcast %922 : f32 to vector<8x128xf32>
    %924 = arith.mulf %923, %921 : vector<8x128xf32>
    %925 = arith.addf %915, %924 : vector<8x128xf32>
    %c36 = arith.constant 36 : index
    %926 = memref.load %arg4[%c36] : memref<200xf32, #tpu.memory_space<smem>>
    %927 = vector.broadcast %926 : f32 to vector<8x128xf32>
    %928 = arith.mulf %927, %918 : vector<8x128xf32>
    %929 = arith.addf %925, %928 : vector<8x128xf32>
    %c126_i32_267 = arith.constant 126 : i32
    %930 = tpu.dynamic_rotate %918 by %c126_i32_267 dim 1 : vector<8x128xf32>, i32 -> vector<8x128xf32>
    %cst_268 = arith.constant 0.000000e+00 : f32
    %931 = vector.broadcast %cst_268 : f32 to vector<8x128xf32>
    %932 = arith.select %13, %930, %931 : vector<8x128xi1>, vector<8x128xf32>
    %c44 = arith.constant 44 : index
    %933 = memref.load %arg4[%c44] : memref<200xf32, #tpu.memory_space<smem>>
    %934 = vector.broadcast %933 : f32 to vector<8x128xf32>
    %935 = arith.mulf %934, %932 : vector<8x128xf32>
    %936 = arith.addf %929, %935 : vector<8x128xf32>
    %c1_i32_269 = arith.constant 1 : i32
    %937 = tpu.dynamic_rotate %895 by %c1_i32_269 dim 0 : vector<8x128xf32>, i32 -> vector<8x128xf32>
    %cst_270 = arith.constant 0.000000e+00 : f32
    %938 = vector.broadcast %cst_270 : f32 to vector<8x128xf32>
    %939 = arith.select %15, %937, %938 : vector<8x128xi1>, vector<8x128xf32>
    %c1_i32_271 = arith.constant 1 : i32
    %940 = tpu.dynamic_rotate %939 by %c1_i32_271 dim 1 : vector<8x128xf32>, i32 -> vector<8x128xf32>
    %cst_272 = arith.constant 0.000000e+00 : f32
    %941 = vector.broadcast %cst_272 : f32 to vector<8x128xf32>
    %942 = arith.select %17, %940, %941 : vector<8x128xi1>, vector<8x128xf32>
    %c52 = arith.constant 52 : index
    %943 = memref.load %arg4[%c52] : memref<200xf32, #tpu.memory_space<smem>>
    %944 = vector.broadcast %943 : f32 to vector<8x128xf32>
    %945 = arith.mulf %944, %942 : vector<8x128xf32>
    %946 = arith.addf %936, %945 : vector<8x128xf32>
    %c60 = arith.constant 60 : index
    %947 = memref.load %arg4[%c60] : memref<200xf32, #tpu.memory_space<smem>>
    %948 = vector.broadcast %947 : f32 to vector<8x128xf32>
    %949 = arith.mulf %948, %939 : vector<8x128xf32>
    %950 = arith.addf %946, %949 : vector<8x128xf32>
    %c127_i32_273 = arith.constant 127 : i32
    %951 = tpu.dynamic_rotate %939 by %c127_i32_273 dim 1 : vector<8x128xf32>, i32 -> vector<8x128xf32>
    %cst_274 = arith.constant 0.000000e+00 : f32
    %952 = vector.broadcast %cst_274 : f32 to vector<8x128xf32>
    %953 = arith.select %19, %951, %952 : vector<8x128xi1>, vector<8x128xf32>
    %c68 = arith.constant 68 : index
    %954 = memref.load %arg4[%c68] : memref<200xf32, #tpu.memory_space<smem>>
    %955 = vector.broadcast %954 : f32 to vector<8x128xf32>
    %956 = arith.mulf %955, %953 : vector<8x128xf32>
    %957 = arith.addf %950, %956 : vector<8x128xf32>
    %c3_i32_275 = arith.constant 3 : i32
    %958 = tpu.dynamic_rotate %895 by %c3_i32_275 dim 1 : vector<8x128xf32>, i32 -> vector<8x128xf32>
    %cst_276 = arith.constant 0.000000e+00 : f32
    %959 = vector.broadcast %cst_276 : f32 to vector<8x128xf32>
    %960 = arith.select %5, %958, %959 : vector<8x128xi1>, vector<8x128xf32>
    %c76 = arith.constant 76 : index
    %961 = memref.load %arg4[%c76] : memref<200xf32, #tpu.memory_space<smem>>
    %962 = vector.broadcast %961 : f32 to vector<8x128xf32>
    %963 = arith.mulf %962, %960 : vector<8x128xf32>
    %964 = arith.addf %957, %963 : vector<8x128xf32>
    %c2_i32_277 = arith.constant 2 : i32
    %965 = tpu.dynamic_rotate %895 by %c2_i32_277 dim 1 : vector<8x128xf32>, i32 -> vector<8x128xf32>
    %cst_278 = arith.constant 0.000000e+00 : f32
    %966 = vector.broadcast %cst_278 : f32 to vector<8x128xf32>
    %967 = arith.select %11, %965, %966 : vector<8x128xi1>, vector<8x128xf32>
    %c84 = arith.constant 84 : index
    %968 = memref.load %arg4[%c84] : memref<200xf32, #tpu.memory_space<smem>>
    %969 = vector.broadcast %968 : f32 to vector<8x128xf32>
    %970 = arith.mulf %969, %967 : vector<8x128xf32>
    %971 = arith.addf %964, %970 : vector<8x128xf32>
    %c1_i32_279 = arith.constant 1 : i32
    %972 = tpu.dynamic_rotate %895 by %c1_i32_279 dim 1 : vector<8x128xf32>, i32 -> vector<8x128xf32>
    %cst_280 = arith.constant 0.000000e+00 : f32
    %973 = vector.broadcast %cst_280 : f32 to vector<8x128xf32>
    %974 = arith.select %17, %972, %973 : vector<8x128xi1>, vector<8x128xf32>
    %c92 = arith.constant 92 : index
    %975 = memref.load %arg4[%c92] : memref<200xf32, #tpu.memory_space<smem>>
    %976 = vector.broadcast %975 : f32 to vector<8x128xf32>
    %977 = arith.mulf %976, %974 : vector<8x128xf32>
    %978 = arith.addf %971, %977 : vector<8x128xf32>
    %c100 = arith.constant 100 : index
    %979 = memref.load %arg4[%c100] : memref<200xf32, #tpu.memory_space<smem>>
    %980 = vector.broadcast %979 : f32 to vector<8x128xf32>
    %981 = arith.mulf %980, %895 : vector<8x128xf32>
    %982 = arith.addf %978, %981 : vector<8x128xf32>
    %c127_i32_281 = arith.constant 127 : i32
    %983 = tpu.dynamic_rotate %895 by %c127_i32_281 dim 1 : vector<8x128xf32>, i32 -> vector<8x128xf32>
    %cst_282 = arith.constant 0.000000e+00 : f32
    %984 = vector.broadcast %cst_282 : f32 to vector<8x128xf32>
    %985 = arith.select %19, %983, %984 : vector<8x128xi1>, vector<8x128xf32>
    %c108 = arith.constant 108 : index
    %986 = memref.load %arg4[%c108] : memref<200xf32, #tpu.memory_space<smem>>
    %987 = vector.broadcast %986 : f32 to vector<8x128xf32>
    %988 = arith.mulf %987, %985 : vector<8x128xf32>
    %989 = arith.addf %982, %988 : vector<8x128xf32>
    %c126_i32_283 = arith.constant 126 : i32
    %990 = tpu.dynamic_rotate %895 by %c126_i32_283 dim 1 : vector<8x128xf32>, i32 -> vector<8x128xf32>
    %cst_284 = arith.constant 0.000000e+00 : f32
    %991 = vector.broadcast %cst_284 : f32 to vector<8x128xf32>
    %992 = arith.select %13, %990, %991 : vector<8x128xi1>, vector<8x128xf32>
    %c116 = arith.constant 116 : index
    %993 = memref.load %arg4[%c116] : memref<200xf32, #tpu.memory_space<smem>>
    %994 = vector.broadcast %993 : f32 to vector<8x128xf32>
    %995 = arith.mulf %994, %992 : vector<8x128xf32>
    %996 = arith.addf %989, %995 : vector<8x128xf32>
    %c125_i32_285 = arith.constant 125 : i32
    %997 = tpu.dynamic_rotate %895 by %c125_i32_285 dim 1 : vector<8x128xf32>, i32 -> vector<8x128xf32>
    %cst_286 = arith.constant 0.000000e+00 : f32
    %998 = vector.broadcast %cst_286 : f32 to vector<8x128xf32>
    %999 = arith.select %7, %997, %998 : vector<8x128xi1>, vector<8x128xf32>
    %c124 = arith.constant 124 : index
    %1000 = memref.load %arg4[%c124] : memref<200xf32, #tpu.memory_space<smem>>
    %1001 = vector.broadcast %1000 : f32 to vector<8x128xf32>
    %1002 = arith.mulf %1001, %999 : vector<8x128xf32>
    %1003 = arith.addf %996, %1002 : vector<8x128xf32>
    %c7_i32_287 = arith.constant 7 : i32
    %1004 = tpu.dynamic_rotate %895 by %c7_i32_287 dim 0 : vector<8x128xf32>, i32 -> vector<8x128xf32>
    %cst_288 = arith.constant 0.000000e+00 : f32
    %1005 = vector.broadcast %cst_288 : f32 to vector<8x128xf32>
    %1006 = arith.select %21, %1004, %1005 : vector<8x128xi1>, vector<8x128xf32>
    %c1_i32_289 = arith.constant 1 : i32
    %1007 = tpu.dynamic_rotate %1006 by %c1_i32_289 dim 1 : vector<8x128xf32>, i32 -> vector<8x128xf32>
    %cst_290 = arith.constant 0.000000e+00 : f32
    %1008 = vector.broadcast %cst_290 : f32 to vector<8x128xf32>
    %1009 = arith.select %17, %1007, %1008 : vector<8x128xi1>, vector<8x128xf32>
    %c132 = arith.constant 132 : index
    %1010 = memref.load %arg4[%c132] : memref<200xf32, #tpu.memory_space<smem>>
    %1011 = vector.broadcast %1010 : f32 to vector<8x128xf32>
    %1012 = arith.mulf %1011, %1009 : vector<8x128xf32>
    %1013 = arith.addf %1003, %1012 : vector<8x128xf32>
    %c140 = arith.constant 140 : index
    %1014 = memref.load %arg4[%c140] : memref<200xf32, #tpu.memory_space<smem>>
    %1015 = vector.broadcast %1014 : f32 to vector<8x128xf32>
    %1016 = arith.mulf %1015, %1006 : vector<8x128xf32>
    %1017 = arith.addf %1013, %1016 : vector<8x128xf32>
    %c127_i32_291 = arith.constant 127 : i32
    %1018 = tpu.dynamic_rotate %1006 by %c127_i32_291 dim 1 : vector<8x128xf32>, i32 -> vector<8x128xf32>
    %cst_292 = arith.constant 0.000000e+00 : f32
    %1019 = vector.broadcast %cst_292 : f32 to vector<8x128xf32>
    %1020 = arith.select %19, %1018, %1019 : vector<8x128xi1>, vector<8x128xf32>
    %c148 = arith.constant 148 : index
    %1021 = memref.load %arg4[%c148] : memref<200xf32, #tpu.memory_space<smem>>
    %1022 = vector.broadcast %1021 : f32 to vector<8x128xf32>
    %1023 = arith.mulf %1022, %1020 : vector<8x128xf32>
    %1024 = arith.addf %1017, %1023 : vector<8x128xf32>
    %c6_i32_293 = arith.constant 6 : i32
    %1025 = tpu.dynamic_rotate %895 by %c6_i32_293 dim 0 : vector<8x128xf32>, i32 -> vector<8x128xf32>
    %cst_294 = arith.constant 0.000000e+00 : f32
    %1026 = vector.broadcast %cst_294 : f32 to vector<8x128xf32>
    %1027 = arith.select %23, %1025, %1026 : vector<8x128xi1>, vector<8x128xf32>
    %c2_i32_295 = arith.constant 2 : i32
    %1028 = tpu.dynamic_rotate %1027 by %c2_i32_295 dim 1 : vector<8x128xf32>, i32 -> vector<8x128xf32>
    %cst_296 = arith.constant 0.000000e+00 : f32
    %1029 = vector.broadcast %cst_296 : f32 to vector<8x128xf32>
    %1030 = arith.select %11, %1028, %1029 : vector<8x128xi1>, vector<8x128xf32>
    %c156 = arith.constant 156 : index
    %1031 = memref.load %arg4[%c156] : memref<200xf32, #tpu.memory_space<smem>>
    %1032 = vector.broadcast %1031 : f32 to vector<8x128xf32>
    %1033 = arith.mulf %1032, %1030 : vector<8x128xf32>
    %1034 = arith.addf %1024, %1033 : vector<8x128xf32>
    %c164 = arith.constant 164 : index
    %1035 = memref.load %arg4[%c164] : memref<200xf32, #tpu.memory_space<smem>>
    %1036 = vector.broadcast %1035 : f32 to vector<8x128xf32>
    %1037 = arith.mulf %1036, %1027 : vector<8x128xf32>
    %1038 = arith.addf %1034, %1037 : vector<8x128xf32>
    %c126_i32_297 = arith.constant 126 : i32
    %1039 = tpu.dynamic_rotate %1027 by %c126_i32_297 dim 1 : vector<8x128xf32>, i32 -> vector<8x128xf32>
    %cst_298 = arith.constant 0.000000e+00 : f32
    %1040 = vector.broadcast %cst_298 : f32 to vector<8x128xf32>
    %1041 = arith.select %13, %1039, %1040 : vector<8x128xi1>, vector<8x128xf32>
    %c172 = arith.constant 172 : index
    %1042 = memref.load %arg4[%c172] : memref<200xf32, #tpu.memory_space<smem>>
    %1043 = vector.broadcast %1042 : f32 to vector<8x128xf32>
    %1044 = arith.mulf %1043, %1041 : vector<8x128xf32>
    %1045 = arith.addf %1038, %1044 : vector<8x128xf32>
    %c5_i32_299 = arith.constant 5 : i32
    %1046 = tpu.dynamic_rotate %895 by %c5_i32_299 dim 0 : vector<8x128xf32>, i32 -> vector<8x128xf32>
    %cst_300 = arith.constant 0.000000e+00 : f32
    %1047 = vector.broadcast %cst_300 : f32 to vector<8x128xf32>
    %1048 = arith.select %25, %1046, %1047 : vector<8x128xi1>, vector<8x128xf32>
    %c3_i32_301 = arith.constant 3 : i32
    %1049 = tpu.dynamic_rotate %1048 by %c3_i32_301 dim 1 : vector<8x128xf32>, i32 -> vector<8x128xf32>
    %cst_302 = arith.constant 0.000000e+00 : f32
    %1050 = vector.broadcast %cst_302 : f32 to vector<8x128xf32>
    %1051 = arith.select %5, %1049, %1050 : vector<8x128xi1>, vector<8x128xf32>
    %c180 = arith.constant 180 : index
    %1052 = memref.load %arg4[%c180] : memref<200xf32, #tpu.memory_space<smem>>
    %1053 = vector.broadcast %1052 : f32 to vector<8x128xf32>
    %1054 = arith.mulf %1053, %1051 : vector<8x128xf32>
    %1055 = arith.addf %1045, %1054 : vector<8x128xf32>
    %c188 = arith.constant 188 : index
    %1056 = memref.load %arg4[%c188] : memref<200xf32, #tpu.memory_space<smem>>
    %1057 = vector.broadcast %1056 : f32 to vector<8x128xf32>
    %1058 = arith.mulf %1057, %1048 : vector<8x128xf32>
    %1059 = arith.addf %1055, %1058 : vector<8x128xf32>
    %c125_i32_303 = arith.constant 125 : i32
    %1060 = tpu.dynamic_rotate %1048 by %c125_i32_303 dim 1 : vector<8x128xf32>, i32 -> vector<8x128xf32>
    %cst_304 = arith.constant 0.000000e+00 : f32
    %1061 = vector.broadcast %cst_304 : f32 to vector<8x128xf32>
    %1062 = arith.select %7, %1060, %1061 : vector<8x128xi1>, vector<8x128xf32>
    %c196 = arith.constant 196 : index
    %1063 = memref.load %arg4[%c196] : memref<200xf32, #tpu.memory_space<smem>>
    %1064 = vector.broadcast %1063 : f32 to vector<8x128xf32>
    %1065 = arith.mulf %1064, %1062 : vector<8x128xf32>
    %1066 = arith.addf %1059, %1065 : vector<8x128xf32>
    %c4_305 = arith.constant 4 : index
    %1067 = memref.load %arg5[%c4_305] : memref<8xf32, #tpu.memory_space<smem>>
    %1068 = vector.broadcast %1067 : f32 to vector<8x128xf32>
    %1069 = arith.addf %1066, %1068 : vector<8x128xf32>
    %cst_306 = arith.constant 0.000000e+00 : f32
    %1070 = vector.broadcast %cst_306 : f32 to vector<8x128xf32>
    %1071 = arith.maximumf %1069, %1070 : vector<8x128xf32>
    %c16_307 = arith.constant 16 : index
    %1072 = memref.load %arg6[%c16_307] : memref<32xf32, #tpu.memory_space<smem>>
    %1073 = vector.broadcast %1072 : f32 to vector<8x128xf32>
    %1074 = arith.mulf %1073, %1071 : vector<8x128xf32>
    %1075 = arith.addf %865, %1074 : vector<8x128xf32>
    %c17_308 = arith.constant 17 : index
    %1076 = memref.load %arg6[%c17_308] : memref<32xf32, #tpu.memory_space<smem>>
    %1077 = vector.broadcast %1076 : f32 to vector<8x128xf32>
    %1078 = arith.mulf %1077, %1071 : vector<8x128xf32>
    %1079 = arith.addf %869, %1078 : vector<8x128xf32>
    %c18_309 = arith.constant 18 : index
    %1080 = memref.load %arg6[%c18_309] : memref<32xf32, #tpu.memory_space<smem>>
    %1081 = vector.broadcast %1080 : f32 to vector<8x128xf32>
    %1082 = arith.mulf %1081, %1071 : vector<8x128xf32>
    %1083 = arith.addf %873, %1082 : vector<8x128xf32>
    %c19_310 = arith.constant 19 : index
    %1084 = memref.load %arg6[%c19_310] : memref<32xf32, #tpu.memory_space<smem>>
    %1085 = vector.broadcast %1084 : f32 to vector<8x128xf32>
    %1086 = arith.mulf %1085, %1071 : vector<8x128xf32>
    %1087 = arith.addf %877, %1086 : vector<8x128xf32>
    %c20_311 = arith.constant 20 : index
    %1088 = memref.load %arg2[%c20_311] : memref<32xf32, #tpu.memory_space<smem>>
    %1089 = vector.broadcast %1088 : f32 to vector<8x128xf32>
    %1090 = arith.mulf %1089, %27 : vector<8x128xf32>
    %c21 = arith.constant 21 : index
    %1091 = memref.load %arg2[%c21] : memref<32xf32, #tpu.memory_space<smem>>
    %1092 = vector.broadcast %1091 : f32 to vector<8x128xf32>
    %1093 = arith.mulf %1092, %29 : vector<8x128xf32>
    %1094 = arith.addf %1090, %1093 : vector<8x128xf32>
    %c22 = arith.constant 22 : index
    %1095 = memref.load %arg2[%c22] : memref<32xf32, #tpu.memory_space<smem>>
    %1096 = vector.broadcast %1095 : f32 to vector<8x128xf32>
    %1097 = arith.mulf %1096, %31 : vector<8x128xf32>
    %1098 = arith.addf %1094, %1097 : vector<8x128xf32>
    %c23 = arith.constant 23 : index
    %1099 = memref.load %arg2[%c23] : memref<32xf32, #tpu.memory_space<smem>>
    %1100 = vector.broadcast %1099 : f32 to vector<8x128xf32>
    %1101 = arith.mulf %1100, %33 : vector<8x128xf32>
    %1102 = arith.addf %1098, %1101 : vector<8x128xf32>
    %c5_312 = arith.constant 5 : index
    %1103 = memref.load %arg3[%c5_312] : memref<8xf32, #tpu.memory_space<smem>>
    %1104 = vector.broadcast %1103 : f32 to vector<8x128xf32>
    %1105 = arith.addf %1102, %1104 : vector<8x128xf32>
    %c3_i32_313 = arith.constant 3 : i32
    %1106 = tpu.dynamic_rotate %1105 by %c3_i32_313 dim 0 : vector<8x128xf32>, i32 -> vector<8x128xf32>
    %cst_314 = arith.constant 0.000000e+00 : f32
    %1107 = vector.broadcast %cst_314 : f32 to vector<8x128xf32>
    %1108 = arith.select %3, %1106, %1107 : vector<8x128xi1>, vector<8x128xf32>
    %c3_i32_315 = arith.constant 3 : i32
    %1109 = tpu.dynamic_rotate %1108 by %c3_i32_315 dim 1 : vector<8x128xf32>, i32 -> vector<8x128xf32>
    %cst_316 = arith.constant 0.000000e+00 : f32
    %1110 = vector.broadcast %cst_316 : f32 to vector<8x128xf32>
    %1111 = arith.select %5, %1109, %1110 : vector<8x128xi1>, vector<8x128xf32>
    %c5_317 = arith.constant 5 : index
    %1112 = memref.load %arg4[%c5_317] : memref<200xf32, #tpu.memory_space<smem>>
    %1113 = vector.broadcast %1112 : f32 to vector<8x128xf32>
    %1114 = arith.mulf %1113, %1111 : vector<8x128xf32>
    %c13_318 = arith.constant 13 : index
    %1115 = memref.load %arg4[%c13_318] : memref<200xf32, #tpu.memory_space<smem>>
    %1116 = vector.broadcast %1115 : f32 to vector<8x128xf32>
    %1117 = arith.mulf %1116, %1108 : vector<8x128xf32>
    %1118 = arith.addf %1114, %1117 : vector<8x128xf32>
    %c125_i32_319 = arith.constant 125 : i32
    %1119 = tpu.dynamic_rotate %1108 by %c125_i32_319 dim 1 : vector<8x128xf32>, i32 -> vector<8x128xf32>
    %cst_320 = arith.constant 0.000000e+00 : f32
    %1120 = vector.broadcast %cst_320 : f32 to vector<8x128xf32>
    %1121 = arith.select %7, %1119, %1120 : vector<8x128xi1>, vector<8x128xf32>
    %c21_321 = arith.constant 21 : index
    %1122 = memref.load %arg4[%c21_321] : memref<200xf32, #tpu.memory_space<smem>>
    %1123 = vector.broadcast %1122 : f32 to vector<8x128xf32>
    %1124 = arith.mulf %1123, %1121 : vector<8x128xf32>
    %1125 = arith.addf %1118, %1124 : vector<8x128xf32>
    %c2_i32_322 = arith.constant 2 : i32
    %1126 = tpu.dynamic_rotate %1105 by %c2_i32_322 dim 0 : vector<8x128xf32>, i32 -> vector<8x128xf32>
    %cst_323 = arith.constant 0.000000e+00 : f32
    %1127 = vector.broadcast %cst_323 : f32 to vector<8x128xf32>
    %1128 = arith.select %9, %1126, %1127 : vector<8x128xi1>, vector<8x128xf32>
    %c2_i32_324 = arith.constant 2 : i32
    %1129 = tpu.dynamic_rotate %1128 by %c2_i32_324 dim 1 : vector<8x128xf32>, i32 -> vector<8x128xf32>
    %cst_325 = arith.constant 0.000000e+00 : f32
    %1130 = vector.broadcast %cst_325 : f32 to vector<8x128xf32>
    %1131 = arith.select %11, %1129, %1130 : vector<8x128xi1>, vector<8x128xf32>
    %c29 = arith.constant 29 : index
    %1132 = memref.load %arg4[%c29] : memref<200xf32, #tpu.memory_space<smem>>
    %1133 = vector.broadcast %1132 : f32 to vector<8x128xf32>
    %1134 = arith.mulf %1133, %1131 : vector<8x128xf32>
    %1135 = arith.addf %1125, %1134 : vector<8x128xf32>
    %c37 = arith.constant 37 : index
    %1136 = memref.load %arg4[%c37] : memref<200xf32, #tpu.memory_space<smem>>
    %1137 = vector.broadcast %1136 : f32 to vector<8x128xf32>
    %1138 = arith.mulf %1137, %1128 : vector<8x128xf32>
    %1139 = arith.addf %1135, %1138 : vector<8x128xf32>
    %c126_i32_326 = arith.constant 126 : i32
    %1140 = tpu.dynamic_rotate %1128 by %c126_i32_326 dim 1 : vector<8x128xf32>, i32 -> vector<8x128xf32>
    %cst_327 = arith.constant 0.000000e+00 : f32
    %1141 = vector.broadcast %cst_327 : f32 to vector<8x128xf32>
    %1142 = arith.select %13, %1140, %1141 : vector<8x128xi1>, vector<8x128xf32>
    %c45 = arith.constant 45 : index
    %1143 = memref.load %arg4[%c45] : memref<200xf32, #tpu.memory_space<smem>>
    %1144 = vector.broadcast %1143 : f32 to vector<8x128xf32>
    %1145 = arith.mulf %1144, %1142 : vector<8x128xf32>
    %1146 = arith.addf %1139, %1145 : vector<8x128xf32>
    %c1_i32_328 = arith.constant 1 : i32
    %1147 = tpu.dynamic_rotate %1105 by %c1_i32_328 dim 0 : vector<8x128xf32>, i32 -> vector<8x128xf32>
    %cst_329 = arith.constant 0.000000e+00 : f32
    %1148 = vector.broadcast %cst_329 : f32 to vector<8x128xf32>
    %1149 = arith.select %15, %1147, %1148 : vector<8x128xi1>, vector<8x128xf32>
    %c1_i32_330 = arith.constant 1 : i32
    %1150 = tpu.dynamic_rotate %1149 by %c1_i32_330 dim 1 : vector<8x128xf32>, i32 -> vector<8x128xf32>
    %cst_331 = arith.constant 0.000000e+00 : f32
    %1151 = vector.broadcast %cst_331 : f32 to vector<8x128xf32>
    %1152 = arith.select %17, %1150, %1151 : vector<8x128xi1>, vector<8x128xf32>
    %c53 = arith.constant 53 : index
    %1153 = memref.load %arg4[%c53] : memref<200xf32, #tpu.memory_space<smem>>
    %1154 = vector.broadcast %1153 : f32 to vector<8x128xf32>
    %1155 = arith.mulf %1154, %1152 : vector<8x128xf32>
    %1156 = arith.addf %1146, %1155 : vector<8x128xf32>
    %c61 = arith.constant 61 : index
    %1157 = memref.load %arg4[%c61] : memref<200xf32, #tpu.memory_space<smem>>
    %1158 = vector.broadcast %1157 : f32 to vector<8x128xf32>
    %1159 = arith.mulf %1158, %1149 : vector<8x128xf32>
    %1160 = arith.addf %1156, %1159 : vector<8x128xf32>
    %c127_i32_332 = arith.constant 127 : i32
    %1161 = tpu.dynamic_rotate %1149 by %c127_i32_332 dim 1 : vector<8x128xf32>, i32 -> vector<8x128xf32>
    %cst_333 = arith.constant 0.000000e+00 : f32
    %1162 = vector.broadcast %cst_333 : f32 to vector<8x128xf32>
    %1163 = arith.select %19, %1161, %1162 : vector<8x128xi1>, vector<8x128xf32>
    %c69 = arith.constant 69 : index
    %1164 = memref.load %arg4[%c69] : memref<200xf32, #tpu.memory_space<smem>>
    %1165 = vector.broadcast %1164 : f32 to vector<8x128xf32>
    %1166 = arith.mulf %1165, %1163 : vector<8x128xf32>
    %1167 = arith.addf %1160, %1166 : vector<8x128xf32>
    %c3_i32_334 = arith.constant 3 : i32
    %1168 = tpu.dynamic_rotate %1105 by %c3_i32_334 dim 1 : vector<8x128xf32>, i32 -> vector<8x128xf32>
    %cst_335 = arith.constant 0.000000e+00 : f32
    %1169 = vector.broadcast %cst_335 : f32 to vector<8x128xf32>
    %1170 = arith.select %5, %1168, %1169 : vector<8x128xi1>, vector<8x128xf32>
    %c77 = arith.constant 77 : index
    %1171 = memref.load %arg4[%c77] : memref<200xf32, #tpu.memory_space<smem>>
    %1172 = vector.broadcast %1171 : f32 to vector<8x128xf32>
    %1173 = arith.mulf %1172, %1170 : vector<8x128xf32>
    %1174 = arith.addf %1167, %1173 : vector<8x128xf32>
    %c2_i32_336 = arith.constant 2 : i32
    %1175 = tpu.dynamic_rotate %1105 by %c2_i32_336 dim 1 : vector<8x128xf32>, i32 -> vector<8x128xf32>
    %cst_337 = arith.constant 0.000000e+00 : f32
    %1176 = vector.broadcast %cst_337 : f32 to vector<8x128xf32>
    %1177 = arith.select %11, %1175, %1176 : vector<8x128xi1>, vector<8x128xf32>
    %c85 = arith.constant 85 : index
    %1178 = memref.load %arg4[%c85] : memref<200xf32, #tpu.memory_space<smem>>
    %1179 = vector.broadcast %1178 : f32 to vector<8x128xf32>
    %1180 = arith.mulf %1179, %1177 : vector<8x128xf32>
    %1181 = arith.addf %1174, %1180 : vector<8x128xf32>
    %c1_i32_338 = arith.constant 1 : i32
    %1182 = tpu.dynamic_rotate %1105 by %c1_i32_338 dim 1 : vector<8x128xf32>, i32 -> vector<8x128xf32>
    %cst_339 = arith.constant 0.000000e+00 : f32
    %1183 = vector.broadcast %cst_339 : f32 to vector<8x128xf32>
    %1184 = arith.select %17, %1182, %1183 : vector<8x128xi1>, vector<8x128xf32>
    %c93 = arith.constant 93 : index
    %1185 = memref.load %arg4[%c93] : memref<200xf32, #tpu.memory_space<smem>>
    %1186 = vector.broadcast %1185 : f32 to vector<8x128xf32>
    %1187 = arith.mulf %1186, %1184 : vector<8x128xf32>
    %1188 = arith.addf %1181, %1187 : vector<8x128xf32>
    %c101 = arith.constant 101 : index
    %1189 = memref.load %arg4[%c101] : memref<200xf32, #tpu.memory_space<smem>>
    %1190 = vector.broadcast %1189 : f32 to vector<8x128xf32>
    %1191 = arith.mulf %1190, %1105 : vector<8x128xf32>
    %1192 = arith.addf %1188, %1191 : vector<8x128xf32>
    %c127_i32_340 = arith.constant 127 : i32
    %1193 = tpu.dynamic_rotate %1105 by %c127_i32_340 dim 1 : vector<8x128xf32>, i32 -> vector<8x128xf32>
    %cst_341 = arith.constant 0.000000e+00 : f32
    %1194 = vector.broadcast %cst_341 : f32 to vector<8x128xf32>
    %1195 = arith.select %19, %1193, %1194 : vector<8x128xi1>, vector<8x128xf32>
    %c109 = arith.constant 109 : index
    %1196 = memref.load %arg4[%c109] : memref<200xf32, #tpu.memory_space<smem>>
    %1197 = vector.broadcast %1196 : f32 to vector<8x128xf32>
    %1198 = arith.mulf %1197, %1195 : vector<8x128xf32>
    %1199 = arith.addf %1192, %1198 : vector<8x128xf32>
    %c126_i32_342 = arith.constant 126 : i32
    %1200 = tpu.dynamic_rotate %1105 by %c126_i32_342 dim 1 : vector<8x128xf32>, i32 -> vector<8x128xf32>
    %cst_343 = arith.constant 0.000000e+00 : f32
    %1201 = vector.broadcast %cst_343 : f32 to vector<8x128xf32>
    %1202 = arith.select %13, %1200, %1201 : vector<8x128xi1>, vector<8x128xf32>
    %c117 = arith.constant 117 : index
    %1203 = memref.load %arg4[%c117] : memref<200xf32, #tpu.memory_space<smem>>
    %1204 = vector.broadcast %1203 : f32 to vector<8x128xf32>
    %1205 = arith.mulf %1204, %1202 : vector<8x128xf32>
    %1206 = arith.addf %1199, %1205 : vector<8x128xf32>
    %c125_i32_344 = arith.constant 125 : i32
    %1207 = tpu.dynamic_rotate %1105 by %c125_i32_344 dim 1 : vector<8x128xf32>, i32 -> vector<8x128xf32>
    %cst_345 = arith.constant 0.000000e+00 : f32
    %1208 = vector.broadcast %cst_345 : f32 to vector<8x128xf32>
    %1209 = arith.select %7, %1207, %1208 : vector<8x128xi1>, vector<8x128xf32>
    %c125 = arith.constant 125 : index
    %1210 = memref.load %arg4[%c125] : memref<200xf32, #tpu.memory_space<smem>>
    %1211 = vector.broadcast %1210 : f32 to vector<8x128xf32>
    %1212 = arith.mulf %1211, %1209 : vector<8x128xf32>
    %1213 = arith.addf %1206, %1212 : vector<8x128xf32>
    %c7_i32_346 = arith.constant 7 : i32
    %1214 = tpu.dynamic_rotate %1105 by %c7_i32_346 dim 0 : vector<8x128xf32>, i32 -> vector<8x128xf32>
    %cst_347 = arith.constant 0.000000e+00 : f32
    %1215 = vector.broadcast %cst_347 : f32 to vector<8x128xf32>
    %1216 = arith.select %21, %1214, %1215 : vector<8x128xi1>, vector<8x128xf32>
    %c1_i32_348 = arith.constant 1 : i32
    %1217 = tpu.dynamic_rotate %1216 by %c1_i32_348 dim 1 : vector<8x128xf32>, i32 -> vector<8x128xf32>
    %cst_349 = arith.constant 0.000000e+00 : f32
    %1218 = vector.broadcast %cst_349 : f32 to vector<8x128xf32>
    %1219 = arith.select %17, %1217, %1218 : vector<8x128xi1>, vector<8x128xf32>
    %c133 = arith.constant 133 : index
    %1220 = memref.load %arg4[%c133] : memref<200xf32, #tpu.memory_space<smem>>
    %1221 = vector.broadcast %1220 : f32 to vector<8x128xf32>
    %1222 = arith.mulf %1221, %1219 : vector<8x128xf32>
    %1223 = arith.addf %1213, %1222 : vector<8x128xf32>
    %c141 = arith.constant 141 : index
    %1224 = memref.load %arg4[%c141] : memref<200xf32, #tpu.memory_space<smem>>
    %1225 = vector.broadcast %1224 : f32 to vector<8x128xf32>
    %1226 = arith.mulf %1225, %1216 : vector<8x128xf32>
    %1227 = arith.addf %1223, %1226 : vector<8x128xf32>
    %c127_i32_350 = arith.constant 127 : i32
    %1228 = tpu.dynamic_rotate %1216 by %c127_i32_350 dim 1 : vector<8x128xf32>, i32 -> vector<8x128xf32>
    %cst_351 = arith.constant 0.000000e+00 : f32
    %1229 = vector.broadcast %cst_351 : f32 to vector<8x128xf32>
    %1230 = arith.select %19, %1228, %1229 : vector<8x128xi1>, vector<8x128xf32>
    %c149 = arith.constant 149 : index
    %1231 = memref.load %arg4[%c149] : memref<200xf32, #tpu.memory_space<smem>>
    %1232 = vector.broadcast %1231 : f32 to vector<8x128xf32>
    %1233 = arith.mulf %1232, %1230 : vector<8x128xf32>
    %1234 = arith.addf %1227, %1233 : vector<8x128xf32>
    %c6_i32_352 = arith.constant 6 : i32
    %1235 = tpu.dynamic_rotate %1105 by %c6_i32_352 dim 0 : vector<8x128xf32>, i32 -> vector<8x128xf32>
    %cst_353 = arith.constant 0.000000e+00 : f32
    %1236 = vector.broadcast %cst_353 : f32 to vector<8x128xf32>
    %1237 = arith.select %23, %1235, %1236 : vector<8x128xi1>, vector<8x128xf32>
    %c2_i32_354 = arith.constant 2 : i32
    %1238 = tpu.dynamic_rotate %1237 by %c2_i32_354 dim 1 : vector<8x128xf32>, i32 -> vector<8x128xf32>
    %cst_355 = arith.constant 0.000000e+00 : f32
    %1239 = vector.broadcast %cst_355 : f32 to vector<8x128xf32>
    %1240 = arith.select %11, %1238, %1239 : vector<8x128xi1>, vector<8x128xf32>
    %c157 = arith.constant 157 : index
    %1241 = memref.load %arg4[%c157] : memref<200xf32, #tpu.memory_space<smem>>
    %1242 = vector.broadcast %1241 : f32 to vector<8x128xf32>
    %1243 = arith.mulf %1242, %1240 : vector<8x128xf32>
    %1244 = arith.addf %1234, %1243 : vector<8x128xf32>
    %c165 = arith.constant 165 : index
    %1245 = memref.load %arg4[%c165] : memref<200xf32, #tpu.memory_space<smem>>
    %1246 = vector.broadcast %1245 : f32 to vector<8x128xf32>
    %1247 = arith.mulf %1246, %1237 : vector<8x128xf32>
    %1248 = arith.addf %1244, %1247 : vector<8x128xf32>
    %c126_i32_356 = arith.constant 126 : i32
    %1249 = tpu.dynamic_rotate %1237 by %c126_i32_356 dim 1 : vector<8x128xf32>, i32 -> vector<8x128xf32>
    %cst_357 = arith.constant 0.000000e+00 : f32
    %1250 = vector.broadcast %cst_357 : f32 to vector<8x128xf32>
    %1251 = arith.select %13, %1249, %1250 : vector<8x128xi1>, vector<8x128xf32>
    %c173 = arith.constant 173 : index
    %1252 = memref.load %arg4[%c173] : memref<200xf32, #tpu.memory_space<smem>>
    %1253 = vector.broadcast %1252 : f32 to vector<8x128xf32>
    %1254 = arith.mulf %1253, %1251 : vector<8x128xf32>
    %1255 = arith.addf %1248, %1254 : vector<8x128xf32>
    %c5_i32_358 = arith.constant 5 : i32
    %1256 = tpu.dynamic_rotate %1105 by %c5_i32_358 dim 0 : vector<8x128xf32>, i32 -> vector<8x128xf32>
    %cst_359 = arith.constant 0.000000e+00 : f32
    %1257 = vector.broadcast %cst_359 : f32 to vector<8x128xf32>
    %1258 = arith.select %25, %1256, %1257 : vector<8x128xi1>, vector<8x128xf32>
    %c3_i32_360 = arith.constant 3 : i32
    %1259 = tpu.dynamic_rotate %1258 by %c3_i32_360 dim 1 : vector<8x128xf32>, i32 -> vector<8x128xf32>
    %cst_361 = arith.constant 0.000000e+00 : f32
    %1260 = vector.broadcast %cst_361 : f32 to vector<8x128xf32>
    %1261 = arith.select %5, %1259, %1260 : vector<8x128xi1>, vector<8x128xf32>
    %c181 = arith.constant 181 : index
    %1262 = memref.load %arg4[%c181] : memref<200xf32, #tpu.memory_space<smem>>
    %1263 = vector.broadcast %1262 : f32 to vector<8x128xf32>
    %1264 = arith.mulf %1263, %1261 : vector<8x128xf32>
    %1265 = arith.addf %1255, %1264 : vector<8x128xf32>
    %c189 = arith.constant 189 : index
    %1266 = memref.load %arg4[%c189] : memref<200xf32, #tpu.memory_space<smem>>
    %1267 = vector.broadcast %1266 : f32 to vector<8x128xf32>
    %1268 = arith.mulf %1267, %1258 : vector<8x128xf32>
    %1269 = arith.addf %1265, %1268 : vector<8x128xf32>
    %c125_i32_362 = arith.constant 125 : i32
    %1270 = tpu.dynamic_rotate %1258 by %c125_i32_362 dim 1 : vector<8x128xf32>, i32 -> vector<8x128xf32>
    %cst_363 = arith.constant 0.000000e+00 : f32
    %1271 = vector.broadcast %cst_363 : f32 to vector<8x128xf32>
    %1272 = arith.select %7, %1270, %1271 : vector<8x128xi1>, vector<8x128xf32>
    %c197 = arith.constant 197 : index
    %1273 = memref.load %arg4[%c197] : memref<200xf32, #tpu.memory_space<smem>>
    %1274 = vector.broadcast %1273 : f32 to vector<8x128xf32>
    %1275 = arith.mulf %1274, %1272 : vector<8x128xf32>
    %1276 = arith.addf %1269, %1275 : vector<8x128xf32>
    %c5_364 = arith.constant 5 : index
    %1277 = memref.load %arg5[%c5_364] : memref<8xf32, #tpu.memory_space<smem>>
    %1278 = vector.broadcast %1277 : f32 to vector<8x128xf32>
    %1279 = arith.addf %1276, %1278 : vector<8x128xf32>
    %cst_365 = arith.constant 0.000000e+00 : f32
    %1280 = vector.broadcast %cst_365 : f32 to vector<8x128xf32>
    %1281 = arith.maximumf %1279, %1280 : vector<8x128xf32>
    %c20_366 = arith.constant 20 : index
    %1282 = memref.load %arg6[%c20_366] : memref<32xf32, #tpu.memory_space<smem>>
    %1283 = vector.broadcast %1282 : f32 to vector<8x128xf32>
    %1284 = arith.mulf %1283, %1281 : vector<8x128xf32>
    %1285 = arith.addf %1075, %1284 : vector<8x128xf32>
    %c21_367 = arith.constant 21 : index
    %1286 = memref.load %arg6[%c21_367] : memref<32xf32, #tpu.memory_space<smem>>
    %1287 = vector.broadcast %1286 : f32 to vector<8x128xf32>
    %1288 = arith.mulf %1287, %1281 : vector<8x128xf32>
    %1289 = arith.addf %1079, %1288 : vector<8x128xf32>
    %c22_368 = arith.constant 22 : index
    %1290 = memref.load %arg6[%c22_368] : memref<32xf32, #tpu.memory_space<smem>>
    %1291 = vector.broadcast %1290 : f32 to vector<8x128xf32>
    %1292 = arith.mulf %1291, %1281 : vector<8x128xf32>
    %1293 = arith.addf %1083, %1292 : vector<8x128xf32>
    %c23_369 = arith.constant 23 : index
    %1294 = memref.load %arg6[%c23_369] : memref<32xf32, #tpu.memory_space<smem>>
    %1295 = vector.broadcast %1294 : f32 to vector<8x128xf32>
    %1296 = arith.mulf %1295, %1281 : vector<8x128xf32>
    %1297 = arith.addf %1087, %1296 : vector<8x128xf32>
    %c24_370 = arith.constant 24 : index
    %1298 = memref.load %arg2[%c24_370] : memref<32xf32, #tpu.memory_space<smem>>
    %1299 = vector.broadcast %1298 : f32 to vector<8x128xf32>
    %1300 = arith.mulf %1299, %27 : vector<8x128xf32>
    %c25_371 = arith.constant 25 : index
    %1301 = memref.load %arg2[%c25_371] : memref<32xf32, #tpu.memory_space<smem>>
    %1302 = vector.broadcast %1301 : f32 to vector<8x128xf32>
    %1303 = arith.mulf %1302, %29 : vector<8x128xf32>
    %1304 = arith.addf %1300, %1303 : vector<8x128xf32>
    %c26_372 = arith.constant 26 : index
    %1305 = memref.load %arg2[%c26_372] : memref<32xf32, #tpu.memory_space<smem>>
    %1306 = vector.broadcast %1305 : f32 to vector<8x128xf32>
    %1307 = arith.mulf %1306, %31 : vector<8x128xf32>
    %1308 = arith.addf %1304, %1307 : vector<8x128xf32>
    %c27_373 = arith.constant 27 : index
    %1309 = memref.load %arg2[%c27_373] : memref<32xf32, #tpu.memory_space<smem>>
    %1310 = vector.broadcast %1309 : f32 to vector<8x128xf32>
    %1311 = arith.mulf %1310, %33 : vector<8x128xf32>
    %1312 = arith.addf %1308, %1311 : vector<8x128xf32>
    %c6_374 = arith.constant 6 : index
    %1313 = memref.load %arg3[%c6_374] : memref<8xf32, #tpu.memory_space<smem>>
    %1314 = vector.broadcast %1313 : f32 to vector<8x128xf32>
    %1315 = arith.addf %1312, %1314 : vector<8x128xf32>
    %c3_i32_375 = arith.constant 3 : i32
    %1316 = tpu.dynamic_rotate %1315 by %c3_i32_375 dim 0 : vector<8x128xf32>, i32 -> vector<8x128xf32>
    %cst_376 = arith.constant 0.000000e+00 : f32
    %1317 = vector.broadcast %cst_376 : f32 to vector<8x128xf32>
    %1318 = arith.select %3, %1316, %1317 : vector<8x128xi1>, vector<8x128xf32>
    %c3_i32_377 = arith.constant 3 : i32
    %1319 = tpu.dynamic_rotate %1318 by %c3_i32_377 dim 1 : vector<8x128xf32>, i32 -> vector<8x128xf32>
    %cst_378 = arith.constant 0.000000e+00 : f32
    %1320 = vector.broadcast %cst_378 : f32 to vector<8x128xf32>
    %1321 = arith.select %5, %1319, %1320 : vector<8x128xi1>, vector<8x128xf32>
    %c6_379 = arith.constant 6 : index
    %1322 = memref.load %arg4[%c6_379] : memref<200xf32, #tpu.memory_space<smem>>
    %1323 = vector.broadcast %1322 : f32 to vector<8x128xf32>
    %1324 = arith.mulf %1323, %1321 : vector<8x128xf32>
    %c14_380 = arith.constant 14 : index
    %1325 = memref.load %arg4[%c14_380] : memref<200xf32, #tpu.memory_space<smem>>
    %1326 = vector.broadcast %1325 : f32 to vector<8x128xf32>
    %1327 = arith.mulf %1326, %1318 : vector<8x128xf32>
    %1328 = arith.addf %1324, %1327 : vector<8x128xf32>
    %c125_i32_381 = arith.constant 125 : i32
    %1329 = tpu.dynamic_rotate %1318 by %c125_i32_381 dim 1 : vector<8x128xf32>, i32 -> vector<8x128xf32>
    %cst_382 = arith.constant 0.000000e+00 : f32
    %1330 = vector.broadcast %cst_382 : f32 to vector<8x128xf32>
    %1331 = arith.select %7, %1329, %1330 : vector<8x128xi1>, vector<8x128xf32>
    %c22_383 = arith.constant 22 : index
    %1332 = memref.load %arg4[%c22_383] : memref<200xf32, #tpu.memory_space<smem>>
    %1333 = vector.broadcast %1332 : f32 to vector<8x128xf32>
    %1334 = arith.mulf %1333, %1331 : vector<8x128xf32>
    %1335 = arith.addf %1328, %1334 : vector<8x128xf32>
    %c2_i32_384 = arith.constant 2 : i32
    %1336 = tpu.dynamic_rotate %1315 by %c2_i32_384 dim 0 : vector<8x128xf32>, i32 -> vector<8x128xf32>
    %cst_385 = arith.constant 0.000000e+00 : f32
    %1337 = vector.broadcast %cst_385 : f32 to vector<8x128xf32>
    %1338 = arith.select %9, %1336, %1337 : vector<8x128xi1>, vector<8x128xf32>
    %c2_i32_386 = arith.constant 2 : i32
    %1339 = tpu.dynamic_rotate %1338 by %c2_i32_386 dim 1 : vector<8x128xf32>, i32 -> vector<8x128xf32>
    %cst_387 = arith.constant 0.000000e+00 : f32
    %1340 = vector.broadcast %cst_387 : f32 to vector<8x128xf32>
    %1341 = arith.select %11, %1339, %1340 : vector<8x128xi1>, vector<8x128xf32>
    %c30 = arith.constant 30 : index
    %1342 = memref.load %arg4[%c30] : memref<200xf32, #tpu.memory_space<smem>>
    %1343 = vector.broadcast %1342 : f32 to vector<8x128xf32>
    %1344 = arith.mulf %1343, %1341 : vector<8x128xf32>
    %1345 = arith.addf %1335, %1344 : vector<8x128xf32>
    %c38 = arith.constant 38 : index
    %1346 = memref.load %arg4[%c38] : memref<200xf32, #tpu.memory_space<smem>>
    %1347 = vector.broadcast %1346 : f32 to vector<8x128xf32>
    %1348 = arith.mulf %1347, %1338 : vector<8x128xf32>
    %1349 = arith.addf %1345, %1348 : vector<8x128xf32>
    %c126_i32_388 = arith.constant 126 : i32
    %1350 = tpu.dynamic_rotate %1338 by %c126_i32_388 dim 1 : vector<8x128xf32>, i32 -> vector<8x128xf32>
    %cst_389 = arith.constant 0.000000e+00 : f32
    %1351 = vector.broadcast %cst_389 : f32 to vector<8x128xf32>
    %1352 = arith.select %13, %1350, %1351 : vector<8x128xi1>, vector<8x128xf32>
    %c46 = arith.constant 46 : index
    %1353 = memref.load %arg4[%c46] : memref<200xf32, #tpu.memory_space<smem>>
    %1354 = vector.broadcast %1353 : f32 to vector<8x128xf32>
    %1355 = arith.mulf %1354, %1352 : vector<8x128xf32>
    %1356 = arith.addf %1349, %1355 : vector<8x128xf32>
    %c1_i32_390 = arith.constant 1 : i32
    %1357 = tpu.dynamic_rotate %1315 by %c1_i32_390 dim 0 : vector<8x128xf32>, i32 -> vector<8x128xf32>
    %cst_391 = arith.constant 0.000000e+00 : f32
    %1358 = vector.broadcast %cst_391 : f32 to vector<8x128xf32>
    %1359 = arith.select %15, %1357, %1358 : vector<8x128xi1>, vector<8x128xf32>
    %c1_i32_392 = arith.constant 1 : i32
    %1360 = tpu.dynamic_rotate %1359 by %c1_i32_392 dim 1 : vector<8x128xf32>, i32 -> vector<8x128xf32>
    %cst_393 = arith.constant 0.000000e+00 : f32
    %1361 = vector.broadcast %cst_393 : f32 to vector<8x128xf32>
    %1362 = arith.select %17, %1360, %1361 : vector<8x128xi1>, vector<8x128xf32>
    %c54 = arith.constant 54 : index
    %1363 = memref.load %arg4[%c54] : memref<200xf32, #tpu.memory_space<smem>>
    %1364 = vector.broadcast %1363 : f32 to vector<8x128xf32>
    %1365 = arith.mulf %1364, %1362 : vector<8x128xf32>
    %1366 = arith.addf %1356, %1365 : vector<8x128xf32>
    %c62 = arith.constant 62 : index
    %1367 = memref.load %arg4[%c62] : memref<200xf32, #tpu.memory_space<smem>>
    %1368 = vector.broadcast %1367 : f32 to vector<8x128xf32>
    %1369 = arith.mulf %1368, %1359 : vector<8x128xf32>
    %1370 = arith.addf %1366, %1369 : vector<8x128xf32>
    %c127_i32_394 = arith.constant 127 : i32
    %1371 = tpu.dynamic_rotate %1359 by %c127_i32_394 dim 1 : vector<8x128xf32>, i32 -> vector<8x128xf32>
    %cst_395 = arith.constant 0.000000e+00 : f32
    %1372 = vector.broadcast %cst_395 : f32 to vector<8x128xf32>
    %1373 = arith.select %19, %1371, %1372 : vector<8x128xi1>, vector<8x128xf32>
    %c70 = arith.constant 70 : index
    %1374 = memref.load %arg4[%c70] : memref<200xf32, #tpu.memory_space<smem>>
    %1375 = vector.broadcast %1374 : f32 to vector<8x128xf32>
    %1376 = arith.mulf %1375, %1373 : vector<8x128xf32>
    %1377 = arith.addf %1370, %1376 : vector<8x128xf32>
    %c3_i32_396 = arith.constant 3 : i32
    %1378 = tpu.dynamic_rotate %1315 by %c3_i32_396 dim 1 : vector<8x128xf32>, i32 -> vector<8x128xf32>
    %cst_397 = arith.constant 0.000000e+00 : f32
    %1379 = vector.broadcast %cst_397 : f32 to vector<8x128xf32>
    %1380 = arith.select %5, %1378, %1379 : vector<8x128xi1>, vector<8x128xf32>
    %c78 = arith.constant 78 : index
    %1381 = memref.load %arg4[%c78] : memref<200xf32, #tpu.memory_space<smem>>
    %1382 = vector.broadcast %1381 : f32 to vector<8x128xf32>
    %1383 = arith.mulf %1382, %1380 : vector<8x128xf32>
    %1384 = arith.addf %1377, %1383 : vector<8x128xf32>
    %c2_i32_398 = arith.constant 2 : i32
    %1385 = tpu.dynamic_rotate %1315 by %c2_i32_398 dim 1 : vector<8x128xf32>, i32 -> vector<8x128xf32>
    %cst_399 = arith.constant 0.000000e+00 : f32
    %1386 = vector.broadcast %cst_399 : f32 to vector<8x128xf32>
    %1387 = arith.select %11, %1385, %1386 : vector<8x128xi1>, vector<8x128xf32>
    %c86 = arith.constant 86 : index
    %1388 = memref.load %arg4[%c86] : memref<200xf32, #tpu.memory_space<smem>>
    %1389 = vector.broadcast %1388 : f32 to vector<8x128xf32>
    %1390 = arith.mulf %1389, %1387 : vector<8x128xf32>
    %1391 = arith.addf %1384, %1390 : vector<8x128xf32>
    %c1_i32_400 = arith.constant 1 : i32
    %1392 = tpu.dynamic_rotate %1315 by %c1_i32_400 dim 1 : vector<8x128xf32>, i32 -> vector<8x128xf32>
    %cst_401 = arith.constant 0.000000e+00 : f32
    %1393 = vector.broadcast %cst_401 : f32 to vector<8x128xf32>
    %1394 = arith.select %17, %1392, %1393 : vector<8x128xi1>, vector<8x128xf32>
    %c94 = arith.constant 94 : index
    %1395 = memref.load %arg4[%c94] : memref<200xf32, #tpu.memory_space<smem>>
    %1396 = vector.broadcast %1395 : f32 to vector<8x128xf32>
    %1397 = arith.mulf %1396, %1394 : vector<8x128xf32>
    %1398 = arith.addf %1391, %1397 : vector<8x128xf32>
    %c102 = arith.constant 102 : index
    %1399 = memref.load %arg4[%c102] : memref<200xf32, #tpu.memory_space<smem>>
    %1400 = vector.broadcast %1399 : f32 to vector<8x128xf32>
    %1401 = arith.mulf %1400, %1315 : vector<8x128xf32>
    %1402 = arith.addf %1398, %1401 : vector<8x128xf32>
    %c127_i32_402 = arith.constant 127 : i32
    %1403 = tpu.dynamic_rotate %1315 by %c127_i32_402 dim 1 : vector<8x128xf32>, i32 -> vector<8x128xf32>
    %cst_403 = arith.constant 0.000000e+00 : f32
    %1404 = vector.broadcast %cst_403 : f32 to vector<8x128xf32>
    %1405 = arith.select %19, %1403, %1404 : vector<8x128xi1>, vector<8x128xf32>
    %c110 = arith.constant 110 : index
    %1406 = memref.load %arg4[%c110] : memref<200xf32, #tpu.memory_space<smem>>
    %1407 = vector.broadcast %1406 : f32 to vector<8x128xf32>
    %1408 = arith.mulf %1407, %1405 : vector<8x128xf32>
    %1409 = arith.addf %1402, %1408 : vector<8x128xf32>
    %c126_i32_404 = arith.constant 126 : i32
    %1410 = tpu.dynamic_rotate %1315 by %c126_i32_404 dim 1 : vector<8x128xf32>, i32 -> vector<8x128xf32>
    %cst_405 = arith.constant 0.000000e+00 : f32
    %1411 = vector.broadcast %cst_405 : f32 to vector<8x128xf32>
    %1412 = arith.select %13, %1410, %1411 : vector<8x128xi1>, vector<8x128xf32>
    %c118 = arith.constant 118 : index
    %1413 = memref.load %arg4[%c118] : memref<200xf32, #tpu.memory_space<smem>>
    %1414 = vector.broadcast %1413 : f32 to vector<8x128xf32>
    %1415 = arith.mulf %1414, %1412 : vector<8x128xf32>
    %1416 = arith.addf %1409, %1415 : vector<8x128xf32>
    %c125_i32_406 = arith.constant 125 : i32
    %1417 = tpu.dynamic_rotate %1315 by %c125_i32_406 dim 1 : vector<8x128xf32>, i32 -> vector<8x128xf32>
    %cst_407 = arith.constant 0.000000e+00 : f32
    %1418 = vector.broadcast %cst_407 : f32 to vector<8x128xf32>
    %1419 = arith.select %7, %1417, %1418 : vector<8x128xi1>, vector<8x128xf32>
    %c126 = arith.constant 126 : index
    %1420 = memref.load %arg4[%c126] : memref<200xf32, #tpu.memory_space<smem>>
    %1421 = vector.broadcast %1420 : f32 to vector<8x128xf32>
    %1422 = arith.mulf %1421, %1419 : vector<8x128xf32>
    %1423 = arith.addf %1416, %1422 : vector<8x128xf32>
    %c7_i32_408 = arith.constant 7 : i32
    %1424 = tpu.dynamic_rotate %1315 by %c7_i32_408 dim 0 : vector<8x128xf32>, i32 -> vector<8x128xf32>
    %cst_409 = arith.constant 0.000000e+00 : f32
    %1425 = vector.broadcast %cst_409 : f32 to vector<8x128xf32>
    %1426 = arith.select %21, %1424, %1425 : vector<8x128xi1>, vector<8x128xf32>
    %c1_i32_410 = arith.constant 1 : i32
    %1427 = tpu.dynamic_rotate %1426 by %c1_i32_410 dim 1 : vector<8x128xf32>, i32 -> vector<8x128xf32>
    %cst_411 = arith.constant 0.000000e+00 : f32
    %1428 = vector.broadcast %cst_411 : f32 to vector<8x128xf32>
    %1429 = arith.select %17, %1427, %1428 : vector<8x128xi1>, vector<8x128xf32>
    %c134 = arith.constant 134 : index
    %1430 = memref.load %arg4[%c134] : memref<200xf32, #tpu.memory_space<smem>>
    %1431 = vector.broadcast %1430 : f32 to vector<8x128xf32>
    %1432 = arith.mulf %1431, %1429 : vector<8x128xf32>
    %1433 = arith.addf %1423, %1432 : vector<8x128xf32>
    %c142 = arith.constant 142 : index
    %1434 = memref.load %arg4[%c142] : memref<200xf32, #tpu.memory_space<smem>>
    %1435 = vector.broadcast %1434 : f32 to vector<8x128xf32>
    %1436 = arith.mulf %1435, %1426 : vector<8x128xf32>
    %1437 = arith.addf %1433, %1436 : vector<8x128xf32>
    %c127_i32_412 = arith.constant 127 : i32
    %1438 = tpu.dynamic_rotate %1426 by %c127_i32_412 dim 1 : vector<8x128xf32>, i32 -> vector<8x128xf32>
    %cst_413 = arith.constant 0.000000e+00 : f32
    %1439 = vector.broadcast %cst_413 : f32 to vector<8x128xf32>
    %1440 = arith.select %19, %1438, %1439 : vector<8x128xi1>, vector<8x128xf32>
    %c150 = arith.constant 150 : index
    %1441 = memref.load %arg4[%c150] : memref<200xf32, #tpu.memory_space<smem>>
    %1442 = vector.broadcast %1441 : f32 to vector<8x128xf32>
    %1443 = arith.mulf %1442, %1440 : vector<8x128xf32>
    %1444 = arith.addf %1437, %1443 : vector<8x128xf32>
    %c6_i32_414 = arith.constant 6 : i32
    %1445 = tpu.dynamic_rotate %1315 by %c6_i32_414 dim 0 : vector<8x128xf32>, i32 -> vector<8x128xf32>
    %cst_415 = arith.constant 0.000000e+00 : f32
    %1446 = vector.broadcast %cst_415 : f32 to vector<8x128xf32>
    %1447 = arith.select %23, %1445, %1446 : vector<8x128xi1>, vector<8x128xf32>
    %c2_i32_416 = arith.constant 2 : i32
    %1448 = tpu.dynamic_rotate %1447 by %c2_i32_416 dim 1 : vector<8x128xf32>, i32 -> vector<8x128xf32>
    %cst_417 = arith.constant 0.000000e+00 : f32
    %1449 = vector.broadcast %cst_417 : f32 to vector<8x128xf32>
    %1450 = arith.select %11, %1448, %1449 : vector<8x128xi1>, vector<8x128xf32>
    %c158 = arith.constant 158 : index
    %1451 = memref.load %arg4[%c158] : memref<200xf32, #tpu.memory_space<smem>>
    %1452 = vector.broadcast %1451 : f32 to vector<8x128xf32>
    %1453 = arith.mulf %1452, %1450 : vector<8x128xf32>
    %1454 = arith.addf %1444, %1453 : vector<8x128xf32>
    %c166 = arith.constant 166 : index
    %1455 = memref.load %arg4[%c166] : memref<200xf32, #tpu.memory_space<smem>>
    %1456 = vector.broadcast %1455 : f32 to vector<8x128xf32>
    %1457 = arith.mulf %1456, %1447 : vector<8x128xf32>
    %1458 = arith.addf %1454, %1457 : vector<8x128xf32>
    %c126_i32_418 = arith.constant 126 : i32
    %1459 = tpu.dynamic_rotate %1447 by %c126_i32_418 dim 1 : vector<8x128xf32>, i32 -> vector<8x128xf32>
    %cst_419 = arith.constant 0.000000e+00 : f32
    %1460 = vector.broadcast %cst_419 : f32 to vector<8x128xf32>
    %1461 = arith.select %13, %1459, %1460 : vector<8x128xi1>, vector<8x128xf32>
    %c174 = arith.constant 174 : index
    %1462 = memref.load %arg4[%c174] : memref<200xf32, #tpu.memory_space<smem>>
    %1463 = vector.broadcast %1462 : f32 to vector<8x128xf32>
    %1464 = arith.mulf %1463, %1461 : vector<8x128xf32>
    %1465 = arith.addf %1458, %1464 : vector<8x128xf32>
    %c5_i32_420 = arith.constant 5 : i32
    %1466 = tpu.dynamic_rotate %1315 by %c5_i32_420 dim 0 : vector<8x128xf32>, i32 -> vector<8x128xf32>
    %cst_421 = arith.constant 0.000000e+00 : f32
    %1467 = vector.broadcast %cst_421 : f32 to vector<8x128xf32>
    %1468 = arith.select %25, %1466, %1467 : vector<8x128xi1>, vector<8x128xf32>
    %c3_i32_422 = arith.constant 3 : i32
    %1469 = tpu.dynamic_rotate %1468 by %c3_i32_422 dim 1 : vector<8x128xf32>, i32 -> vector<8x128xf32>
    %cst_423 = arith.constant 0.000000e+00 : f32
    %1470 = vector.broadcast %cst_423 : f32 to vector<8x128xf32>
    %1471 = arith.select %5, %1469, %1470 : vector<8x128xi1>, vector<8x128xf32>
    %c182 = arith.constant 182 : index
    %1472 = memref.load %arg4[%c182] : memref<200xf32, #tpu.memory_space<smem>>
    %1473 = vector.broadcast %1472 : f32 to vector<8x128xf32>
    %1474 = arith.mulf %1473, %1471 : vector<8x128xf32>
    %1475 = arith.addf %1465, %1474 : vector<8x128xf32>
    %c190 = arith.constant 190 : index
    %1476 = memref.load %arg4[%c190] : memref<200xf32, #tpu.memory_space<smem>>
    %1477 = vector.broadcast %1476 : f32 to vector<8x128xf32>
    %1478 = arith.mulf %1477, %1468 : vector<8x128xf32>
    %1479 = arith.addf %1475, %1478 : vector<8x128xf32>
    %c125_i32_424 = arith.constant 125 : i32
    %1480 = tpu.dynamic_rotate %1468 by %c125_i32_424 dim 1 : vector<8x128xf32>, i32 -> vector<8x128xf32>
    %cst_425 = arith.constant 0.000000e+00 : f32
    %1481 = vector.broadcast %cst_425 : f32 to vector<8x128xf32>
    %1482 = arith.select %7, %1480, %1481 : vector<8x128xi1>, vector<8x128xf32>
    %c198 = arith.constant 198 : index
    %1483 = memref.load %arg4[%c198] : memref<200xf32, #tpu.memory_space<smem>>
    %1484 = vector.broadcast %1483 : f32 to vector<8x128xf32>
    %1485 = arith.mulf %1484, %1482 : vector<8x128xf32>
    %1486 = arith.addf %1479, %1485 : vector<8x128xf32>
    %c6_426 = arith.constant 6 : index
    %1487 = memref.load %arg5[%c6_426] : memref<8xf32, #tpu.memory_space<smem>>
    %1488 = vector.broadcast %1487 : f32 to vector<8x128xf32>
    %1489 = arith.addf %1486, %1488 : vector<8x128xf32>
    %cst_427 = arith.constant 0.000000e+00 : f32
    %1490 = vector.broadcast %cst_427 : f32 to vector<8x128xf32>
    %1491 = arith.maximumf %1489, %1490 : vector<8x128xf32>
    %c24_428 = arith.constant 24 : index
    %1492 = memref.load %arg6[%c24_428] : memref<32xf32, #tpu.memory_space<smem>>
    %1493 = vector.broadcast %1492 : f32 to vector<8x128xf32>
    %1494 = arith.mulf %1493, %1491 : vector<8x128xf32>
    %1495 = arith.addf %1285, %1494 : vector<8x128xf32>
    %c25_429 = arith.constant 25 : index
    %1496 = memref.load %arg6[%c25_429] : memref<32xf32, #tpu.memory_space<smem>>
    %1497 = vector.broadcast %1496 : f32 to vector<8x128xf32>
    %1498 = arith.mulf %1497, %1491 : vector<8x128xf32>
    %1499 = arith.addf %1289, %1498 : vector<8x128xf32>
    %c26_430 = arith.constant 26 : index
    %1500 = memref.load %arg6[%c26_430] : memref<32xf32, #tpu.memory_space<smem>>
    %1501 = vector.broadcast %1500 : f32 to vector<8x128xf32>
    %1502 = arith.mulf %1501, %1491 : vector<8x128xf32>
    %1503 = arith.addf %1293, %1502 : vector<8x128xf32>
    %c27_431 = arith.constant 27 : index
    %1504 = memref.load %arg6[%c27_431] : memref<32xf32, #tpu.memory_space<smem>>
    %1505 = vector.broadcast %1504 : f32 to vector<8x128xf32>
    %1506 = arith.mulf %1505, %1491 : vector<8x128xf32>
    %1507 = arith.addf %1297, %1506 : vector<8x128xf32>
    %c28_432 = arith.constant 28 : index
    %1508 = memref.load %arg2[%c28_432] : memref<32xf32, #tpu.memory_space<smem>>
    %1509 = vector.broadcast %1508 : f32 to vector<8x128xf32>
    %1510 = arith.mulf %1509, %27 : vector<8x128xf32>
    %c29_433 = arith.constant 29 : index
    %1511 = memref.load %arg2[%c29_433] : memref<32xf32, #tpu.memory_space<smem>>
    %1512 = vector.broadcast %1511 : f32 to vector<8x128xf32>
    %1513 = arith.mulf %1512, %29 : vector<8x128xf32>
    %1514 = arith.addf %1510, %1513 : vector<8x128xf32>
    %c30_434 = arith.constant 30 : index
    %1515 = memref.load %arg2[%c30_434] : memref<32xf32, #tpu.memory_space<smem>>
    %1516 = vector.broadcast %1515 : f32 to vector<8x128xf32>
    %1517 = arith.mulf %1516, %31 : vector<8x128xf32>
    %1518 = arith.addf %1514, %1517 : vector<8x128xf32>
    %c31 = arith.constant 31 : index
    %1519 = memref.load %arg2[%c31] : memref<32xf32, #tpu.memory_space<smem>>
    %1520 = vector.broadcast %1519 : f32 to vector<8x128xf32>
    %1521 = arith.mulf %1520, %33 : vector<8x128xf32>
    %1522 = arith.addf %1518, %1521 : vector<8x128xf32>
    %c7_435 = arith.constant 7 : index
    %1523 = memref.load %arg3[%c7_435] : memref<8xf32, #tpu.memory_space<smem>>
    %1524 = vector.broadcast %1523 : f32 to vector<8x128xf32>
    %1525 = arith.addf %1522, %1524 : vector<8x128xf32>
    %c3_i32_436 = arith.constant 3 : i32
    %1526 = tpu.dynamic_rotate %1525 by %c3_i32_436 dim 0 : vector<8x128xf32>, i32 -> vector<8x128xf32>
    %cst_437 = arith.constant 0.000000e+00 : f32
    %1527 = vector.broadcast %cst_437 : f32 to vector<8x128xf32>
    %1528 = arith.select %3, %1526, %1527 : vector<8x128xi1>, vector<8x128xf32>
    %c3_i32_438 = arith.constant 3 : i32
    %1529 = tpu.dynamic_rotate %1528 by %c3_i32_438 dim 1 : vector<8x128xf32>, i32 -> vector<8x128xf32>
    %cst_439 = arith.constant 0.000000e+00 : f32
    %1530 = vector.broadcast %cst_439 : f32 to vector<8x128xf32>
    %1531 = arith.select %5, %1529, %1530 : vector<8x128xi1>, vector<8x128xf32>
    %c7_440 = arith.constant 7 : index
    %1532 = memref.load %arg4[%c7_440] : memref<200xf32, #tpu.memory_space<smem>>
    %1533 = vector.broadcast %1532 : f32 to vector<8x128xf32>
    %1534 = arith.mulf %1533, %1531 : vector<8x128xf32>
    %c15_441 = arith.constant 15 : index
    %1535 = memref.load %arg4[%c15_441] : memref<200xf32, #tpu.memory_space<smem>>
    %1536 = vector.broadcast %1535 : f32 to vector<8x128xf32>
    %1537 = arith.mulf %1536, %1528 : vector<8x128xf32>
    %1538 = arith.addf %1534, %1537 : vector<8x128xf32>
    %c125_i32_442 = arith.constant 125 : i32
    %1539 = tpu.dynamic_rotate %1528 by %c125_i32_442 dim 1 : vector<8x128xf32>, i32 -> vector<8x128xf32>
    %cst_443 = arith.constant 0.000000e+00 : f32
    %1540 = vector.broadcast %cst_443 : f32 to vector<8x128xf32>
    %1541 = arith.select %7, %1539, %1540 : vector<8x128xi1>, vector<8x128xf32>
    %c23_444 = arith.constant 23 : index
    %1542 = memref.load %arg4[%c23_444] : memref<200xf32, #tpu.memory_space<smem>>
    %1543 = vector.broadcast %1542 : f32 to vector<8x128xf32>
    %1544 = arith.mulf %1543, %1541 : vector<8x128xf32>
    %1545 = arith.addf %1538, %1544 : vector<8x128xf32>
    %c2_i32_445 = arith.constant 2 : i32
    %1546 = tpu.dynamic_rotate %1525 by %c2_i32_445 dim 0 : vector<8x128xf32>, i32 -> vector<8x128xf32>
    %cst_446 = arith.constant 0.000000e+00 : f32
    %1547 = vector.broadcast %cst_446 : f32 to vector<8x128xf32>
    %1548 = arith.select %9, %1546, %1547 : vector<8x128xi1>, vector<8x128xf32>
    %c2_i32_447 = arith.constant 2 : i32
    %1549 = tpu.dynamic_rotate %1548 by %c2_i32_447 dim 1 : vector<8x128xf32>, i32 -> vector<8x128xf32>
    %cst_448 = arith.constant 0.000000e+00 : f32
    %1550 = vector.broadcast %cst_448 : f32 to vector<8x128xf32>
    %1551 = arith.select %11, %1549, %1550 : vector<8x128xi1>, vector<8x128xf32>
    %c31_449 = arith.constant 31 : index
    %1552 = memref.load %arg4[%c31_449] : memref<200xf32, #tpu.memory_space<smem>>
    %1553 = vector.broadcast %1552 : f32 to vector<8x128xf32>
    %1554 = arith.mulf %1553, %1551 : vector<8x128xf32>
    %1555 = arith.addf %1545, %1554 : vector<8x128xf32>
    %c39 = arith.constant 39 : index
    %1556 = memref.load %arg4[%c39] : memref<200xf32, #tpu.memory_space<smem>>
    %1557 = vector.broadcast %1556 : f32 to vector<8x128xf32>
    %1558 = arith.mulf %1557, %1548 : vector<8x128xf32>
    %1559 = arith.addf %1555, %1558 : vector<8x128xf32>
    %c126_i32_450 = arith.constant 126 : i32
    %1560 = tpu.dynamic_rotate %1548 by %c126_i32_450 dim 1 : vector<8x128xf32>, i32 -> vector<8x128xf32>
    %cst_451 = arith.constant 0.000000e+00 : f32
    %1561 = vector.broadcast %cst_451 : f32 to vector<8x128xf32>
    %1562 = arith.select %13, %1560, %1561 : vector<8x128xi1>, vector<8x128xf32>
    %c47 = arith.constant 47 : index
    %1563 = memref.load %arg4[%c47] : memref<200xf32, #tpu.memory_space<smem>>
    %1564 = vector.broadcast %1563 : f32 to vector<8x128xf32>
    %1565 = arith.mulf %1564, %1562 : vector<8x128xf32>
    %1566 = arith.addf %1559, %1565 : vector<8x128xf32>
    %c1_i32_452 = arith.constant 1 : i32
    %1567 = tpu.dynamic_rotate %1525 by %c1_i32_452 dim 0 : vector<8x128xf32>, i32 -> vector<8x128xf32>
    %cst_453 = arith.constant 0.000000e+00 : f32
    %1568 = vector.broadcast %cst_453 : f32 to vector<8x128xf32>
    %1569 = arith.select %15, %1567, %1568 : vector<8x128xi1>, vector<8x128xf32>
    %c1_i32_454 = arith.constant 1 : i32
    %1570 = tpu.dynamic_rotate %1569 by %c1_i32_454 dim 1 : vector<8x128xf32>, i32 -> vector<8x128xf32>
    %cst_455 = arith.constant 0.000000e+00 : f32
    %1571 = vector.broadcast %cst_455 : f32 to vector<8x128xf32>
    %1572 = arith.select %17, %1570, %1571 : vector<8x128xi1>, vector<8x128xf32>
    %c55 = arith.constant 55 : index
    %1573 = memref.load %arg4[%c55] : memref<200xf32, #tpu.memory_space<smem>>
    %1574 = vector.broadcast %1573 : f32 to vector<8x128xf32>
    %1575 = arith.mulf %1574, %1572 : vector<8x128xf32>
    %1576 = arith.addf %1566, %1575 : vector<8x128xf32>
    %c63 = arith.constant 63 : index
    %1577 = memref.load %arg4[%c63] : memref<200xf32, #tpu.memory_space<smem>>
    %1578 = vector.broadcast %1577 : f32 to vector<8x128xf32>
    %1579 = arith.mulf %1578, %1569 : vector<8x128xf32>
    %1580 = arith.addf %1576, %1579 : vector<8x128xf32>
    %c127_i32_456 = arith.constant 127 : i32
    %1581 = tpu.dynamic_rotate %1569 by %c127_i32_456 dim 1 : vector<8x128xf32>, i32 -> vector<8x128xf32>
    %cst_457 = arith.constant 0.000000e+00 : f32
    %1582 = vector.broadcast %cst_457 : f32 to vector<8x128xf32>
    %1583 = arith.select %19, %1581, %1582 : vector<8x128xi1>, vector<8x128xf32>
    %c71 = arith.constant 71 : index
    %1584 = memref.load %arg4[%c71] : memref<200xf32, #tpu.memory_space<smem>>
    %1585 = vector.broadcast %1584 : f32 to vector<8x128xf32>
    %1586 = arith.mulf %1585, %1583 : vector<8x128xf32>
    %1587 = arith.addf %1580, %1586 : vector<8x128xf32>
    %c3_i32_458 = arith.constant 3 : i32
    %1588 = tpu.dynamic_rotate %1525 by %c3_i32_458 dim 1 : vector<8x128xf32>, i32 -> vector<8x128xf32>
    %cst_459 = arith.constant 0.000000e+00 : f32
    %1589 = vector.broadcast %cst_459 : f32 to vector<8x128xf32>
    %1590 = arith.select %5, %1588, %1589 : vector<8x128xi1>, vector<8x128xf32>
    %c79 = arith.constant 79 : index
    %1591 = memref.load %arg4[%c79] : memref<200xf32, #tpu.memory_space<smem>>
    %1592 = vector.broadcast %1591 : f32 to vector<8x128xf32>
    %1593 = arith.mulf %1592, %1590 : vector<8x128xf32>
    %1594 = arith.addf %1587, %1593 : vector<8x128xf32>
    %c2_i32_460 = arith.constant 2 : i32
    %1595 = tpu.dynamic_rotate %1525 by %c2_i32_460 dim 1 : vector<8x128xf32>, i32 -> vector<8x128xf32>
    %cst_461 = arith.constant 0.000000e+00 : f32
    %1596 = vector.broadcast %cst_461 : f32 to vector<8x128xf32>
    %1597 = arith.select %11, %1595, %1596 : vector<8x128xi1>, vector<8x128xf32>
    %c87 = arith.constant 87 : index
    %1598 = memref.load %arg4[%c87] : memref<200xf32, #tpu.memory_space<smem>>
    %1599 = vector.broadcast %1598 : f32 to vector<8x128xf32>
    %1600 = arith.mulf %1599, %1597 : vector<8x128xf32>
    %1601 = arith.addf %1594, %1600 : vector<8x128xf32>
    %c1_i32_462 = arith.constant 1 : i32
    %1602 = tpu.dynamic_rotate %1525 by %c1_i32_462 dim 1 : vector<8x128xf32>, i32 -> vector<8x128xf32>
    %cst_463 = arith.constant 0.000000e+00 : f32
    %1603 = vector.broadcast %cst_463 : f32 to vector<8x128xf32>
    %1604 = arith.select %17, %1602, %1603 : vector<8x128xi1>, vector<8x128xf32>
    %c95 = arith.constant 95 : index
    %1605 = memref.load %arg4[%c95] : memref<200xf32, #tpu.memory_space<smem>>
    %1606 = vector.broadcast %1605 : f32 to vector<8x128xf32>
    %1607 = arith.mulf %1606, %1604 : vector<8x128xf32>
    %1608 = arith.addf %1601, %1607 : vector<8x128xf32>
    %c103 = arith.constant 103 : index
    %1609 = memref.load %arg4[%c103] : memref<200xf32, #tpu.memory_space<smem>>
    %1610 = vector.broadcast %1609 : f32 to vector<8x128xf32>
    %1611 = arith.mulf %1610, %1525 : vector<8x128xf32>
    %1612 = arith.addf %1608, %1611 : vector<8x128xf32>
    %c127_i32_464 = arith.constant 127 : i32
    %1613 = tpu.dynamic_rotate %1525 by %c127_i32_464 dim 1 : vector<8x128xf32>, i32 -> vector<8x128xf32>
    %cst_465 = arith.constant 0.000000e+00 : f32
    %1614 = vector.broadcast %cst_465 : f32 to vector<8x128xf32>
    %1615 = arith.select %19, %1613, %1614 : vector<8x128xi1>, vector<8x128xf32>
    %c111 = arith.constant 111 : index
    %1616 = memref.load %arg4[%c111] : memref<200xf32, #tpu.memory_space<smem>>
    %1617 = vector.broadcast %1616 : f32 to vector<8x128xf32>
    %1618 = arith.mulf %1617, %1615 : vector<8x128xf32>
    %1619 = arith.addf %1612, %1618 : vector<8x128xf32>
    %c126_i32_466 = arith.constant 126 : i32
    %1620 = tpu.dynamic_rotate %1525 by %c126_i32_466 dim 1 : vector<8x128xf32>, i32 -> vector<8x128xf32>
    %cst_467 = arith.constant 0.000000e+00 : f32
    %1621 = vector.broadcast %cst_467 : f32 to vector<8x128xf32>
    %1622 = arith.select %13, %1620, %1621 : vector<8x128xi1>, vector<8x128xf32>
    %c119 = arith.constant 119 : index
    %1623 = memref.load %arg4[%c119] : memref<200xf32, #tpu.memory_space<smem>>
    %1624 = vector.broadcast %1623 : f32 to vector<8x128xf32>
    %1625 = arith.mulf %1624, %1622 : vector<8x128xf32>
    %1626 = arith.addf %1619, %1625 : vector<8x128xf32>
    %c125_i32_468 = arith.constant 125 : i32
    %1627 = tpu.dynamic_rotate %1525 by %c125_i32_468 dim 1 : vector<8x128xf32>, i32 -> vector<8x128xf32>
    %cst_469 = arith.constant 0.000000e+00 : f32
    %1628 = vector.broadcast %cst_469 : f32 to vector<8x128xf32>
    %1629 = arith.select %7, %1627, %1628 : vector<8x128xi1>, vector<8x128xf32>
    %c127 = arith.constant 127 : index
    %1630 = memref.load %arg4[%c127] : memref<200xf32, #tpu.memory_space<smem>>
    %1631 = vector.broadcast %1630 : f32 to vector<8x128xf32>
    %1632 = arith.mulf %1631, %1629 : vector<8x128xf32>
    %1633 = arith.addf %1626, %1632 : vector<8x128xf32>
    %c7_i32_470 = arith.constant 7 : i32
    %1634 = tpu.dynamic_rotate %1525 by %c7_i32_470 dim 0 : vector<8x128xf32>, i32 -> vector<8x128xf32>
    %cst_471 = arith.constant 0.000000e+00 : f32
    %1635 = vector.broadcast %cst_471 : f32 to vector<8x128xf32>
    %1636 = arith.select %21, %1634, %1635 : vector<8x128xi1>, vector<8x128xf32>
    %c1_i32_472 = arith.constant 1 : i32
    %1637 = tpu.dynamic_rotate %1636 by %c1_i32_472 dim 1 : vector<8x128xf32>, i32 -> vector<8x128xf32>
    %cst_473 = arith.constant 0.000000e+00 : f32
    %1638 = vector.broadcast %cst_473 : f32 to vector<8x128xf32>
    %1639 = arith.select %17, %1637, %1638 : vector<8x128xi1>, vector<8x128xf32>
    %c135 = arith.constant 135 : index
    %1640 = memref.load %arg4[%c135] : memref<200xf32, #tpu.memory_space<smem>>
    %1641 = vector.broadcast %1640 : f32 to vector<8x128xf32>
    %1642 = arith.mulf %1641, %1639 : vector<8x128xf32>
    %1643 = arith.addf %1633, %1642 : vector<8x128xf32>
    %c143 = arith.constant 143 : index
    %1644 = memref.load %arg4[%c143] : memref<200xf32, #tpu.memory_space<smem>>
    %1645 = vector.broadcast %1644 : f32 to vector<8x128xf32>
    %1646 = arith.mulf %1645, %1636 : vector<8x128xf32>
    %1647 = arith.addf %1643, %1646 : vector<8x128xf32>
    %c127_i32_474 = arith.constant 127 : i32
    %1648 = tpu.dynamic_rotate %1636 by %c127_i32_474 dim 1 : vector<8x128xf32>, i32 -> vector<8x128xf32>
    %cst_475 = arith.constant 0.000000e+00 : f32
    %1649 = vector.broadcast %cst_475 : f32 to vector<8x128xf32>
    %1650 = arith.select %19, %1648, %1649 : vector<8x128xi1>, vector<8x128xf32>
    %c151 = arith.constant 151 : index
    %1651 = memref.load %arg4[%c151] : memref<200xf32, #tpu.memory_space<smem>>
    %1652 = vector.broadcast %1651 : f32 to vector<8x128xf32>
    %1653 = arith.mulf %1652, %1650 : vector<8x128xf32>
    %1654 = arith.addf %1647, %1653 : vector<8x128xf32>
    %c6_i32_476 = arith.constant 6 : i32
    %1655 = tpu.dynamic_rotate %1525 by %c6_i32_476 dim 0 : vector<8x128xf32>, i32 -> vector<8x128xf32>
    %cst_477 = arith.constant 0.000000e+00 : f32
    %1656 = vector.broadcast %cst_477 : f32 to vector<8x128xf32>
    %1657 = arith.select %23, %1655, %1656 : vector<8x128xi1>, vector<8x128xf32>
    %c2_i32_478 = arith.constant 2 : i32
    %1658 = tpu.dynamic_rotate %1657 by %c2_i32_478 dim 1 : vector<8x128xf32>, i32 -> vector<8x128xf32>
    %cst_479 = arith.constant 0.000000e+00 : f32
    %1659 = vector.broadcast %cst_479 : f32 to vector<8x128xf32>
    %1660 = arith.select %11, %1658, %1659 : vector<8x128xi1>, vector<8x128xf32>
    %c159 = arith.constant 159 : index
    %1661 = memref.load %arg4[%c159] : memref<200xf32, #tpu.memory_space<smem>>
    %1662 = vector.broadcast %1661 : f32 to vector<8x128xf32>
    %1663 = arith.mulf %1662, %1660 : vector<8x128xf32>
    %1664 = arith.addf %1654, %1663 : vector<8x128xf32>
    %c167 = arith.constant 167 : index
    %1665 = memref.load %arg4[%c167] : memref<200xf32, #tpu.memory_space<smem>>
    %1666 = vector.broadcast %1665 : f32 to vector<8x128xf32>
    %1667 = arith.mulf %1666, %1657 : vector<8x128xf32>
    %1668 = arith.addf %1664, %1667 : vector<8x128xf32>
    %c126_i32_480 = arith.constant 126 : i32
    %1669 = tpu.dynamic_rotate %1657 by %c126_i32_480 dim 1 : vector<8x128xf32>, i32 -> vector<8x128xf32>
    %cst_481 = arith.constant 0.000000e+00 : f32
    %1670 = vector.broadcast %cst_481 : f32 to vector<8x128xf32>
    %1671 = arith.select %13, %1669, %1670 : vector<8x128xi1>, vector<8x128xf32>
    %c175 = arith.constant 175 : index
    %1672 = memref.load %arg4[%c175] : memref<200xf32, #tpu.memory_space<smem>>
    %1673 = vector.broadcast %1672 : f32 to vector<8x128xf32>
    %1674 = arith.mulf %1673, %1671 : vector<8x128xf32>
    %1675 = arith.addf %1668, %1674 : vector<8x128xf32>
    %c5_i32_482 = arith.constant 5 : i32
    %1676 = tpu.dynamic_rotate %1525 by %c5_i32_482 dim 0 : vector<8x128xf32>, i32 -> vector<8x128xf32>
    %cst_483 = arith.constant 0.000000e+00 : f32
    %1677 = vector.broadcast %cst_483 : f32 to vector<8x128xf32>
    %1678 = arith.select %25, %1676, %1677 : vector<8x128xi1>, vector<8x128xf32>
    %c3_i32_484 = arith.constant 3 : i32
    %1679 = tpu.dynamic_rotate %1678 by %c3_i32_484 dim 1 : vector<8x128xf32>, i32 -> vector<8x128xf32>
    %cst_485 = arith.constant 0.000000e+00 : f32
    %1680 = vector.broadcast %cst_485 : f32 to vector<8x128xf32>
    %1681 = arith.select %5, %1679, %1680 : vector<8x128xi1>, vector<8x128xf32>
    %c183 = arith.constant 183 : index
    %1682 = memref.load %arg4[%c183] : memref<200xf32, #tpu.memory_space<smem>>
    %1683 = vector.broadcast %1682 : f32 to vector<8x128xf32>
    %1684 = arith.mulf %1683, %1681 : vector<8x128xf32>
    %1685 = arith.addf %1675, %1684 : vector<8x128xf32>
    %c191 = arith.constant 191 : index
    %1686 = memref.load %arg4[%c191] : memref<200xf32, #tpu.memory_space<smem>>
    %1687 = vector.broadcast %1686 : f32 to vector<8x128xf32>
    %1688 = arith.mulf %1687, %1678 : vector<8x128xf32>
    %1689 = arith.addf %1685, %1688 : vector<8x128xf32>
    %c125_i32_486 = arith.constant 125 : i32
    %1690 = tpu.dynamic_rotate %1678 by %c125_i32_486 dim 1 : vector<8x128xf32>, i32 -> vector<8x128xf32>
    %cst_487 = arith.constant 0.000000e+00 : f32
    %1691 = vector.broadcast %cst_487 : f32 to vector<8x128xf32>
    %1692 = arith.select %7, %1690, %1691 : vector<8x128xi1>, vector<8x128xf32>
    %c199 = arith.constant 199 : index
    %1693 = memref.load %arg4[%c199] : memref<200xf32, #tpu.memory_space<smem>>
    %1694 = vector.broadcast %1693 : f32 to vector<8x128xf32>
    %1695 = arith.mulf %1694, %1692 : vector<8x128xf32>
    %1696 = arith.addf %1689, %1695 : vector<8x128xf32>
    %c7_488 = arith.constant 7 : index
    %1697 = memref.load %arg5[%c7_488] : memref<8xf32, #tpu.memory_space<smem>>
    %1698 = vector.broadcast %1697 : f32 to vector<8x128xf32>
    %1699 = arith.addf %1696, %1698 : vector<8x128xf32>
    %cst_489 = arith.constant 0.000000e+00 : f32
    %1700 = vector.broadcast %cst_489 : f32 to vector<8x128xf32>
    %1701 = arith.maximumf %1699, %1700 : vector<8x128xf32>
    %c28_490 = arith.constant 28 : index
    %1702 = memref.load %arg6[%c28_490] : memref<32xf32, #tpu.memory_space<smem>>
    %1703 = vector.broadcast %1702 : f32 to vector<8x128xf32>
    %1704 = arith.mulf %1703, %1701 : vector<8x128xf32>
    %1705 = arith.addf %1495, %1704 : vector<8x128xf32>
    %c29_491 = arith.constant 29 : index
    %1706 = memref.load %arg6[%c29_491] : memref<32xf32, #tpu.memory_space<smem>>
    %1707 = vector.broadcast %1706 : f32 to vector<8x128xf32>
    %1708 = arith.mulf %1707, %1701 : vector<8x128xf32>
    %1709 = arith.addf %1499, %1708 : vector<8x128xf32>
    %c30_492 = arith.constant 30 : index
    %1710 = memref.load %arg6[%c30_492] : memref<32xf32, #tpu.memory_space<smem>>
    %1711 = vector.broadcast %1710 : f32 to vector<8x128xf32>
    %1712 = arith.mulf %1711, %1701 : vector<8x128xf32>
    %1713 = arith.addf %1503, %1712 : vector<8x128xf32>
    %c31_493 = arith.constant 31 : index
    %1714 = memref.load %arg6[%c31_493] : memref<32xf32, #tpu.memory_space<smem>>
    %1715 = vector.broadcast %1714 : f32 to vector<8x128xf32>
    %1716 = arith.mulf %1715, %1701 : vector<8x128xf32>
    %1717 = arith.addf %1507, %1716 : vector<8x128xf32>
    %c0_494 = arith.constant 0 : index
    %c0_495 = arith.constant 0 : index
    %c0_496 = arith.constant 0 : index
    %c0_497 = arith.constant 0 : index
    %1718 = vector.load %arg1[%c0_494, %c0_495, %c0_496, %c0_497] : memref<1x4x8x128xf32, #tpu.memory_space<vmem>>, vector<1x1x8x128xf32>
    %1719 = vector.shape_cast %1718 : vector<1x1x8x128xf32> to vector<8x128xf32>
    %1720 = arith.addf %1705, %1719 : vector<8x128xf32>
    %c0_498 = arith.constant 0 : index
    %c0_499 = arith.constant 0 : index
    %c0_500 = arith.constant 0 : index
    %c0_501 = arith.constant 0 : index
    %1721 = vector.load %arg7[%c0_498, %c0_499, %c0_500, %c0_501] : memref<1x4x8x128xf32, #tpu.memory_space<vmem>>, vector<1x1x8x128xf32>
    %1722 = vector.shape_cast %1721 : vector<1x1x8x128xf32> to vector<8x128xf32>
    %1723 = vector.shape_cast %1720 : vector<8x128xf32> to vector<1x1x8x128xf32>
    tpu.vector_store %arg7[%c0_498, %c0_499, %c0_500, %c0_501], %1723 {strides = array<i32>} : memref<1x4x8x128xf32, #tpu.memory_space<vmem>>, vector<1x1x8x128xf32>,
    %c0_502 = arith.constant 0 : index
    %c1_503 = arith.constant 1 : index
    %c0_504 = arith.constant 0 : index
    %c0_505 = arith.constant 0 : index
    %1724 = vector.load %arg1[%c0_502, %c1_503, %c0_504, %c0_505] : memref<1x4x8x128xf32, #tpu.memory_space<vmem>>, vector<1x1x8x128xf32>
    %1725 = vector.shape_cast %1724 : vector<1x1x8x128xf32> to vector<8x128xf32>
    %1726 = arith.addf %1709, %1725 : vector<8x128xf32>
    %c0_506 = arith.constant 0 : index
    %c1_507 = arith.constant 1 : index
    %c0_508 = arith.constant 0 : index
    %c0_509 = arith.constant 0 : index
    %1727 = vector.load %arg7[%c0_506, %c1_507, %c0_508, %c0_509] : memref<1x4x8x128xf32, #tpu.memory_space<vmem>>, vector<1x1x8x128xf32>
    %1728 = vector.shape_cast %1727 : vector<1x1x8x128xf32> to vector<8x128xf32>
    %1729 = vector.shape_cast %1726 : vector<8x128xf32> to vector<1x1x8x128xf32>
    tpu.vector_store %arg7[%c0_506, %c1_507, %c0_508, %c0_509], %1729 {strides = array<i32>} : memref<1x4x8x128xf32, #tpu.memory_space<vmem>>, vector<1x1x8x128xf32>,
    %c0_510 = arith.constant 0 : index
    %c2_511 = arith.constant 2 : index
    %c0_512 = arith.constant 0 : index
    %c0_513 = arith.constant 0 : index
    %1730 = vector.load %arg1[%c0_510, %c2_511, %c0_512, %c0_513] : memref<1x4x8x128xf32, #tpu.memory_space<vmem>>, vector<1x1x8x128xf32>
    %1731 = vector.shape_cast %1730 : vector<1x1x8x128xf32> to vector<8x128xf32>
    %1732 = arith.addf %1713, %1731 : vector<8x128xf32>
    %c0_514 = arith.constant 0 : index
    %c2_515 = arith.constant 2 : index
    %c0_516 = arith.constant 0 : index
    %c0_517 = arith.constant 0 : index
    %1733 = vector.load %arg7[%c0_514, %c2_515, %c0_516, %c0_517] : memref<1x4x8x128xf32, #tpu.memory_space<vmem>>, vector<1x1x8x128xf32>
    %1734 = vector.shape_cast %1733 : vector<1x1x8x128xf32> to vector<8x128xf32>
    %1735 = vector.shape_cast %1732 : vector<8x128xf32> to vector<1x1x8x128xf32>
    tpu.vector_store %arg7[%c0_514, %c2_515, %c0_516, %c0_517], %1735 {strides = array<i32>} : memref<1x4x8x128xf32, #tpu.memory_space<vmem>>, vector<1x1x8x128xf32>,
    %c0_518 = arith.constant 0 : index
    %c3_519 = arith.constant 3 : index
    %c0_520 = arith.constant 0 : index
    %c0_521 = arith.constant 0 : index
    %1736 = vector.load %arg1[%c0_518, %c3_519, %c0_520, %c0_521] : memref<1x4x8x128xf32, #tpu.memory_space<vmem>>, vector<1x1x8x128xf32>
    %1737 = vector.shape_cast %1736 : vector<1x1x8x128xf32> to vector<8x128xf32>
    %1738 = arith.addf %1717, %1737 : vector<8x128xf32>
    %c0_522 = arith.constant 0 : index
    %c3_523 = arith.constant 3 : index
    %c0_524 = arith.constant 0 : index
    %c0_525 = arith.constant 0 : index
    %1739 = vector.load %arg7[%c0_522, %c3_523, %c0_524, %c0_525] : memref<1x4x8x128xf32, #tpu.memory_space<vmem>>, vector<1x1x8x128xf32>
    %1740 = vector.shape_cast %1739 : vector<1x1x8x128xf32> to vector<8x128xf32>
    %1741 = vector.shape_cast %1738 : vector<8x128xf32> to vector<1x1x8x128xf32>
    tpu.vector_store %arg7[%c0_522, %c3_523, %c0_524, %c0_525], %1741 {strides = array<i32>} : memref<1x4x8x128xf32, #tpu.memory_space<vmem>>, vector<1x1x8x128xf32>,
    return
  }
  func.func @transform_0(%arg0: i32) -> (i32, i32, i32, i32) {
    %c0_i32 = arith.constant 0 : i32
    %c0_i32_0 = arith.constant 0 : i32
    %c0_i32_1 = arith.constant 0 : i32
    %c0_i32_2 = arith.constant 0 : i32
    return %arg0, %c0_i32, %c0_i32_0, %c0_i32_1 : i32, i32, i32, i32
  }
  func.func @transform_1(%arg0: i32) -> i32 {
    %c0_i32 = arith.constant 0 : i32
    %c0_i32_0 = arith.constant 0 : i32
    return %c0_i32 : i32
  }
  func.func @transform_2(%arg0: i32) -> i32 {
    %c0_i32 = arith.constant 0 : i32
    %c0_i32_0 = arith.constant 0 : i32
    return %c0_i32 : i32
  }
  func.func @transform_3(%arg0: i32) -> i32 {
    %c0_i32 = arith.constant 0 : i32
    %c0_i32_0 = arith.constant 0 : i32
    return %c0_i32 : i32
  }
  func.func @transform_4(%arg0: i32) -> i32 {
    %c0_i32 = arith.constant 0 : i32
    %c0_i32_0 = arith.constant 0 : i32
    return %c0_i32 : i32
  }
  func.func @transform_5(%arg0: i32) -> i32 {
    %c0_i32 = arith.constant 0 : i32
    %c0_i32_0 = arith.constant 0 : i32
    return %c0_i32 : i32
  }
  func.func @transform_6(%arg0: i32) -> (i32, i32, i32, i32) {
    %c0_i32 = arith.constant 0 : i32
    %c0_i32_0 = arith.constant 0 : i32
    %c0_i32_1 = arith.constant 0 : i32
    %c0_i32_2 = arith.constant 0 : i32
    return %arg0, %c0_i32, %c0_i32_0, %c0_i32_1 : i32, i32, i32, i32
  }
}

</mosaic_0001>

<bundles_post_ra>
// kernel: tpu_custom_call.1
= control target key start
LH: loop header
LB: loop body
LE: loop exit
PB: predicated region body
PF: predicated region fallthrough
CT: control target
= control target key end

     0   :  { %s4896_s0 = inlined_call_operand.hbm [shape: f32[2,4,8,128], index: 0, kind: input, shape index: {}]   ;;  %s4897_s1 = inlined_call_operand.vmem [shape: f32[32], index: 1, kind: input, shape index: {}]   ;;  %s4898_s2 = inlined_call_operand.vmem [shape: f32[8], index: 2, kind: input, shape index: {}]   ;;  %s4899_s3 = inlined_call_operand.vmem [shape: f32[200], index: 3, kind: input, shape index: {}]   ;;  %s4900_s4 = inlined_call_operand.vmem [shape: f32[8], index: 4, kind: input, shape index: {}]   ;;  %s4901_s5 = inlined_call_operand.vmem [shape: f32[32], index: 5, kind: input, shape index: {}]   ;;  %s4902_s6 = inlined_call_operand.hbm [shape: f32[2,4,8,128], index: 6, kind: output, shape index: {}]  }
   0x1   :  { %4921 = sst [smem:[#allocation22_spill]] %s4896_s0 }
   0x2   :  { %4922 = sst [smem:[#allocation23_spill]] %s4897_s1 }
   0x3   :  { %4923 = sst [smem:[#allocation24_spill]] %s4898_s2 }
   0x4   :  { %4924 = sst [smem:[#allocation25_spill]] %s4899_s3 }
   0x5   :  { %4925 = sst [smem:[#allocation26_spill]] %s4900_s4 }
   0x6   :  { %4926 = sst [smem:[#allocation27_spill]] %s4901_s5 }
   0x7   :  { %11 = vsyncpa [#allocation3], 0 }
   0x8   :  { %13 = vsyncpa [#allocation3 + $0x1], 0 }
   0x9   :  { %14 = vsyncpa [#allocation5], 0 }
   0xa   :  { %15 = vsyncpa [#allocation8], 0 }
   0xb   :  { %16 = vsyncpa [#allocation11], 0 }
   0xc   :  { %17 = vsyncpa [#allocation4], 0 }
   0xd   :  { %19 = vsyncpa [#allocation4 + $0x1], 0  ;;  %s2787_s21 = smov 0   ;;  %s2789_s22 = smov 0  }
   0xe   :  { %s2791_s23 = smov 0   ;;  %s2793_s24 = smov 0  }
   0xf LB: > { %4927 = sst [smem:[#allocation19_spill]] %s2725_s22  ;;  %s4929_s2 = sld [smem:[#allocation24_spill]]  ;;  %s2733_s24 = sphi %s2793_s24, %s4964_s24   ;;  %s2729_s23 = sphi %s2791_s23, %s4963_s23   ;;  %s2725_s22 = sphi %s2789_s22, %s4962_s22   ;;  %s2721_s21 = sphi %s2787_s21, %s4961_s21  }
  0x10   : > { %4928 = sst [smem:[#allocation20_spill]] %s2729_s23  ;;  %s2811_s28 = sadd.s32 4294967295, %s2733_s24  }
  0x11   : > { %p2133_p0 = scmp.ge.s32.totalorder %s2733_s24, 1  ;;  %p4903_p1 = scmp.eq.s32.totalorder %s2811_s28, 0 }
  0x12   : > { %p187_p2 = scmp.lt.s32.totalorder %s2733_s24, 3  ;;  %s4931_s4 = sld [smem:[#allocation26_spill]] }
  0x13   : > { %s4932_s1 = sld [smem:[#allocation23_spill]]  ;;  %s4934_s3 = sld [smem:[#allocation25_spill]] }
  0x14   : > { %p2816_p3 = pnand %p2133_p0, %p187_p2 }
  0x15   : > { %s211_s27 = sshll.u32 %s4929_s2, 4  ;;  %s212_s27 = int_to_ptr.vmem [resolvable:$true] %s211_s27 }
  0x16   : > { %s4930_s29 = scalar_select %p2816_p3, 1, 0 }
  0x17   : > { %p2466_p5 = pneg %p2816_p3  ;;  %s2550_s16 = scalar_lea.vmem %s212_s27, 16 }
  0x18   : > { %s233_s8 = sshll.u32 %s4931_s4, 4  ;;  %p2551_p7 = scmp.ne.s32.totalorder %s212_s27, %s2550_s16  ;;  %s234_s8 = int_to_ptr.vmem [resolvable:$true] %s233_s8 }
  0x19   : > { %s200_s11 = sshll.u32 %s4932_s1, 4  ;;  %p2831_p6 = pnand %p2466_p5, %p4903_p1  ;;  %s2835_s11 = int_to_ptr.vmem [resolvable:$true] %s200_s11 }
  0x1a   : > { %s222_s15 = sshll.u32 %s4934_s3, 4  ;;  %p2558_p11 = scmp.lt.s32.totalorder %s212_s27, %s212_s27  ;;  %s2840_s15 = int_to_ptr.vmem [resolvable:$true] %s222_s15 }
  0x1b   : > { %p2844_p8 = pneg %p2831_p6  ;;  %p2559_p12 = scmp.lt.s32.totalorder %s2550_s16, %s2550_s16 }
  0x1d   : > { %p2553_p9 = pnand %p2844_p8, %p2551_p7  ;;  %p2560_p13 = por %p2559_p12, %p2558_p11 }
  0x1f   : > { %p2554_p10 = pneg %p2553_p9 }
  0x21   : > { %p2561_p0 = pnand %p2560_p13, %p2554_p10 }
  0x23   : > { %2564 = shalt.err (!%p2561_p0)
}
  0x24   : > { %s2735_s18 = smov [#allocation7]   ;;  %s2565_s19 = scalar_lea.vmem %s234_s8, 16 }
  0x25   : > { %2472 = dma.vmem_to_smem (!%p2831_p6), %s212_s27, 16, %s2735_s18, [#allocation8]  }
  0x26   : > { %p2566_p2 = scmp.ne.s32.totalorder %s234_s8, %s2565_s19  ;;  %p2573_p1 = scmp.lt.s32.totalorder %s234_s8, %s234_s8 }
  0x27   : > { %p2574_p3 = scmp.lt.s32.totalorder %s2565_s19, %s2565_s19 }
  0x28   : > { %p2568_p5 = pnand %p2566_p2, %p2844_p8 }
  0x29   : > { %p2575_p7 = por %p2574_p3, %p2573_p1 }
  0x2a   : > { %p2569_p4 = pneg %p2568_p5 }
  0x2c   : > { %p2576_p9 = pnand %p2575_p7, %p2569_p4 }
  0x2e   : > { %2579 = shalt.err (!%p2576_p9)
}
  0x2f   : > { %s2736_s20 = smov [#allocation10]   ;;  %s2580_s25 = scalar_lea.vmem %s2835_s11, 16 }
  0x30   : > { %2478 = dma.vmem_to_smem (!%p2831_p6), %s234_s8, 16, %s2736_s20, [#allocation11]  }
  0x31   : > { %p2581_p10 = scmp.ne.s32.totalorder %s2835_s11, %s2580_s25  ;;  %p2588_p13 = scmp.lt.s32.totalorder %s2835_s11, %s2835_s11 }
  0x32   : > { %p2589_p0 = scmp.lt.s32.totalorder %s2580_s25, %s2580_s25 }
  0x33   : > { %p2583_p11 = pnand %p2581_p10, %p2844_p8 }
  0x34   : > { %p2590_p2 = por %p2589_p0, %p2588_p13 }
  0x35   : > { %p2584_p12 = pneg %p2583_p11 }
  0x37   : > { %p2591_p1 = pnand %p2590_p2, %p2584_p12 }
  0x39   : > { %2594 = shalt.err (!%p2591_p1)
}
  0x3a   : > { %s2737_s26 = smov [#allocation6]   ;;  %s2595_s27 = scalar_lea.vmem %s2840_s15, 32 }
  0x3b   : > { %2469 = dma.vmem_to_smem (!%p2831_p6), %s2835_s11, 16, %s2737_s26, [#allocation5]  }
  0x3c   : > { %p2596_p3 = scmp.ne.s32.totalorder %s2840_s15, %s2595_s27  ;;  %p2603_p7 = scmp.lt.s32.totalorder %s2840_s15, %s2840_s15 }
  0x3d   : > { %p2604_p9 = scmp.lt.s32.totalorder %s2595_s27, %s2595_s27 }
  0x3e   : > { %p2598_p4 = pnand %p2596_p3, %p2844_p8 }
  0x3f   : > { %p2605_p10 = por %p2604_p9, %p2603_p7 }
  0x40   : > { %p2599_p5 = pneg %p2598_p4 }
  0x42   : > { %p2606_p11 = pnand %p2605_p10, %p2599_p5 }
  0x44   : > { %2609 = shalt.err (!%p2606_p11)
}
  0x45   : > { %s2738_s30 = smov [#allocation9]   ;;  %s4936_s5 = sld [smem:[#allocation27_spill]] }
  0x46   : > { %2475 = dma.vmem_to_smem (!%p2831_p6), %s2840_s15, 32, %s2738_s30, [#allocation8]  }
  0x4b   : > { %s244_s9 = sshll.u32 %s4936_s5, 4  ;;  %s245_s9 = int_to_ptr.vmem [resolvable:$true] %s244_s9 }
  0x4c   : > { %s2610_s10 = scalar_lea.vmem %s245_s9, 16  ;;  %p2618_p2 = scmp.lt.s32.totalorder %s245_s9, %s245_s9 }
  0x4d   : > { %p2611_p12 = scmp.ne.s32.totalorder %s245_s9, %s2610_s10  ;;  %p2619_p1 = scmp.lt.s32.totalorder %s2610_s10, %s2610_s10 }
  0x4f   : > { %p2613_p13 = pnand %p2611_p12, %p2844_p8  ;;  %p2620_p3 = por %p2619_p1, %p2618_p2 }
  0x51   : > { %p2614_p0 = pneg %p2613_p13 }
  0x53   : > { %p2621_p4 = pnand %p2620_p3, %p2614_p0 }
  0x55   : > { %2624 = shalt.err (!%p2621_p4)
}
  0x56   : > { %s2739_s11 = smov [#allocation12]   ;;  %s2132_s13 = sadd.s32 4294967294, %s2733_s24  }
  0x57   : > { %2481 = dma.vmem_to_smem (!%p2831_p6), %s245_s9, 16, %s2739_s11, [#allocation11]  }
  0x58   : > { %s2883_s14 = sadd.s32 1, %s2733_s24   ;;  %s32_s12 = sadd.s32 1, %s2729_s23 }
  0x59   : > { %s29_s15 = ssub.s32 %s2733_s24, %s2883_s14  ;;  %p39_p8 = scmp.ne.s32.totalorder %s2729_s23, %s2725_s22 }
  0x5a   : > { %p30_p5 = scmp.eq.s32.totalorder %s29_s15, 0  ;;  %p40_p7 = scmp.eq.s32.totalorder %s2733_s24, 0 }
  0x5b   : > { %p45_p9 = scmp.ne.s32.totalorder %s2725_s22, %s2721_s21  ;;  %p174_p10 = scmp.eq.s32.totalorder %s2811_s28, 1 }
  0x5c   : > { %s2895_s16 = scalar_select %p30_p5, %s2729_s23, %s32_s12  }
  0x5d   : > { %p41_p11 = por %p40_p7, %p39_p8  ;;  %p4938_p12 = scmp.eq.s32.totalorder %s2811_s28, 0 }
  0x5e   : > { %4937 = sst [smem:[#allocation21_spill]] %s2895_s16  ;;  %p2903_p6 = por %p174_p10, %p39_p8 }
  0x5f   : > { %p2899_p13 = por %p4938_p12, %p45_p9  ;;  %p180_p0 = scmp.eq.s32.totalorder %s2132_s13, 1 }
  0x60   : > { %s4940_s18 = scalar_select %p2903_p6, 1, 0 }
  0x61   : > { %p2495_p2 = scmp.lt.s32.totalorder %s2733_s24, 2  ;;  %s255_s19 = sand.u32 1, %s2729_s23  }
  0x62   : > { %p2909_p1 = por %p180_p0, %p45_p9  ;;  %s2140_s25 = sshll.u32 %s255_s19, 5 }
  0x63   : > { %s2440_s26 = sshll.u32 %s2733_s24, 9  ;;  %s4942_s0 = sld [smem:[#allocation22_spill]] }
  0x64   : > { %s4941_s20 = scalar_select %p2909_p1, 1, 0 }
  0x65   : > { %s259_s8 = scalar_lea.vmem [#allocation2], %s2140_s25  ;;  %p2919_p3 = pnand %p2495_p2, %p41_p11 }
  0x66   : > { %s266_s9 = sshll.u32 %s259_s8, 4  ;;  %s2925_s11 = scalar_lea.sflag [#allocation3], %s255_s19  ;;  %s2923_s9 = int_to_ptr.vmem [resolvable:$true] %s266_s9 }
  0x67   : > { %p2627_p8 = pneg %p2919_p3 }
  0x69   : > { %s2917_s7 = scalar_lea.hbm %s4942_s0, %s2440_s26  ;;  %s2630_s25 = scalar_lea.hbm %s4942_s0, 1024 }
  0x6a   : > { %s2625_s13 = scalar_lea.hbm %s2917_s7, 512  ;;  %p2631_p9 = scmp.lt.u32.totalorder %s2917_s7, %s4942_s0 }
  0x6b   : > { %p2626_p4 = scmp.ne.s32.totalorder %s2917_s7, %s2625_s13  ;;  %p2632_p10 = scmp.lt.u32.totalorder %s2630_s25, %s2625_s13 }
  0x6c   : > { %p2634_p12 = scmp.lt.u32.totalorder %s2625_s13, %s2917_s7 }
  0x6d   : > { %p2628_p5 = pnand %p2627_p8, %p2626_p4  ;;  %p2633_p11 = por %p2632_p10, %p2631_p9 }
  0x6f   : > { %p2629_p7 = pneg %p2628_p5  ;;  %p2635_p0 = por %p2634_p12, %p2633_p11 }
  0x71   : > { %p2636_p2 = pnand %p2635_p0, %p2629_p7 }
  0x73   : > { %2639 = shalt.err (!%p2636_p2)
}
  0x74   : > { %s2640_s19 = scalar_lea.vmem %s2923_s9, 512  ;;  %s2740_s30 = smov [#allocation2]  }
  0x75   : > { %p2641_p4 = scmp.ne.s32.totalorder %s2923_s9, %s2640_s19  ;;  %s2645_s8 = sshll.u32 %s2740_s30, 4  ;;  %s2646_s8 = int_to_ptr.vmem [resolvable:$false] %s2645_s8 }
  0x76   : > { %s2647_s12 = scalar_lea.vmem %s2646_s8, 1024  ;;  %p2648_p6 = scmp.lt.s32.totalorder %s2923_s9, %s2646_s8 }
  0x77   : > { %p2643_p5 = pnand %p2641_p4, %p2627_p8  ;;  %p2649_p9 = scmp.lt.s32.totalorder %s2647_s12, %s2640_s19 }
  0x79   : > { %p2644_p1 = pneg %p2643_p5  ;;  %p2650_p10 = por %p2649_p9, %p2648_p6 }
  0x7b   : > { %p2651_p11 = pnand %p2650_p10, %p2644_p1 }
  0x7d   : > { %2654 = shalt.err (!%p2651_p11)
}
  0x7e   : > { %s2741_s13 = smov 128   ;;  %s2742_s15 = smov 8  }
  0x7f   : > { %2485 = dma.hbm_to_vmem [thread:$0]  (!%p2919_p3), %s2917_s7, 512, %s2923_s9, %s2925_s11, %s2741_s13, %s2741_s13, %s2742_s15  }
  0x80   : > { %p4944_p8 = scmp.ne.s32.totalorder %s4930_s29, 0 }
  0x81   : > { %s2956_s25 = sand.u32 (!%p4944_p8), 1, %s2725_s22  }
  0x82   : > { %278 = sbr.rel (%p4944_p8) target bundleno = 601 (0x259), region = 44  ;;  %s4906_s26 = sshll.u32 (!%p4944_p8), %s2956_s25, 5 }
  0x83   : > { %s281_s27 = scalar_lea.sflag (!%p4944_p8), [#allocation3], %s2956_s25  ;;  %s2962_s19 = scalar_lea.vmem (!%p4944_p8), [#allocation2], %s4906_s26 }
  0x89   : > { %2700 = dma.done.wait (%p2899_p13), %s281_s27, 512  }
  0x8a   : > { %2702 = vsyncadd (%p2899_p13), %s281_s27, 4294966784  ;;  %p4945_p6 = scmp.eq.s32.totalorder %s2811_s28, 0 }
  0x8c   : > { %2704 = dma.done.wait (%p4945_p6), [#allocation5], 16   ;;  %p4946_p1 = pmov %p4945_p6 }
  0x8e   : > { %2706 = vsyncadd (%p4946_p1), [#allocation5], 4294967280  ;;  %p4947_p3 = pmov %p4946_p1 }
  0x8f   : > { %p4948_p7 = pmov %p4946_p1 }
  0x90   : > { %2708 = dma.done.wait (%p4947_p3), [#allocation8], 48  }
  0x91   : > { %2710 = vsyncadd (%p4948_p7), [#allocation8], 4294967248  ;;  %p4949_p12 = pmov %p4946_p1 }
  0x92   : > { %p4950_p0 = pmov %p4946_p1 }
  0x93   : > { %2712 = dma.done.wait (%p4949_p12), [#allocation11], 32  }
  0x94   : > { %2714 = vsyncadd (%p4950_p0), [#allocation11], 4294967264 }
  0x95   : > { %309 = sfence }
  0x96   : > { %s357_s29 = sld [smem:[#allocation6]]  ;;  %s2154_s17 = sld [smem:[#allocation6 + $0x1]]  ;;  %v2981_v0 = vld [vmem:[%s2962_s19] sm:$0xff]  ;;  %v2984_v1 = vld [vmem:[%s2962_s19 + $0x8] sm:$0xff]  ;;  %v2987_v2 = vld [vmem:[%s2962_s19 + $0x10] sm:$0xff]  ;;  %v334_v16 = vlaneseq }
  0x97   : > { %s2155_s7 = sld [smem:[#allocation6 + $0x2]]  ;;  %s2156_s9 = sld [smem:[#allocation6 + $0x3]]  ;;  %v2990_v4 = vld [vmem:[%s2962_s19 + $0x18] sm:$0xff] }
  0x98   : > { %s372_s10 = sld [smem:[#allocation7]]  ;;  %s2996_s11 = sld [smem:[#allocation6 + $0x4]]  ;;  %v3009_v18 = vshrl.u32 %v334_v16, 7 }
  0x99   : > { %s2998_s30 = sld [smem:[#allocation6 + $0x5]]  ;;  %s2219_s8 = sld [smem:[#allocation6 + $0x8]] }
  0x9a   : > { %s2220_s12 = sld [smem:[#allocation6 + $0x9]]  ;;  %s2221_s13 = sld [smem:[#allocation6 + $0xa]]  ;;  %vm341_vm0 = vcmp.ge.s32.totalorder %v3009_v18, 2  ;;  %vm338_vm1 = vcmp.ge.s32.totalorder %v3009_v18, 3  ;;  %vm344_vm2 = vcmp.ge.s32.totalorder %v3009_v18, 1  ;;  %vm347_vm3 = vcmp.lt.s32.totalorder %v3009_v18, 7 }
  0x9b   : > { %s3002_s15 = sld [smem:[#allocation6 + $0xb]]  ;;  %s4915_s27 = smov 2   ;;  %vm348_vm4 = vcmp.lt.s32.totalorder %v3009_v18, 6  ;;  %vm349_vm5 = vcmp.lt.s32.totalorder %v3009_v18, 5 }
  0x9c   : > { %v358_v3 = vstv %s357_s29  ;;  %v361_v6 = vstv %s2154_s17  ;;  %s4911_s29 = smov 3   ;;  %s3011_s17 = sld [smem:[#allocation6 + $0x6]] }
  0x9d   : > { %v359_v5 = vmul.f32 %v358_v3, %v2981_v0  ;;  %v365_v7 = vstv %s2155_s7  ;;  %v362_v8 = vmul.f32 %v2984_v1, %v361_v6  ;;  %v369_v10 = vstv %s2156_s9  ;;  %s4909_s7 = smov 127   ;;  %s4907_s9 = smov 1  }
  0x9e   : > { %v366_v9 = vmul.f32 %v2987_v2, %v365_v7  ;;  %v370_v12 = vmul.f32 %v2990_v4, %v369_v10  ;;  %v373_v14 = vstv %s372_s10  ;;  %v561_v21 = vstv %s2996_s11  ;;  %s3022_s10 = sld [smem:[#allocation6 + $0x7]]  ;;  %s2254_s26 = sld [smem:[#allocation6 + $0xc]] }
  0x9f   : > { %v363_v11 = vadd.f32 %v362_v8, %v359_v5  ;;  %v564_v22 = vstv %s2998_s30  ;;  %v764_v23 = vstv %s2219_s8  ;;  %s4913_s11 = smov 126   ;;  %v562_v30 = vmul.f32 %v561_v21, %v2981_v0  ;;  %s3034_s30 = sld [smem:[#allocation6 + $0xe]] }
  0xa0   : > { %v767_v24 = vstv %s2220_s12  ;;  %v771_v25 = vstv %s2221_s13  ;;  %v765_v26 = vmul.f32 %v764_v23, %v2981_v0  ;;  %v565_v33 = vmul.f32 %v2984_v1, %v564_v22  ;;  %s3045_s8 = sld [smem:[#allocation6 + $0xf]]  ;;  %s3057_s12 = sld [smem:[#allocation7 + $0x1]] }
  0xa1   : > { %v367_v13 = vadd.f32 %v366_v9, %v363_v11  ;;  %v768_v27 = vmul.f32 %v2984_v1, %v767_v24  ;;  %v772_v28 = vmul.f32 %v2987_v2, %v771_v25  ;;  %v775_v29 = vstv %s3002_s15  ;;  %s4952_s13 = smov 1   ;;  %s2289_s15 = sld [smem:[#allocation6 + $0x10]] }
  0xa2   : > { %v568_v35 = vstv %s3011_s17  ;;  %v776_v36 = vmul.f32 %v2990_v4, %v775_v29  ;;  %v566_v39 = vadd.f32 %v565_v33, %v562_v30  ;;  %s2290_s17 = sld [smem:[#allocation6 + $0x11]]  ;;  %s3134_s0 = sld [smem:[#allocation6 + $0x1a]] }
  0xa3   : > { %v371_v15 = vadd.f32 %v370_v12, %v367_v13  ;;  %v769_v34 = vadd.f32 %v768_v27, %v765_v26  ;;  %v569_v40 = vmul.f32 %v2987_v2, %v568_v35  ;;  %s4954_s1 = smov 125   ;;  %s3417_s2 = sld [smem:[#allocation9 + $0x39]] }
  0xa4   : > { %v572_v41 = vstv %s3022_s10  ;;  %v967_v43 = vstv %s2254_s26  ;;  %s4951_s26 = smov 127   ;;  %s2292_s10 = sld [smem:[#allocation6 + $0x13]] }
  0xa5   : > { %v3000_v17 = vadd.f32 %v373_v14, %v371_v15  ;;  %v773_v37 = vadd.f32 %v772_v28, %v769_v34  ;;  %v573_v45 = vmul.f32 %v2990_v4, %v572_v41  ;;  %v968_v46 = vmul.f32 %v967_v43, %v2981_v0  ;;  %s3423_s3 = sld [smem:[#allocation9 + $0x50]]  ;;  %s3452_s5 = sld [smem:[#allocation9 + $0x11]] }
  0xa6   : > { %v974_v48 = vstv %s3034_s30  ;;  %v570_v51 = vadd.f32 %v569_v40, %v566_v39  ;;  %v978_v52 = vstv %s3045_s8  ;;  %v576_v59 = vstv %s3057_s12  ;;  %s3112_s30 = sld [smem:[#allocation6 + $0x14]]  ;;  %s3114_s8 = sld [smem:[#allocation6 + $0x15]] }
  0xa7   : > { %441 = vrot.lane.b32.xlu1 %v3000_v17, %s4915_s27  ;;  %434 = vrot.lane.b32.xlu0 %v3000_v17, %s4911_s29  ;;  %v394_v19 = vrot.slane %v3000_v17, 6  ;;  %v375_v20 = vrot.slane %v3000_v17, 5  ;;  %v414_v38 = vrot.slane %v3000_v17, 7  ;;  %v3059_v42 = vadd.f32 %v776_v36, %v773_v37  ;;  %s3116_s12 = sld [smem:[#allocation6 + $0x16]]  ;;  %s3446_s4 = sld [smem:[#allocation9 + $0x68]] }
  0xa8   : > { %v480_v50 = vrot.slane %v3000_v17, 1  ;;  %v975_v53 = vmul.f32 %v2987_v2, %v974_v48  ;;  %v979_v55 = vmul.f32 %v2990_v4, %v978_v52  ;;  %v500_v57 = vrot.slane %v3000_v17, 2  ;;  %s3477_s16 = sld [smem:[#allocation9 + $0x78]]  ;;  %s3861_s22 = sld [smem:[#allocation9 + $0x6a]] }
  0xa9   : > { %v3038_v31 = vsel %vm341_vm0, %v394_v19, 0.0  ;;  %v3042_v32 = vsel %vm338_vm1, %v375_v20, 0.0  ;;  %v3071_v49 = vsel %vm344_vm2, %v414_v38, 0.0  ;;  %v574_v58 = vadd.f32 %v573_v45, %v570_v51  ;;  %s3485_s23 = sld [smem:[#allocation9 + $0x90]]  ;;  %p4958_p2 = scmp.ne.s32.totalorder %s4940_s18, 0 }
  0xaa   : > { %v3084_v56 = vsel %vm347_vm3, %v480_v50, 0.0  ;;  %v3097_v62 = vsel %vm348_vm4, %v500_v57, 0.0  ;;  %v520_v63 = vrot.slane %v3000_v17, 3  ;;  %v1170_v9 = vstv %s2289_s15  ;;  %s3146_s15 = sld [smem:[#allocation6 + $0x1b]] }
  0xab   : > { %459 = vrot.lane.b32.xlu1 %v3000_v17, %s4909_s7  ;;  %448 = vrot.lane.b32.xlu0 %v3000_v17, %s4907_s9  ;;  %s2255_s9 = sld [smem:[#allocation6 + $0xd]]  ;;  %s4917_s7 = smov 125   ;;  %v3100_v3 = vadd.f32 %v576_v59, %v574_v58  ;;  %v1173_v10 = vstv %s2290_s17  ;;  %v1171_v11 = vmul.f32 %v1170_v9, %v2981_v0  ;;  %v1181_v15 = vstv %s2292_s10 }
  0xac   : > { %v3109_v5 = vsel %vm349_vm5, %v520_v63, 0.0  ;;  %v1174_v12 = vmul.f32 %v2984_v1, %v1173_v10  ;;  %v1182_v20 = vmul.f32 %v2990_v4, %v1181_v15  ;;  %v1373_v24 = vstv %s3112_s30  ;;  %s4955_s17 = smov 126   ;;  %s2395_s10 = sld [smem:[#allocation6 + $0x1d]] }
  0xad   : > { %v578_v6 = vrot.slane %v3100_v3, 5  ;;  %v597_v8 = vrot.slane %v3100_v3, 6  ;;  %v617_v22 = vrot.slane %v3100_v3, 7  ;;  %v1376_v25 = vstv %s3114_s8  ;;  %s2397_s30 = sld [smem:[#allocation6 + $0x1f]]  ;;  %s2157_s8 = sld [smem:[#allocation9 + $0x8]] }
  0xae   : > { %v1175_v19 = vadd.f32 %v1174_v12, %v1171_v11  ;;  %v1380_v26 = vstv %s3116_s12  ;;  %v1374_v29 = vmul.f32 %v1373_v24, %v2981_v0  ;;  %v1377_v30 = vmul.f32 %v2984_v1, %v1376_v25  ;;  %s380_s12 = sld [smem:[#allocation9]] }
  0xaf   : > { %473 = vrot.lane.b32.xlu1 %v3000_v17, %s4917_s7  ;;  %466 = vrot.lane.b32.xlu0 %v3000_v17, %s4913_s11  ;;  %v3126_v7 = vsel %vm338_vm1, %v578_v6, 0.0  ;;  %v3143_v21 = vsel %vm341_vm0, %v597_v8, 0.0  ;;  %v3162_v33 = vsel %vm344_vm2, %v617_v22, 0.0  ;;  %v1381_v34 = vmul.f32 %v2987_v2, %v1380_v26 }
  0xb0   : > { %v1378_v36 = vadd.f32 %v1377_v30, %v1374_v29  ;;  %v1583_v40 = vstv %s3134_s0  ;;  %v1587_v45 = vstv %s3146_s15  ;;  %s2223_s0 = sld [smem:[#allocation7 + $0x2]]  ;;  %v703_v8 = vrot.slane %v3100_v3, 2  ;;  %s3337_s15 = sld [smem:[#allocation9 + $0x10]] }
  0xb1   : > { %v970_v44 = vstv %s2255_s9  ;;  %s2291_s9 = sld [smem:[#allocation6 + $0x12]]  ;;  %v1588_v48 = vmul.f32 %v2990_v4, %v1587_v45 }
  0xb2   : > { %v971_v47 = vmul.f32 %v2984_v1, %v970_v44  ;;  %v1382_v41 = vadd.f32 %v1381_v34, %v1378_v36  ;;  %v1584_v44 = vmul.f32 %v2987_v2, %v1583_v40 }
  0xb3   : > { %396 = vrot.lane.b32.xlu1 %v3038_v31, %s4915_s27  ;;  %377 = vrot.lane.b32.xlu0 %v3042_v32, %s4911_s29  ;;  %s3118_s29 = sld [smem:[#allocation6 + $0x17]]  ;;  %v1790_v59 = vstv %s2397_s30  ;;  %s3361_s30 = sld [smem:[#allocation9 + $0x28]] }
  0xb4   : > { %v972_v54 = vadd.f32 %v971_v47, %v968_v46  ;;  %v1791_v6 = vmul.f32 %v2990_v4, %v1790_v59 }
  0xb6   : > { %v976_v60 = vadd.f32 %v975_v53, %v972_v54  ;;  %v1782_v54 = vstv %s2395_s10  ;;  %v779_v9 = vstv %s2223_s0  ;;  %s3348_s10 = sld [smem:[#allocation9 + $0x20]] }
  0xb7   : > { %407 = vrot.lane.b32.xlu1 %v3038_v31, %s4913_s11  ;;  %387 = vrot.lane.b32.xlu0 %v3042_v32, %s4917_s7  ;;  %v1177_v13 = vstv %s2291_s9  ;;  %s4956_s9 = smov 2   ;;  %v1783_v57 = vmul.f32 %v2984_v1, %v1782_v54  ;;  %v3215_v11 = vadd.f32 %v779_v9, %v3059_v42  ;;  %s3363_s0 = sld [smem:[#allocation9 + $0x38]] }
  0xb8   : > { %v3093_v61 = vadd.f32 %v979_v55, %v976_v60  ;;  %v1178_v14 = vmul.f32 %v2987_v2, %v1177_v13  ;;  %v683_v55 = vrot.slane %v3100_v3, 1 }
  0xb9   : > { %v1384_v27 = vstv %s3118_s29  ;;  %s2394_s29 = sld [smem:[#allocation6 + $0x1c]]  ;;  %v781_v13 = vrot.slane %v3215_v11, 5  ;;  %v886_v22 = vrot.slane %v3215_v11, 1  ;;  %v906_v24 = vrot.slane %v3215_v11, 2 }
  0xba   : > { %v1179_v23 = vadd.f32 %v1178_v14, %v1175_v19  ;;  %v1385_v37 = vmul.f32 %v2990_v4, %v1384_v27  ;;  %v723_v4 = vrot.slane %v3100_v3, 3  ;;  %v800_v14 = vrot.slane %v3215_v11, 6 }
  0xbb   : > { %427 = vrot.lane.b32.xlu1 %v3071_v49, %s4951_s26  ;;  %416 = vrot.lane.b32.xlu0 %v3071_v49, %s4952_s13  ;;  %v3232_v42 = vsel %vm338_vm1, %v781_v13, 0.0  ;;  %v820_v19 = vrot.slane %v3215_v11, 7  ;;  %v3280_v26 = vsel %vm348_vm4, %v906_v24, 0.0  ;;  %v926_v27 = vrot.slane %v3215_v11, 3 }
  0xbc   : > { %v3156_v28 = vadd.f32 %v1182_v20, %v1179_v23  ;;  %v3176_v46 = vadd.f32 %v1385_v37, %v1382_v41  ;;  %v3223_v12 = vsel %vm349_vm5, %v723_v4, 0.0  ;;  %v3241_v15 = vsel %vm341_vm0, %v800_v14, 0.0 }
  0xbd   : > { %v3250_v20 = vsel %vm344_vm2, %v820_v19, 0.0  ;;  %v3271_v23 = vsel %vm347_vm3, %v886_v22, 0.0  ;;  %v3292_v30 = vsel %vm349_vm5, %v926_v27, 0.0 }
  0xbf   : > { %493 = vrot.lane.b32.xlu1 %v3084_v56, %s4951_s26  ;;  %482 = vrot.lane.b32.xlu0 %v3084_v56, %s4952_s13  ;;  %v1779_v52 = vstv %s2394_s29  ;;  %s3346_s29 = sld [smem:[#allocation7 + $0x4]] }
  0xc0   : > { %v1780_v53 = vmul.f32 %v1779_v52, %v2981_v0 }
  0xc2   : > { %v1784_v63 = vadd.f32 %v1783_v57, %v1780_v53 }
  0xc3   : > { %513 = vrot.lane.b32.xlu1 %v3097_v62, %s4913_s11  ;;  %502 = vrot.lane.b32.xlu0 %v3097_v62, %s4915_s27  ;;  %s4953_s11 = smov 3   ;;  %s2359_s27 = sld [smem:[#allocation6 + $0x18]] }
  0xc7   : > { %533 = vrot.lane.b32.xlu1 %v3109_v5, %s4917_s7  ;;  %522 = vrot.lane.b32.xlu0 %v3109_v5, %s4953_s11  ;;  %s3132_s7 = sld [smem:[#allocation6 + $0x19]] }
  0xc9   : > { %v1576_v35 = vstv %s2359_s27  ;;  %s2396_s27 = sld [smem:[#allocation6 + $0x1e]] }
  0xca   : > { %v1577_v38 = vmul.f32 %v1576_v35, %v2981_v0  ;;  %v3200_v0 = vsel %vm347_vm3, %v683_v55, 0.0 }
  0xcb   : > { %590 = vrot.lane.b32.xlu1 %v3126_v7, %s4954_s1  ;;  %580 = vrot.lane.b32.xlu0 %v3126_v7, %s4953_s11 }
  0xcd   : > { %v1579_v39 = vstv %s3132_s7  ;;  %s2258_s7 = sld [smem:[#allocation7 + $0x3]] }
  0xce   : > { %v1580_v43 = vmul.f32 %v2984_v1, %v1579_v39 }
  0xcf   : > { %610 = vrot.lane.b32.xlu1 %v3143_v21, %s4955_s17  ;;  %599 = vrot.lane.b32.xlu0 %v3143_v21, %s4956_s9  ;;  %v1786_v58 = vstv %s2396_s27  ;;  %s3350_s27 = sld [smem:[#allocation9 + $0x18]] }
  0xd0   : > { %v1581_v47 = vadd.f32 %v1580_v43, %v1577_v38  ;;  %v1787_v60 = vmul.f32 %v2987_v2, %v1786_v58  ;;  %v3211_v2 = vsel %vm348_vm4, %v703_v8, 0.0  ;;  %v1185_v8 = vstv %s3346_s29  ;;  %s3406_s29 = sld [smem:[#allocation9 + $0x9]] }
  0xd1   : > { %v3400_v24 = vadd.f32 %v1185_v8, %v3156_v28 }
  0xd2   : > { %v1585_v50 = vadd.f32 %v1584_v44, %v1581_v47  ;;  %v1788_v1 = vadd.f32 %v1787_v60, %v1784_v63  ;;  %v3340_v44 = vand.u32 127, %v334_v16  ;;  %v381_v16 = vstv %s380_s12  ;;  %s3392_s12 = sld [smem:[#allocation9 + $0x40]] }
  0xd3   : > { %630 = vrot.lane.b32.xlu1 %v3162_v33, %s4951_s26  ;;  %619 = vrot.lane.b32.xlu0 %v3162_v33, %s4952_s13  ;;  %v982_v25 = vstv %s2258_s7  ;;  %s3374_s7 = sld [smem:[#allocation9 + $0x30]] }
  0xd4   : > { %v3183_v51 = vadd.f32 %v1588_v48, %v1585_v50  ;;  %v3203_v10 = vadd.f32 %v1791_v6, %v1788_v1  ;;  %v3284_v29 = vadd.f32 %v982_v25, %v3093_v61  ;;  %v384_v48 = vstv %s2157_s8  ;;  %s3386_s8 = sld [smem:[#allocation9 + $0x88]] }
  0xd5   : > { %vm339_vm6 = vcmp.ge.s32.totalorder %v3340_v44, 3  ;;  %v385_v52 = vmul.f32 %v384_v48, %v3042_v32  ;;  %v391_v32 = vstv %s3337_s15  ;;  %vm340_vm7 = vcmp.lt.s32.totalorder %v3340_v44, 125  ;;  %s3404_s15 = sld [smem:[#allocation9 + $0xa0]] }
  0xd6   : > { %v984_v34 = vrot.slane %v3284_v29, 5  ;;  %v1003_v35 = vrot.slane %v3284_v29, 6  ;;  %v1023_v37 = vrot.slane %v3284_v29, 7  ;;  %v1089_v50 = vrot.slane %v3284_v29, 1 }
  0xd7   : > { %644 = vrot.lane.b32.xlu1 %v3100_v3, %s4956_s9  ;;  %637 = vrot.lane.b32.xlu0 %v3100_v3, %s4953_s11  ;;  %v1109_v59 = vrot.slane %v3284_v29, 2  ;;  %vm342_vm8 = vcmp.ge.s32.totalorder %v3340_v44, 2  ;;  %v404_v1 = vstv %s3348_s10  ;;  %v400_v9 = vstv %s3350_s27  ;;  %s3408_s10 = sld [smem:[#allocation9 + $0x21]]  ;;  %s3410_s27 = sld [smem:[#allocation9 + $0x48]] }
  0xd8   : > { %v3301_v61 = vsel %vm338_vm1, %v984_v34, 0.0  ;;  %v3310_v36 = vsel %vm341_vm0, %v1003_v35, 0.0  ;;  %v3319_v38 = vsel %vm344_vm2, %v1023_v37, 0.0  ;;  %v3372_v58 = vsel %vm347_vm3, %v1089_v50, 0.0 }
  0xd9   : > { %v3396_v19 = vsel %vm348_vm4, %v1109_v59, 0.0  ;;  %v1129_v22 = vrot.slane %v3284_v29, 3  ;;  %vm343_vm9 = vcmp.lt.s32.totalorder %v3340_v44, 126  ;;  %v405_v25 = vmul.f32 %v404_v1, %v3038_v31 }
  0xda   : > { %v411_v48 = vstv %s3361_s30  ;;  %vm345_vm10 = vcmp.ge.s32.totalorder %v3340_v44, 1  ;;  %v424_v31 = vstv %s3363_s0  ;;  %v420_v50 = vstv %s3374_s7  ;;  %s3433_s30 = sld [smem:[#allocation9 + $0xb8]] }
  0xdb   : > { %662 = vrot.lane.b32.xlu1 %v3100_v3, %s4951_s26  ;;  %651 = vrot.lane.b32.xlu0 %v3100_v3, %s4952_s13  ;;  %vm346_vm11 = vcmp.lt.s32.totalorder %v3340_v44, 127  ;;  %s3440_s0 = sld [smem:[#allocation9 + $0x58]]  ;;  %v431_v1 = vstv %s3392_s12  ;;  %s3469_s12 = sld [smem:[#allocation7 + $0x5]] }
  0xdc   : > { %s3442_s7 = sld [smem:[#allocation9 + $0x60]] }
  0xdf   : > { %676 = vrot.lane.b32.xlu1 %v3100_v3, %s4954_s1  ;;  %669 = vrot.lane.b32.xlu0 %v3100_v3, %s4955_s17 }
  0xe3   : > { %696 = vrot.lane.b32.xlu1 %v3200_v0, %s4951_s26  ;;  %685 = vrot.lane.b32.xlu0 %v3200_v0, %s4952_s13 }
  0xe7   : > { %716 = vrot.lane.b32.xlu1 %v3211_v2, %s4955_s17  ;;  %705 = vrot.lane.b32.xlu0 %v3211_v2, %s4956_s9 }
  0xeb   : > { %736 = vrot.lane.b32.xlu1 %v3223_v12, %s4954_s1  ;;  %725 = vrot.lane.b32.xlu0 %v3223_v12, %s4953_s11 }
  0xef   : > { %793 = vrot.lane.b32.xlu1 %v3232_v42, %s4954_s1  ;;  %783 = vrot.lane.b32.xlu0 %v3232_v42, %s4953_s11 }
  0xf3   : > { %813 = vrot.lane.b32.xlu1 %v3241_v15, %s4955_s17  ;;  %802 = vrot.lane.b32.xlu0 %v3241_v15, %s4956_s9 }
  0xf7   : > { %833 = vrot.lane.b32.xlu1 %v3250_v20, %s4951_s26  ;;  %822 = vrot.lane.b32.xlu0 %v3250_v20, %s4952_s13 }
  0xfb   : > { %847 = vrot.lane.b32.xlu1 %v3215_v11, %s4956_s9  ;;  %840 = vrot.lane.b32.xlu0 %v3215_v11, %s4953_s11 }
  0xff   : > { %865 = vrot.lane.b32.xlu1 %v3215_v11, %s4951_s26  ;;  %854 = vrot.lane.b32.xlu0 %v3215_v11, %s4952_s13 }
 0x103   : > { %879 = vrot.lane.b32.xlu1 %v3215_v11, %s4954_s1  ;;  %872 = vrot.lane.b32.xlu0 %v3215_v11, %s4955_s17 }
 0x107   : > { %899 = vrot.lane.b32.xlu1 %v3271_v23, %s4951_s26  ;;  %888 = vrot.lane.b32.xlu0 %v3271_v23, %s4952_s13 }
 0x10b   : > { %919 = vrot.lane.b32.xlu1 %v3280_v26, %s4955_s17  ;;  %908 = vrot.lane.b32.xlu0 %v3280_v26, %s4956_s9 }
 0x10f   : > { %939 = vrot.lane.b32.xlu1 %v3292_v30, %s4954_s1  ;;  %928 = vrot.lane.b32.xlu0 %v3292_v30, %s4953_s11 }
 0x113   : > { %996 = vrot.lane.b32.xlu1 %v3301_v61, %s4954_s1  ;;  %986 = vrot.lane.b32.xlu0 %v3301_v61, %s4953_s11 }
 0x117   : > { %1016 = vrot.lane.b32.xlu1 %v3310_v36, %s4955_s17  ;;  %1005 = vrot.lane.b32.xlu0 %v3310_v36, %s4956_s9 }
 0x119   : > { %v3321_v39 = vpop.permute.xlu1 %441  ;;  %v3323_v40 = vpop.permute.xlu0 %434 }
 0x11b   : > { %1036 = vrot.lane.b32.xlu1 %v3319_v38, %s4951_s26  ;;  %1025 = vrot.lane.b32.xlu0 %v3319_v38, %s4952_s13 }
 0x11d   : > { %v3329_v41 = vpop.permute.xlu1 %459  ;;  %v3331_v43 = vpop.permute.xlu0 %448 }
 0x11f   : > { %1050 = vrot.lane.b32.xlu1 %v3284_v29, %s4956_s9  ;;  %1043 = vrot.lane.b32.xlu0 %v3284_v29, %s4953_s11 }
 0x121   : > { %v3342_v45 = vpop.permute.xlu1 %473  ;;  %v3344_v47 = vpop.permute.xlu0 %466 }
 0x123   : > { %1068 = vrot.lane.b32.xlu1 %v3284_v29, %s4951_s26  ;;  %1057 = vrot.lane.b32.xlu0 %v3284_v29, %s4952_s13 }
 0x125   : > { %v397_v53 = vpop.permute.xlu1 %396  ;;  %v378_v54 = vpop.permute.xlu0 %377 }
 0x126   : > { %v379_v55 = vsel %vm339_vm6, %v378_v54, 0.0  ;;  %v398_v4 = vsel %vm342_vm8, %v397_v53, 0.0  ;;  %v3430_v53 = vsel %vm349_vm5, %v1129_v22, 0.0  ;;  %v1187_v54 = vrot.slane %v3400_v24, 5 }
 0x127   : > { %v382_v57 = vmul.f32 %v381_v16, %v379_v55  ;;  %1082 = vrot.lane.b32.xlu1 %v3284_v29, %s4954_s1  ;;  %1075 = vrot.lane.b32.xlu0 %v3284_v29, %s4955_s17  ;;  %v401_v27 = vmul.f32 %v400_v9, %v398_v4  ;;  %v1206_v4 = vrot.slane %v3400_v24, 6 }
 0x128   : > { %v3459_v9 = vsel %vm338_vm1, %v1187_v54, 0.0 }
 0x129   : > { %v386_v60 = vadd.f32 %v385_v52, %v382_v57  ;;  %v408_v63 = vpop.permute.xlu1 %407  ;;  %v388_v6 = vpop.permute.xlu0 %387 }
 0x12a   : > { %v389_v13 = vsel %vm340_vm7, %v388_v6, 0.0  ;;  %v409_v28 = vsel %vm343_vm9, %v408_v63, 0.0  ;;  %v490_v63 = vstv %s3386_s8  ;;  %s3462_s8 = sld [smem:[#allocation9 + $0x1]] }
 0x12b   : > { %v392_v14 = vmul.f32 %v391_v32, %v389_v13  ;;  %1102 = vrot.lane.b32.xlu1 %v3372_v58, %s4951_s26  ;;  %1091 = vrot.lane.b32.xlu0 %v3372_v58, %s4952_s13  ;;  %v412_v55 = vmul.f32 %v411_v48, %v409_v28  ;;  %v510_v13 = vstv %s3404_s15  ;;  %v3480_v48 = vmul.f32 %v490_v63, %v3084_v56  ;;  %s3483_s15 = sld [smem:[#allocation9 + $0x70]] }
 0x12c   : > { %v627_v28 = vstv %s3417_s2  ;;  %v443_v56 = vsel %vm342_vm8, %v3321_v39, 0.0  ;;  %s3500_s2 = sld [smem:[#allocation9 + $0x19]]  ;;  %v3503_v54 = vmul.f32 %v510_v13, %v3097_v62  ;;  %v450_v62 = vsel %vm345_vm10, %v3331_v43, 0.0 }
 0x12d   : > { %v393_v34 = vadd.f32 %v392_v14, %v386_v60  ;;  %v428_v35 = vpop.permute.xlu1 %427  ;;  %v417_v37 = vpop.permute.xlu0 %416  ;;  %v425_v60 = vmul.f32 %v424_v31, %v3071_v49  ;;  %v594_v43 = vstv %s3452_s5  ;;  %s3568_s5 = sld [smem:[#allocation9 + $0x98]] }
 0x12e   : > { %v418_v52 = vsel %vm345_vm10, %v417_v37, 0.0  ;;  %v429_v49 = vsel %vm346_vm11, %v428_v35, 0.0  ;;  %v438_v35 = vstv %s3410_s27  ;;  %v436_v37 = vsel %vm339_vm6, %v3323_v40, 0.0  ;;  %s3540_s27 = sld [smem:[#allocation9 + $0xa8]] }
 0x12f   : > { %v402_v16 = vadd.f32 %v401_v27, %v393_v34  ;;  %1122 = vrot.lane.b32.xlu1 %v3396_v19, %s4955_s17  ;;  %1111 = vrot.lane.b32.xlu0 %v3396_v19, %s4956_s9  ;;  %v421_v8 = vmul.f32 %v420_v50, %v418_v52  ;;  %v587_v27 = vstv %s3406_s29  ;;  %v607_v34 = vstv %s3408_s10  ;;  %s3520_s29 = sld [smem:[#allocation9 + $0x80]]  ;;  %s3522_s10 = sld [smem:[#allocation9 + $0x29]] }
 0x130   : > { %v432_v31 = vmul.f32 %v431_v1, %v429_v49  ;;  %v445_v40 = vstv %s3423_s3  ;;  %v3497_v50 = vsel %vm341_vm0, %v1206_v4, 0.0  ;;  %v1226_v52 = vrot.slane %v3400_v24, 7  ;;  %s3510_s3 = sld [smem:[#allocation7 + $0x6]] }
 0x131   : > { %v406_v57 = vadd.f32 %v405_v25, %v402_v16  ;;  %v3435_v32 = vpop.permute.xlu1 %493  ;;  %v3437_v59 = vpop.permute.xlu0 %482  ;;  %v530_v1 = vstv %s3433_s30  ;;  %v3526_v49 = vmul.f32 %v627_v28, %v3162_v33  ;;  %v446_v4 = vmul.f32 %v445_v40, %v443_v56  ;;  %s3702_s30 = sld [smem:[#allocation9 + $0xa1]] }
 0x132   : > { %v477_v40 = vstv %s3477_s16  ;;  %s3575_s16 = sld [smem:[#allocation9 + $0xb0]] }
 0x133   : > { %v413_v6 = vadd.f32 %v412_v55, %v406_v57  ;;  %1142 = vrot.lane.b32.xlu1 %v3430_v53, %s4954_s1  ;;  %1131 = vrot.lane.b32.xlu0 %v3430_v53, %s4953_s11  ;;  %v588_v55 = vmul.f32 %v587_v27, %v3126_v7  ;;  %v439_v57 = vmul.f32 %v438_v35, %v436_v37  ;;  %v456_v7 = vstv %s3442_s7  ;;  %s3584_s7 = sld [smem:[#allocation9 + $0x49]] }
 0x134   : > { %v3537_v27 = vsel %vm344_vm2, %v1226_v52, 0.0  ;;  %v457_v35 = vmul.f32 %v456_v7, %v3000_v17  ;;  %v470_v52 = vstv %s3483_s15  ;;  %v603_v7 = vstv %s3500_s2  ;;  %s3610_s15 = sld [smem:[#allocation9 + $0x61]]  ;;  %s3629_s2 = sld [smem:[#allocation9 + $0xc0]] }
 0x135   : > { %v422_v14 = vadd.f32 %v421_v8, %v413_v6  ;;  %v3465_v22 = vpop.permute.xlu1 %513  ;;  %v3467_v25 = vpop.permute.xlu0 %502  ;;  %v3513_v6 = vmul.f32 %v607_v34, %v3143_v21  ;;  %v452_v8 = vstv %s3440_s0  ;;  %v463_v21 = vstv %s3446_s4  ;;  %s3543_s0 = sld [smem:[#allocation7 + $0x7]]  ;;  %s3553_s4 = sld [smem:[#allocation9 + $0x31]] }
 0x136   : > { %v453_v34 = vmul.f32 %v452_v8, %v450_v62  ;;  %v497_v62 = vstv %s3485_s23  ;;  %s3580_s23 = sld [smem:[#allocation9 + $0x41]] }
 0x137   : > { %v426_v16 = vadd.f32 %v425_v60, %v422_v14  ;;  %1199 = vrot.lane.b32.xlu1 %v3459_v9, %s4954_s1  ;;  %1189 = vrot.lane.b32.xlu0 %v3459_v9, %s4953_s11  ;;  %v584_v14 = vstv %s3462_s8  ;;  %s3602_s8 = sld [smem:[#allocation9 + $0x51]] }
 0x139   : > { %v433_v60 = vadd.f32 %v432_v31, %v426_v16  ;;  %v3506_v63 = vpop.permute.xlu1 %533  ;;  %v3508_v39 = vpop.permute.xlu0 %522  ;;  %v1388_v31 = vstv %s3469_s12  ;;  %v461_v16 = vsel %vm346_vm11, %v3329_v41, 0.0  ;;  %v468_v41 = vsel %vm343_vm9, %v3344_v47, 0.0  ;;  %s3604_s12 = sld [smem:[#allocation9 + $0x59]] }
 0x13a   : > { %v614_v47 = vstv %s3522_s10  ;;  %s3674_s10 = sld [smem:[#allocation9 + $0x79]] }
 0x13b   : > { %v440_v13 = vadd.f32 %v439_v57, %v433_v60  ;;  %1219 = vrot.lane.b32.xlu1 %v3497_v50, %s4955_s17  ;;  %1208 = vrot.lane.b32.xlu0 %v3497_v50, %s4956_s9 }
 0x13d   : > { %v447_v33 = vadd.f32 %v446_v4, %v440_v13  ;;  %v591_v37 = vpop.permute.xlu1 %590  ;;  %v581_v28 = vpop.permute.xlu0 %580  ;;  %v3566_v4 = vadd.f32 %v1388_v31, %v3176_v46  ;;  %v464_v13 = vmul.f32 %v463_v21, %v461_v16  ;;  %v471_v21 = vmul.f32 %v470_v52, %v468_v41 }
 0x13e   : > { %v592_v56 = vsel %vm340_vm7, %v591_v37, 0.0  ;;  %v582_v17 = vsel %vm339_vm6, %v581_v28, 0.0  ;;  %v1591_v37 = vstv %s3510_s3  ;;  %v475_v28 = vsel %vm340_vm7, %v3342_v45, 0.0  ;;  %s3643_s3 = sld [smem:[#allocation9 + $0x69]] }
 0x13f   : > { %v454_v57 = vadd.f32 %v453_v34, %v447_v33  ;;  %v595_v60 = vmul.f32 %v594_v43, %v592_v56  ;;  %v585_v8 = vmul.f32 %v584_v14, %v582_v17  ;;  %1239 = vrot.lane.b32.xlu1 %v3537_v27, %s4951_s26  ;;  %1228 = vrot.lane.b32.xlu0 %v3537_v27, %s4952_s13  ;;  %v486_v56 = vstv %s3520_s29  ;;  %s3662_s29 = sld [smem:[#allocation9 + $0x71]] }
 0x140   : > { %v484_v45 = vsel %vm345_vm10, %v3437_v59, 0.0  ;;  %v1390_v17 = vrot.slane %v3566_v4, 5  ;;  %v3595_v52 = vadd.f32 %v1591_v37, %v3183_v51 }
 0x141   : > { %v458_v43 = vadd.f32 %v457_v35, %v454_v57  ;;  %v589_v14 = vadd.f32 %v588_v55, %v585_v8  ;;  %v611_v34 = vpop.permute.xlu1 %610  ;;  %v600_v33 = vpop.permute.xlu0 %599  ;;  %v478_v57 = vmul.f32 %v477_v40, %v475_v28  ;;  %v495_v28 = vsel %vm346_vm11, %v3435_v32, 0.0 }
 0x142   : > { %v601_v46 = vsel %vm342_vm8, %v600_v33, 0.0  ;;  %v612_v16 = vsel %vm343_vm9, %v611_v34, 0.0  ;;  %v1409_v34 = vrot.slane %v3566_v4, 6  ;;  %v487_v33 = vmul.f32 %v486_v56, %v484_v45 }
 0x143   : > { %v465_v35 = vadd.f32 %v464_v13, %v458_v43  ;;  %v596_v55 = vadd.f32 %v595_v60, %v589_v14  ;;  %v604_v31 = vmul.f32 %v603_v7, %v601_v46  ;;  %1253 = vrot.lane.b32.xlu1 %v3400_v24, %s4956_s9  ;;  %1246 = vrot.lane.b32.xlu0 %v3400_v24, %s4953_s11  ;;  %v1794_v13 = vstv %s3543_s0  ;;  %s3691_s0 = sld [smem:[#allocation9 + $0x81]] }
 0x144   : > { %v517_v43 = vstv %s3540_s27  ;;  %v623_v14 = vstv %s3553_s4  ;;  %v615_v40 = vmul.f32 %v614_v47, %v612_v16  ;;  %v3619_v56 = vsel %vm338_vm1, %v1390_v17, 0.0  ;;  %s3685_s27 = sld [smem:[#allocation9 + $0x89]] }
 0x145   : > { %v472_v60 = vadd.f32 %v471_v21, %v465_v35  ;;  %v605_v8 = vadd.f32 %v604_v31, %v596_v55  ;;  %v631_v41 = vpop.permute.xlu1 %630  ;;  %v620_v7 = vpop.permute.xlu0 %619  ;;  %v3623_v47 = vadd.f32 %v1794_v13, %v3203_v10  ;;  %v506_v21 = vstv %s3568_s5  ;;  %s3708_s4 = sld [smem:[#allocation9 + $0xb9]]  ;;  %s3710_s5 = sld [smem:[#allocation9 + $0xa]] }
 0x146   : > { %v621_v59 = vsel %vm345_vm10, %v620_v7, 0.0  ;;  %v504_v32 = vsel %vm342_vm8, %v3467_v25, 0.0  ;;  %v526_v16 = vstv %s3575_s16  ;;  %v634_v17 = vstv %s3580_s23  ;;  %s3715_s16 = sld [smem:[#allocation9 + $0x22]]  ;;  %s3717_s23 = sld [smem:[#allocation9 + $0x91]] }
 0x147   : > { %v479_v51 = vadd.f32 %v478_v57, %v472_v60  ;;  %v609_v37 = vadd.f32 %v3513_v6, %v605_v8  ;;  %1271 = vrot.lane.b32.xlu1 %v3400_v24, %s4951_s26  ;;  %1260 = vrot.lane.b32.xlu0 %v3400_v24, %s4952_s13  ;;  %v1593_v6 = vrot.slane %v3595_v52, 5  ;;  %v624_v55 = vmul.f32 %v623_v14, %v621_v59 }
 0x148   : > { %v632_v57 = vsel %vm346_vm11, %v631_v41, 0.0  ;;  %v498_v60 = vmul.f32 %v497_v62, %v495_v28  ;;  %v641_v7 = vstv %s3584_s7  ;;  %v3647_v62 = vsel %vm341_vm0, %v1409_v34, 0.0  ;;  %s3730_s7 = sld [smem:[#allocation9 + $0x12]] }
 0x149   : > { %v488_v46 = vadd.f32 %v487_v33, %v479_v51  ;;  %v616_v35 = vadd.f32 %v615_v40, %v609_v37  ;;  %v645_v31 = vpop.permute.xlu1 %644  ;;  %v638_v45 = vpop.permute.xlu0 %637  ;;  %v1796_v41 = vrot.slane %v3623_v47, 5  ;;  %v507_v14 = vmul.f32 %v506_v21, %v504_v32 }
 0x14a   : > { %v639_v25 = vsel %vm339_vm6, %v638_v45, 0.0  ;;  %v635_v59 = vmul.f32 %v634_v17, %v632_v57  ;;  %v515_v37 = vsel %vm343_vm9, %v3465_v22, 0.0  ;;  %v648_v34 = vstv %s3602_s8  ;;  %s3732_s8 = sld [smem:[#allocation9 + $0x2]] }
 0x14b   : > { %v492_v10 = vadd.f32 %v3480_v48, %v488_v46  ;;  %v625_v8 = vadd.f32 %v624_v55, %v616_v35  ;;  %1402 = vrot.lane.b32.xlu1 %v3619_v56, %s4954_s1  ;;  %1392 = vrot.lane.b32.xlu0 %v3619_v56, %s4953_s11  ;;  %v3651_v48 = vsel %vm338_vm1, %v1593_v6, 0.0  ;;  %v646_v28 = vsel %vm342_vm8, %v645_v31, 0.0 }
 0x14c   : > { %v655_v6 = vstv %s3604_s12  ;;  %v642_v21 = vmul.f32 %v641_v7, %v639_v25  ;;  %v659_v55 = vstv %s3610_s15  ;;  %v524_v22 = vsel %vm339_vm6, %v3508_v39, 0.0  ;;  %s3738_s12 = sld [smem:[#allocation9 + $0x99]]  ;;  %s3742_s15 = sld [smem:[#allocation9 + $0x3a]] }
 0x14d   : > { %v499_v13 = vadd.f32 %v498_v60, %v492_v10  ;;  %v629_v51 = vadd.f32 %v3526_v49, %v625_v8  ;;  %v663_v33 = vpop.permute.xlu1 %662  ;;  %v652_v40 = vpop.permute.xlu0 %651  ;;  %v3678_v31 = vsel %vm338_vm1, %v1796_v41, 0.0  ;;  %v1612_v45 = vrot.slane %v3595_v52, 6 }
 0x14e   : > { %v653_v49 = vsel %vm345_vm10, %v652_v40, 0.0  ;;  %v518_v32 = vmul.f32 %v517_v43, %v515_v37  ;;  %v649_v57 = vmul.f32 %v648_v34, %v646_v28  ;;  %v531_v8 = vmul.f32 %v530_v1, %v3109_v5 }
 0x14f   : > { %v508_v46 = vadd.f32 %v507_v14, %v499_v13  ;;  %v636_v35 = vadd.f32 %v635_v59, %v629_v51  ;;  %1411 = vrot.lane.b32.xlu1 %v3647_v62, %s4956_s9  ;;  %1595 = vrot.lane.b32.xlu0 %v3651_v48, %s4953_s11  ;;  %v537_v7 = vstv %s3629_s2  ;;  %v660_v25 = vmul.f32 %v659_v55, %v3100_v3  ;;  %s3751_s2 = sld [smem:[#allocation9 + $0x1a]] }
 0x150   : > { %v527_v13 = vmul.f32 %v526_v16, %v524_v22  ;;  %v656_v59 = vmul.f32 %v655_v6, %v653_v49  ;;  %v666_v5 = vstv %s3643_s3  ;;  %v664_v1 = vsel %vm346_vm11, %v663_v33, 0.0  ;;  %s3753_s3 = sld [smem:[#allocation9 + $0xa9]] }
 0x151   : > { %v512_v17 = vadd.f32 %v3503_v54, %v508_v46  ;;  %v643_v39 = vadd.f32 %v642_v21, %v636_v35  ;;  %v677_v60 = vpop.permute.xlu1 %676  ;;  %v670_v10 = vpop.permute.xlu0 %669  ;;  %v535_v54 = vsel %vm340_vm7, %v3506_v63, 0.0  ;;  %v1815_v3 = vrot.slane %v3623_v47, 6 }
 0x152   : > { %v3706_v37 = vsel %vm341_vm0, %v1612_v45, 0.0  ;;  %v673_v63 = vstv %s3662_s29  ;;  %v671_v33 = vsel %vm343_vm9, %v670_v10, 0.0  ;;  %v538_v34 = vmul.f32 %v537_v7, %v535_v54  ;;  %s3765_s29 = sld [smem:[#allocation10]] }
 0x153   : > { %v519_v41 = vadd.f32 %v518_v32, %v512_v17  ;;  %v650_v14 = vadd.f32 %v649_v57, %v643_v39  ;;  %1798 = vrot.lane.b32.xlu1 %v3678_v31, %s4953_s11  ;;  %1605 = vrot.lane.b32.xlu0 %v3651_v48, %s4954_s1  ;;  %v667_v6 = vmul.f32 %v666_v5, %v664_v1  ;;  %v680_v35 = vstv %s3674_s10  ;;  %s3772_s10 = sld [smem:[#allocation9 + $0xb1]] }
 0x154   : > { %v678_v21 = vsel %vm340_vm7, %v677_v60, 0.0  ;;  %v3728_v55 = vsel %vm341_vm0, %v1815_v3, 0.0  ;;  %v674_v45 = vmul.f32 %v673_v63, %v671_v33  ;;  %v1429_v57 = vrot.slane %v3566_v4, 7 }
 0x155   : > { %v528_v43 = vadd.f32 %v527_v13, %v519_v41  ;;  %v657_v16 = vadd.f32 %v656_v59, %v650_v14  ;;  %v697_v51 = vpop.permute.xlu1 %696  ;;  %v686_v40 = vpop.permute.xlu0 %685  ;;  %v693_v39 = vstv %s3685_s27  ;;  %v681_v60 = vmul.f32 %v680_v35, %v678_v21  ;;  %s3780_s27 = sld [smem:[#allocation9 + $0x2a]] }
 0x156   : > { %v687_v7 = vsel %vm345_vm10, %v686_v40, 0.0  ;;  %v3759_v14 = vsel %vm344_vm2, %v1429_v57, 0.0  ;;  %v1632_v59 = vrot.slane %v3595_v52, 7  ;;  %v694_v54 = vmul.f32 %v693_v39, %v3200_v0 }
 0x157   : > { %v532_v28 = vadd.f32 %v531_v8, %v528_v43  ;;  %v661_v46 = vadd.f32 %v660_v25, %v657_v16  ;;  %1808 = vrot.lane.b32.xlu1 %v3678_v31, %s4954_s1  ;;  %1614 = vrot.lane.b32.xlu0 %v3706_v37, %s4956_s9  ;;  %v689_v8 = vstv %s3691_s0  ;;  %v713_v5 = vstv %s3702_s30  ;;  %s3784_s0 = sld [smem:[#allocation12]]  ;;  %s3789_s30 = sld [smem:[#allocation9 + $0xc1]] }
 0x158   : > { %v790_v1 = vstv %s3710_s5  ;;  %v690_v3 = vmul.f32 %v689_v8, %v687_v7  ;;  %v733_v43 = vstv %s3708_s4  ;;  %v810_v16 = vstv %s3715_s16  ;;  %s3799_s4 = sld [smem:[#allocation9 + $0x32]]  ;;  %s3803_s5 = sld [smem:[#allocation12 + $0x1]] }
 0x159   : > { %v3734_v22 = vadd.f32 %v538_v34, %v532_v28  ;;  %v668_v49 = vadd.f32 %v667_v6, %v661_v46  ;;  %v3736_v32 = vpop.permute.xlu1 %716  ;;  %v706_v17 = vpop.permute.xlu0 %705  ;;  %v700_v40 = vstv %s3717_s23  ;;  %v698_v63 = vsel %vm346_vm11, %v697_v51, 0.0  ;;  %s3807_s16 = sld [smem:[#allocation12 + $0x2]]  ;;  %s3809_s23 = sld [smem:[#allocation12 + $0x3]] }
 0x15a   : > { %v797_v0 = vstv %s3730_s7  ;;  %v787_v34 = vstv %s3732_s8  ;;  %v1835_v28 = vrot.slane %v3623_v47, 7  ;;  %v791_v6 = vmul.f32 %v790_v1, %v3232_v42  ;;  %s3823_s7 = sld [smem:[#allocation9 + $0x42]] }
 0x15b   : > { %v675_v10 = vadd.f32 %v674_v45, %v668_v49  ;;  %1817 = vrot.lane.b32.xlu1 %v3728_v55, %s4956_s9  ;;  %1422 = vrot.lane.b32.xlu0 %v3647_v62, %s4955_s17  ;;  %v709_v51 = vstv %s3738_s12  ;;  %v707_v46 = vsel %vm342_vm8, %v706_v17, 0.0  ;;  %v3793_v49 = vsel %vm344_vm2, %v1632_v59, 0.0  ;;  %s3825_s8 = sld [smem:[#allocation9 + $0x4a]]  ;;  %s3829_s12 = sld [smem:[#allocation10 + $0x1]] }
 0x15c   : > { %v701_v45 = vmul.f32 %v700_v40, %v698_v63  ;;  %v714_v17 = vmul.f32 %v713_v5, %v3211_v2  ;;  %v806_v2 = vstv %s3751_s2  ;;  %v3816_v59 = vsel %vm344_vm2, %v1835_v28, 0.0  ;;  %s3836_s2 = sld [smem:[#allocation12 + $0x5]] }
 0x15d   : > { %v682_v25 = vadd.f32 %v681_v60, %v675_v10  ;;  %v3755_v41 = vpop.permute.xlu1 %736  ;;  %v726_v13 = vpop.permute.xlu0 %725  ;;  %v830_v60 = vstv %s3742_s15  ;;  %v720_v5 = vstv %s3753_s3  ;;  %v718_v1 = vsel %vm343_vm9, %v3736_v32, 0.0  ;;  %s3834_s15 = sld [smem:[#allocation12 + $0x4]]  ;;  %s3842_s3 = sld [smem:[#allocation12 + $0x6]] }
 0x15e   : > { %v727_v32 = vsel %vm339_vm6, %v726_v13, 0.0  ;;  %v831_v13 = vmul.f32 %v830_v60, %v3250_v20  ;;  %v738_v60 = vsel %vm340_vm7, %v3755_v41, 0.0 }
 0x15f   : > { %1625 = vrot.lane.b32.xlu1 %v3706_v37, %s4955_s17  ;;  %v691_v33 = vadd.f32 %v690_v3, %v682_v25  ;;  %1431 = vrot.lane.b32.xlu0 %v3759_v14, %s4952_s13  ;;  %v710_v25 = vmul.f32 %v709_v51, %v707_v46  ;;  %v817_v51 = vstv %s3780_s27  ;;  %s3856_s27 = sld [smem:[#allocation9 + $0x52]] }
 0x161   : > { %v794_v35 = vpop.permute.xlu1 %793  ;;  %v784_v21 = vpop.permute.xlu0 %783  ;;  %v695_v57 = vadd.f32 %v694_v54, %v691_v33  ;;  %v734_v54 = vmul.f32 %v733_v43, %v3223_v12  ;;  %v811_v33 = vmul.f32 %v810_v16, %v3241_v15  ;;  %v729_v43 = vstv %s3772_s10  ;;  %s3854_s10 = sld [smem:[#allocation12 + $0x7]] }
 0x162   : > { %v795_v42 = vsel %vm340_vm7, %v794_v35, 0.0  ;;  %v785_v39 = vsel %vm339_vm6, %v784_v21, 0.0  ;;  %v721_v15 = vmul.f32 %v720_v5, %v718_v1  ;;  %v545_v35 = vstv %s3784_s0  ;;  %s3863_s0 = sld [smem:[#allocation9 + $0x5a]] }
 0x163   : > { %v798_v10 = vmul.f32 %v797_v0, %v795_v42  ;;  %v788_v8 = vmul.f32 %v787_v34, %v785_v39  ;;  %1828 = vrot.lane.b32.xlu1 %v3728_v55, %s4955_s17  ;;  %v702_v7 = vadd.f32 %v701_v45, %v695_v57  ;;  %1634 = vrot.lane.b32.xlu0 %v3793_v49, %s4952_s13  ;;  %v541_v0 = vstv %s3765_s29  ;;  %s3849_s29 = sld [smem:[#allocation9 + $0x62]] }
 0x164   : > { %v740_v21 = vstv %s3789_s30  ;;  %v542_v20 = vadd.f32 %v541_v0, %v3734_v22  ;;  %v553_v5 = vstv %s3807_s16  ;;  %v557_v1 = vstv %s3809_s23  ;;  %s3897_s30 = sld [smem:[#allocation9 + $0x72]]  ;;  %s3930_s16 = sld [smem:[#allocation9 + $0xb]] }
 0x165   : > { %v792_v3 = vadd.f32 %v791_v6, %v788_v8  ;;  %v814_v40 = vpop.permute.xlu1 %813  ;;  %v803_v63 = vpop.permute.xlu0 %802  ;;  %v711_v34 = vadd.f32 %v710_v25, %v702_v7  ;;  %v837_v22 = vstv %s3823_s7  ;;  %v844_v0 = vstv %s3825_s8  ;;  %s3933_s23 = sld [smem:[#allocation9 + $0x92]] }
 0x166   : > { %v804_v12 = vsel %vm342_vm8, %v803_v63, 0.0  ;;  %v815_v46 = vsel %vm343_vm9, %v814_v40, 0.0  ;;  %s3939_s7 = sld [smem:[#allocation9 + $0xa2]] }
 0x167   : > { %v799_v28 = vadd.f32 %v798_v10, %v792_v3  ;;  %v807_v6 = vmul.f32 %v806_v2, %v804_v12  ;;  %1837 = vrot.lane.b32.xlu1 %v3816_v59, %s4952_s13  ;;  %v715_v16 = vadd.f32 %v714_v17, %v711_v34  ;;  %1442 = vrot.lane.b32.xlu0 %v3759_v14, %s4951_s26  ;;  %v826_v10 = vstv %s3799_s4  ;;  %s3910_s4 = sld [smem:[#allocation9 + $0x8a]] }
 0x168   : > { %v730_v17 = vmul.f32 %v729_v43, %v727_v32  ;;  %v818_v7 = vmul.f32 %v817_v51, %v815_v46  ;;  %v549_v2 = vstv %s3803_s5  ;;  %v741_v34 = vmul.f32 %v740_v21, %v738_v60  ;;  %s3912_s5 = sld [smem:[#allocation9 + $0x82]] }
 0x169   : > { %v808_v45 = vadd.f32 %v807_v6, %v799_v28  ;;  %v834_v57 = vpop.permute.xlu1 %833  ;;  %v823_v42 = vpop.permute.xlu0 %822  ;;  %v722_v39 = vadd.f32 %v721_v15, %v715_v16  ;;  %v744_v12 = vstv %s3829_s12  ;;  %v543_v28 = vmax.f32 %v542_v20, 0.0  ;;  %s3943_s8 = sld [smem:[#allocation9 + $0x9a]]  ;;  %s3948_s12 = sld [smem:[#allocation9 + $0x13]] }
 0x16a   : > { %v824_v8 = vsel %vm345_vm10, %v823_v42, 0.0  ;;  %v835_v32 = vsel %vm346_vm11, %v834_v57, 0.0  ;;  %v748_v6 = vstv %s3834_s15  ;;  %v752_v15 = vstv %s3836_s2  ;;  %s3950_s15 = sld [smem:[#allocation9 + $0x3]] }
 0x16b   : > { %v812_v25 = vadd.f32 %v811_v33, %v808_v45  ;;  %1645 = vrot.lane.b32.xlu1 %v3793_v49, %s4951_s26  ;;  %v731_v3 = vadd.f32 %v730_v17, %v722_v39  ;;  %1449 = vrot.lane.b32.xlu0 %v3566_v4, %s4953_s11  ;;  %v827_v63 = vmul.f32 %v826_v10, %v824_v8  ;;  %v756_v51 = vstv %s3842_s3  ;;  %s3953_s2 = sld [smem:[#allocation9 + $0x23]]  ;;  %s3962_s3 = sld [smem:[#allocation9 + $0xaa]] }
 0x16c   : > { %v760_v45 = vstv %s3854_s10  ;;  %v838_v57 = vmul.f32 %v837_v22, %v835_v32  ;;  %v851_v39 = vstv %s3856_s27  ;;  %v869_v60 = vstv %s3861_s22  ;;  %s3906_s22 = sld [smem:[#allocation9 + $0x7a]] }
 0x16d   : > { %v819_v40 = vadd.f32 %v818_v7, %v812_v25  ;;  %v848_v41 = vpop.permute.xlu1 %847  ;;  %v841_v33 = vpop.permute.xlu0 %840  ;;  %v735_v43 = vadd.f32 %v734_v54, %v731_v3  ;;  %v862_v54 = vstv %s3849_s29  ;;  %v858_v7 = vstv %s3863_s0  ;;  %s3966_s29 = sld [smem:[#allocation9 + $0x1b]]  ;;  %s3969_s10 = sld [smem:[#allocation9 + $0xba]] }
 0x16e   : > { %v842_v21 = vsel %vm339_vm6, %v841_v33, 0.0  ;;  %v849_v20 = vsel %vm342_vm8, %v848_v41, 0.0  ;;  %v546_v25 = vmul.f32 %v545_v35, %v543_v28  ;;  %v554_v22 = vmul.f32 %v553_v5, %v543_v28  ;;  %s3977_s27 = sld [smem:[#allocation9 + $0xb2]]  ;;  %s3989_s0 = sld [smem:[#allocation9 + $0x2b]] }
 0x16f   : > { %v828_v16 = vadd.f32 %v827_v63, %v819_v40  ;;  %1652 = vrot.lane.b32.xlu1 %v3595_v52, %s4953_s11  ;;  %v742_v46 = vadd.f32 %v741_v34, %v735_v43  ;;  %1456 = vrot.lane.b32.xlu0 %v3566_v4, %s4956_s9  ;;  %v845_v40 = vmul.f32 %v844_v0, %v842_v21 }
 0x170   : > { %v863_v63 = vmul.f32 %v862_v54, %v3215_v11  ;;  %v558_v41 = vmul.f32 %v557_v1, %v543_v28  ;;  %v852_v35 = vmul.f32 %v851_v39, %v849_v20  ;;  %v876_v39 = vstv %s3897_s30  ;;  %s3992_s30 = sld [smem:[#allocation9 + $0x3b]] }
 0x171   : > { %v832_v42 = vadd.f32 %v831_v13, %v828_v16  ;;  %v866_v17 = vpop.permute.xlu1 %865  ;;  %v855_v10 = vpop.permute.xlu0 %854  ;;  %v745_v8 = vadd.f32 %v744_v12, %v742_v46  ;;  %v550_v13 = vmul.f32 %v549_v2, %v543_v28 }
 0x172   : > { %v856_v34 = vsel %vm345_vm10, %v855_v10, 0.0  ;;  %v867_v11 = vsel %vm346_vm11, %v866_v17, 0.0 }
 0x173   : > { %v839_v3 = vadd.f32 %v838_v57, %v832_v42  ;;  %1463 = vrot.lane.b32.xlu1 %v3566_v4, %s4952_s13  ;;  %v746_v33 = vmax.f32 %v745_v8, 0.0  ;;  %1848 = vrot.lane.b32.xlu0 %v3816_v59, %s4951_s26  ;;  %v859_v21 = vmul.f32 %v858_v7, %v856_v34  ;;  %v870_v8 = vmul.f32 %v869_v60, %v867_v11 }
 0x174   : > { %v883_v7 = vstv %s3906_s22  ;;  %v892_v60 = vstv %s3912_s5  ;;  %s3997_s22 = sld [smem:[#allocation9 + $0xc2]] }
 0x175   : > { %v846_v12 = vadd.f32 %v845_v40, %v839_v3  ;;  %v880_v0 = vpop.permute.xlu1 %879  ;;  %v873_v43 = vpop.permute.xlu0 %872  ;;  %v749_v2 = vmul.f32 %v748_v6, %v746_v33  ;;  %v753_v5 = vmul.f32 %v752_v15, %v746_v33  ;;  %v757_v32 = vmul.f32 %v756_v51, %v746_v33  ;;  %s4018_s5 = sld [smem:[#allocation10 + $0x2]] }
 0x176   : > { %v761_v16 = vmul.f32 %v760_v45, %v746_v33  ;;  %v881_v1 = vsel %vm340_vm7, %v880_v0, 0.0  ;;  %v874_v28 = vsel %vm343_vm9, %v873_v43, 0.0 }
 0x177   : > { %v853_v46 = vadd.f32 %v852_v35, %v846_v12  ;;  %1855 = vrot.lane.b32.xlu1 %v3623_v47, %s4953_s11  ;;  %v3920_v54 = vadd.f32 %v749_v2, %v546_v25  ;;  %v3922_v6 = vadd.f32 %v753_v5, %v550_v13  ;;  %v3924_v15 = vadd.f32 %v757_v32, %v554_v22 }
 0x178   : > { %v3926_v51 = vadd.f32 %v761_v16, %v558_v41  ;;  %1659 = vrot.lane.b32.xlu0 %v3595_v52, %s4956_s9  ;;  %v877_v3 = vmul.f32 %v876_v39, %v874_v28  ;;  %v896_v22 = vstv %s3910_s4  ;;  %v884_v34 = vmul.f32 %v883_v7, %v881_v1  ;;  %s4003_s4 = sld [smem:[#allocation9 + $0x33]] }
 0x179   : > { %v860_v45 = vadd.f32 %v859_v21, %v853_v46  ;;  %v900_v57 = vpop.permute.xlu1 %899  ;;  %v889_v42 = vpop.permute.xlu0 %888  ;;  %v897_v35 = vmul.f32 %v896_v22, %v3271_v23  ;;  %v993_v2 = vstv %s3930_s16  ;;  %v903_v5 = vstv %s3933_s23  ;;  %s4024_s16 = sld [smem:[#allocation9 + $0x43]]  ;;  %s4029_s23 = sld [smem:[#allocation12 + $0x8]] }
 0x17a   : > { %v901_v17 = vsel %vm346_vm11, %v900_v57, 0.0  ;;  %v890_v10 = vsel %vm345_vm10, %v889_v42, 0.0  ;;  %v916_v23 = vstv %s3939_s7  ;;  %v912_v21 = vstv %s3943_s8  ;;  %s4031_s7 = sld [smem:[#allocation12 + $0x9]]  ;;  %s4038_s8 = sld [smem:[#allocation9 + $0x4b]] }
 0x17b   : > { %v864_v20 = vadd.f32 %v863_v63, %v860_v45  ;;  %1862 = vrot.lane.b32.xlu1 %v3623_v47, %s4956_s9  ;;  %v893_v11 = vmul.f32 %v892_v60, %v890_v10  ;;  %v1000_v1 = vstv %s3948_s12  ;;  %v990_v28 = vstv %s3950_s15  ;;  %s4041_s12 = sld [smem:[#allocation12 + $0xa]]  ;;  %s4043_s15 = sld [smem:[#allocation12 + $0xb]] }
 0x17c   : > { %1666 = vrot.lane.b32.xlu0 %v3595_v52, %s4952_s13  ;;  %v994_v45 = vmul.f32 %v993_v2, %v3301_v61  ;;  %v904_v57 = vmul.f32 %v903_v5, %v901_v17  ;;  %v1013_v7 = vstv %s3953_s2  ;;  %v1009_v22 = vstv %s3966_s29  ;;  %s4052_s2 = sld [smem:[#allocation9 + $0x53]] }
 0x17d   : > { %v871_v25 = vadd.f32 %v870_v8, %v864_v20  ;;  %v920_v40 = vpop.permute.xlu1 %919  ;;  %v909_v13 = vpop.permute.xlu0 %908  ;;  %v1292_v8 = vrot.slane %v3400_v24, 1  ;;  %v917_v20 = vmul.f32 %v916_v23, %v3280_v26  ;;  %v923_v26 = vstv %s3962_s3  ;;  %s4054_s3 = sld [smem:[#allocation9 + $0x5b]] }
 0x17e   : > { %v921_v63 = vsel %vm343_vm9, %v920_v40, 0.0  ;;  %v910_v33 = vsel %vm342_vm8, %v909_v13, 0.0  ;;  %v936_v60 = vstv %s3969_s10  ;;  %s4063_s29 = sld [smem:[#allocation9 + $0x63]] }
 0x17f   : > { %v878_v41 = vadd.f32 %v877_v3, %v871_v25  ;;  %1474 = vrot.lane.b32.xlu1 %v3566_v4, %s4951_s26  ;;  %v913_v3 = vmul.f32 %v912_v21, %v910_v33  ;;  %v1014_v33 = vmul.f32 %v1013_v7, %v3310_v36  ;;  %v924_v5 = vmul.f32 %v923_v26, %v921_v63  ;;  %s4080_s10 = sld [smem:[#allocation9 + $0x6b]] }
 0x180   : > { %1278 = vrot.lane.b32.xlu0 %v3400_v24, %s4955_s17  ;;  %v937_v36 = vmul.f32 %v936_v60, %v3292_v30  ;;  %v1495_v63 = vrot.slane %v3566_v4, 1  ;;  %v943_v30 = vstv %s3997_s22  ;;  %s4113_s22 = sld [smem:[#allocation9 + $0x83]] }
 0x181   : > { %v885_v12 = vadd.f32 %v884_v34, %v878_v41  ;;  %v940_v0 = vpop.permute.xlu1 %939  ;;  %v929_v43 = vpop.permute.xlu0 %928 }
 0x182   : > { %v3975_v32 = vsel %vm340_vm7, %v940_v0, 0.0  ;;  %v930_v16 = vsel %vm339_vm6, %v929_v43, 0.0  ;;  %v932_v0 = vstv %s3977_s27  ;;  %s4092_s27 = sld [smem:[#allocation9 + $0x73]] }
 0x183   : > { %v894_v46 = vadd.f32 %v893_v11, %v885_v12  ;;  %1285 = vrot.lane.b32.xlu1 %v3400_v24, %s4954_s1  ;;  %v4014_v11 = vsel %vm347_vm3, %v1292_v8, 0.0 }
 0x184   : > { %1869 = vrot.lane.b32.xlu0 %v3623_v47, %s4952_s13 }
 0x185   : > { %v898_v42 = vadd.f32 %v897_v35, %v894_v46  ;;  %v997_v39 = vpop.permute.xlu1 %996  ;;  %v987_v10 = vpop.permute.xlu0 %986 }
 0x186   : > { %v998_v25 = vsel %vm340_vm7, %v997_v39, 0.0  ;;  %v988_v61 = vsel %vm339_vm6, %v987_v10, 0.0 }
 0x187   : > { %v905_v17 = vadd.f32 %v904_v57, %v898_v42  ;;  %v1001_v40 = vmul.f32 %v1000_v1, %v998_v25  ;;  %v991_v13 = vmul.f32 %v990_v28, %v988_v61  ;;  %1677 = vrot.lane.b32.xlu1 %v3595_v52, %s4951_s26  ;;  %v1020_v1 = vstv %s3989_s0  ;;  %s4102_s0 = sld [smem:[#allocation9 + $0x8b]] }
 0x188   : > { %1481 = vrot.lane.b32.xlu0 %v3566_v4, %s4955_s17  ;;  %v1033_v28 = vstv %s3992_s30  ;;  %v933_v57 = vmul.f32 %v932_v0, %v930_v16  ;;  %s4104_s30 = sld [smem:[#allocation9 + $0x7b]] }
 0x189   : > { %v914_v34 = vadd.f32 %v913_v3, %v905_v17  ;;  %v995_v41 = vadd.f32 %v994_v45, %v991_v13  ;;  %v1017_v35 = vpop.permute.xlu1 %1016  ;;  %v1006_v12 = vpop.permute.xlu0 %1005  ;;  %v1034_v17 = vmul.f32 %v1033_v28, %v3319_v38  ;;  %v4061_v3 = vsel %vm347_vm3, %v1495_v63, 0.0 }
 0x18a   : > { %v1018_v43 = vsel %vm343_vm9, %v1017_v35, 0.0  ;;  %v1007_v2 = vsel %vm342_vm8, %v1006_v12, 0.0  ;;  %v947_v38 = vstv %s4018_s5  ;;  %v959_v63 = vstv %s4041_s12  ;;  %s4129_s5 = sld [smem:[#allocation9 + $0xc]]  ;;  %s4163_s12 = sld [smem:[#allocation9 + $0x9b]] }
 0x18b   : > { %v918_v23 = vadd.f32 %v917_v20, %v914_v34  ;;  %v1002_v46 = vadd.f32 %v1001_v40, %v995_v41  ;;  %v1010_v21 = vmul.f32 %v1009_v22, %v1007_v2  ;;  %1488 = vrot.lane.b32.xlu1 %v3566_v4, %s4954_s1  ;;  %v1029_v20 = vstv %s4003_s4  ;;  %s4121_s4 = sld [smem:[#allocation9 + $0xa3]] }
 0x18c   : > { %1294 = vrot.lane.b32.xlu0 %v4014_v11, %s4952_s13  ;;  %v1021_v16 = vmul.f32 %v1020_v1, %v1018_v43  ;;  %v944_v40 = vmul.f32 %v943_v30, %v3975_v32  ;;  %v1040_v41 = vstv %s4024_s16  ;;  %v951_v32 = vstv %s4029_s23  ;;  %s4144_s16 = sld [smem:[#allocation9 + $0xbb]] }
 0x18d   : > { %v925_v45 = vadd.f32 %v924_v5, %v918_v23  ;;  %v1011_v42 = vadd.f32 %v1010_v21, %v1002_v46  ;;  %v1037_v39 = vpop.permute.xlu1 %1036  ;;  %v1026_v10 = vpop.permute.xlu0 %1025  ;;  %v955_v43 = vstv %s4031_s7  ;;  %v1698_v2 = vrot.slane %v3595_v52, 1  ;;  %s4147_s23 = sld [smem:[#allocation9 + $0x93]]  ;;  %s4157_s7 = sld [smem:[#allocation9 + $0x14]] }
 0x18e   : > { %v1038_v8 = vsel %vm346_vm11, %v1037_v39, 0.0  ;;  %v1027_v7 = vsel %vm345_vm10, %v1026_v10, 0.0  ;;  %v1047_v21 = vstv %s4038_s8  ;;  %v963_v28 = vstv %s4043_s15  ;;  %s4159_s8 = sld [smem:[#allocation9 + $0x4]] }
 0x18f   : > { %v934_v25 = vadd.f32 %v933_v57, %v925_v45  ;;  %v1015_v61 = vadd.f32 %v1014_v33, %v1011_v42  ;;  %1880 = vrot.lane.b32.xlu1 %v3623_v47, %s4951_s26  ;;  %v1030_v22 = vmul.f32 %v1029_v20, %v1027_v7  ;;  %v1041_v23 = vmul.f32 %v1040_v41, %v1038_v8  ;;  %s4175_s15 = sld [smem:[#allocation9 + $0x24]] }
 0x190   : > { %1684 = vrot.lane.b32.xlu0 %v3595_v52, %s4955_s17  ;;  %v1054_v39 = vstv %s4052_s2  ;;  %v1061_v30 = vstv %s4054_s3  ;;  %v1065_v20 = vstv %s4063_s29  ;;  %v4099_v7 = vsel %vm347_vm3, %v1698_v2, 0.0  ;;  %s4183_s2 = sld [smem:[#allocation9 + $0x1c]]  ;;  %s4187_s3 = sld [smem:[#allocation9 + $0xab]] }
 0x191   : > { %v938_v13 = vadd.f32 %v937_v36, %v934_v25  ;;  %v1022_v26 = vadd.f32 %v1021_v16, %v1015_v61  ;;  %v1051_v60 = vpop.permute.xlu1 %1050  ;;  %v1044_v34 = vpop.permute.xlu0 %1043  ;;  %v1312_v25 = vrot.slane %v3400_v24, 2  ;;  %v1066_v41 = vmul.f32 %v1065_v20, %v3284_v29  ;;  %s4190_s29 = sld [smem:[#allocation9 + $0x3c]] }
 0x192   : > { %v1052_v35 = vsel %vm342_vm8, %v1051_v60, 0.0  ;;  %v1045_v12 = vsel %vm339_vm6, %v1044_v34, 0.0  ;;  %v1515_v29 = vrot.slane %v3566_v4, 2 }
 0x193   : > { %v945_v33 = vadd.f32 %v944_v40, %v938_v13  ;;  %v1031_v0 = vadd.f32 %v1030_v22, %v1022_v26  ;;  %1691 = vrot.lane.b32.xlu1 %v3595_v52, %s4954_s1  ;;  %v1048_v8 = vmul.f32 %v1047_v21, %v1045_v12  ;;  %v1055_v22 = vmul.f32 %v1054_v39, %v1052_v35 }
 0x194   : > { %1497 = vrot.lane.b32.xlu0 %v4061_v3, %s4952_s13 }
 0x195   : > { %v948_v5 = vadd.f32 %v947_v38, %v945_v33  ;;  %v1035_v46 = vadd.f32 %v1034_v17, %v1031_v0  ;;  %v1069_v36 = vpop.permute.xlu1 %1068  ;;  %v1058_v1 = vpop.permute.xlu0 %1057 }
 0x196   : > { %v1070_v45 = vsel %vm346_vm11, %v1069_v36, 0.0  ;;  %v1059_v57 = vsel %vm345_vm10, %v1058_v1, 0.0  ;;  %v1079_v36 = vstv %s4092_s27  ;;  %s4214_s27 = sld [smem:[#allocation9 + $0xd]] }
 0x197   : > { %v949_v42 = vmax.f32 %v948_v5, 0.0  ;;  %v1042_v10 = vadd.f32 %v1041_v23, %v1035_v46  ;;  %1305 = vrot.lane.b32.xlu1 %v4014_v11, %s4951_s26  ;;  %v1062_v0 = vmul.f32 %v1061_v30, %v1059_v57  ;;  %v1901_v5 = vrot.slane %v3623_v47, 1 }
 0x198   : > { %1887 = vrot.lane.b32.xlu0 %v3623_v47, %s4955_s17  ;;  %v1086_v57 = vstv %s4104_s30  ;;  %s4232_s30 = sld [smem:[#allocation9 + $0xc3]] }
 0x199   : > { %v952_v16 = vmul.f32 %v951_v32, %v949_v42  ;;  %v956_v61 = vmul.f32 %v955_v43, %v949_v42  ;;  %v960_v17 = vmul.f32 %v959_v63, %v949_v42  ;;  %v964_v40 = vmul.f32 %v963_v28, %v949_v42  ;;  %v1083_v13 = vpop.permute.xlu1 %1082  ;;  %v1076_v26 = vpop.permute.xlu0 %1075 }
 0x19a   : > { %v1049_v60 = vadd.f32 %v1048_v8, %v1042_v10  ;;  %v1084_v34 = vsel %vm340_vm7, %v1083_v13, 0.0  ;;  %v1077_v38 = vsel %vm343_vm9, %v1076_v26, 0.0  ;;  %v1099_v28 = vstv %s4102_s0  ;;  %s4222_s0 = sld [smem:[#allocation9 + $0x34]] }
 0x19b   : > { %1894 = vrot.lane.b32.xlu1 %v3623_v47, %s4954_s1  ;;  %v4116_v12 = vadd.f32 %v952_v16, %v3920_v54  ;;  %v4119_v35 = vadd.f32 %v956_v61, %v3922_v6  ;;  %v4127_v32 = vadd.f32 %v960_v17, %v3924_v15  ;;  %v1072_v54 = vstv %s4080_s10  ;;  %s4211_s10 = sld [smem:[#allocation9 + $0x2c]] }
 0x19c   : > { %v1056_v33 = vadd.f32 %v1055_v22, %v1049_v60  ;;  %1700 = vrot.lane.b32.xlu0 %v4099_v7, %s4952_s13  ;;  %v4134_v6 = vsel %vm348_vm4, %v1312_v25, 0.0  ;;  %v4138_v23 = vadd.f32 %v964_v40, %v3926_v51  ;;  %v1073_v1 = vmul.f32 %v1072_v54, %v1070_v45 }
 0x19d   : > { %v1103_v43 = vpop.permute.xlu1 %1102  ;;  %v1092_v2 = vpop.permute.xlu0 %1091  ;;  %v4155_v51 = vsel %vm348_vm4, %v1515_v29, 0.0  ;;  %v4167_v39 = vsel %vm347_vm3, %v1901_v5, 0.0  ;;  %v1080_v30 = vmul.f32 %v1079_v36, %v1077_v38  ;;  %v1095_v25 = vstv %s4113_s22  ;;  %s4236_s22 = sld [smem:[#allocation9 + $0xe]] }
 0x19e   : > { %v1063_v46 = vadd.f32 %v1062_v0, %v1056_v33  ;;  %v1104_v15 = vsel %vm346_vm11, %v1103_v43, 0.0  ;;  %v1093_v21 = vsel %vm345_vm10, %v1092_v2, 0.0  ;;  %v1119_v16 = vstv %s4121_s4  ;;  %s4241_s4 = sld [smem:[#allocation9 + $0x44]] }
 0x19f   : > { %1508 = vrot.lane.b32.xlu1 %v4061_v3, %s4951_s26  ;;  %v1087_v61 = vmul.f32 %v1086_v57, %v1084_v34  ;;  %v1100_v40 = vmul.f32 %v1099_v28, %v3372_v58  ;;  %v1196_v13 = vstv %s4129_s5  ;;  %v1718_v60 = vrot.slane %v3595_v52, 2  ;;  %s4245_s5 = sld [smem:[#allocation10 + $0x3]] }
 0x1a0   : > { %v1067_v63 = vadd.f32 %v1066_v41, %v1063_v46  ;;  %1314 = vrot.lane.b32.xlu0 %v4134_v6, %s4956_s9  ;;  %v1096_v38 = vmul.f32 %v1095_v25, %v1093_v21  ;;  %v1120_v33 = vmul.f32 %v1119_v16, %v3396_v19  ;;  %v1106_v0 = vstv %s4147_s23  ;;  %s4263_s23 = sld [smem:[#allocation12 + $0xe]] }
 0x1a1   : > { %v1123_v42 = vpop.permute.xlu1 %1122  ;;  %v1112_v45 = vpop.permute.xlu0 %1111  ;;  %v1139_v29 = vstv %s4144_s16  ;;  %v1203_v43 = vstv %s4157_s7  ;;  %v1193_v2 = vstv %s4159_s8  ;;  %v1197_v5 = vmul.f32 %v1196_v13, %v3459_v9  ;;  %s4261_s16 = sld [smem:[#allocation12 + $0xd]]  ;;  %s4268_s7 = sld [smem:[#allocation12 + $0xf]] }
 0x1a2   : > { %v1074_v10 = vadd.f32 %v1073_v1, %v1067_v63  ;;  %v4171_v8 = vsel %vm343_vm9, %v1123_v42, 0.0  ;;  %v1113_v20 = vsel %vm342_vm8, %v1112_v45, 0.0  ;;  %v1115_v19 = vstv %s4163_s12  ;;  %s4277_s8 = sld [smem:[#allocation9 + $0x4c]] }
 0x1a3   : > { %1517 = vrot.lane.b32.xlu1 %v4155_v51, %s4956_s9  ;;  %v4219_v36 = vsel %vm348_vm4, %v1718_v60, 0.0  ;;  %v1332_v1 = vrot.slane %v3400_v24, 3  ;;  %v1107_v63 = vmul.f32 %v1106_v0, %v1104_v15  ;;  %v4229_v42 = vmul.f32 %v1139_v29, %v3430_v53  ;;  %s4285_s12 = sld [smem:[#allocation9 + $0x54]] }
 0x1a4   : > { %v1081_v17 = vadd.f32 %v1080_v30, %v1074_v10  ;;  %1903 = vrot.lane.b32.xlu0 %v4167_v39, %s4952_s13  ;;  %s4202_s13 = sld [smem:[#allocation9 + $0xb3]]  ;;  %v1216_v45 = vstv %s4175_s15  ;;  %v1116_v25 = vmul.f32 %v1115_v19, %v1113_v20  ;;  %v1212_v16 = vstv %s4183_s2  ;;  %s4292_s15 = sld [smem:[#allocation9 + $0x5c]] }
 0x1a5   : > { %v1143_v26 = vpop.permute.xlu1 %1142  ;;  %v1132_v22 = vpop.permute.xlu0 %1131  ;;  %v1535_v53 = vrot.slane %v3566_v4, 3  ;;  %v1921_v20 = vrot.slane %v3623_v47, 2  ;;  %v1217_v0 = vmul.f32 %v1216_v45, %v3497_v50  ;;  %v1223_v19 = vstv %s4211_s10  ;;  %s4294_s2 = sld [smem:[#allocation9 + $0x64]]  ;;  %s4315_s10 = sld [smem:[#allocation9 + $0x1d]] }
 0x1a6   : > { %v1088_v34 = vadd.f32 %v1087_v61, %v1081_v17  ;;  %v4194_v41 = vsel %vm340_vm7, %v1143_v26, 0.0  ;;  %v4198_v58 = vsel %vm339_vm6, %v1132_v22, 0.0  ;;  %v1126_v61 = vstv %s4187_s3  ;;  %s4300_s3 = sld [smem:[#allocation9 + $0x6c]] }
 0x1a7   : > { %1325 = vrot.lane.b32.xlu1 %v4134_v6, %s4955_s17  ;;  %v4249_v26 = vsel %vm349_vm5, %v1332_v1, 0.0  ;;  %v1236_v22 = vstv %s4190_s29  ;;  %v4275_v50 = vsel %vm349_vm5, %v1535_v53, 0.0  ;;  %s4309_s29 = sld [smem:[#allocation9 + $0x15]] }
 0x1a8   : > { %v1097_v54 = vadd.f32 %v1096_v38, %v1088_v34  ;;  %1711 = vrot.lane.b32.xlu0 %v4099_v7, %s4951_s26 }
 0x1a9   : > { %v1200_v46 = vpop.permute.xlu1 %1199  ;;  %v1190_v21 = vpop.permute.xlu0 %1189 }
 0x1aa   : > { %v1101_v28 = vadd.f32 %v1100_v40, %v1097_v54  ;;  %v1201_v9 = vsel %vm340_vm7, %v1200_v46, 0.0  ;;  %v1191_v57 = vsel %vm339_vm6, %v1190_v21, 0.0  ;;  %v1135_v29 = vstv %s4202_s13  ;;  %s4311_s13 = sld [smem:[#allocation9 + $0x5]] }
 0x1ab   : > { %v1204_v10 = vmul.f32 %v1203_v43, %v1201_v9  ;;  %v1194_v30 = vmul.f32 %v1193_v2, %v1191_v57  ;;  %1914 = vrot.lane.b32.xlu1 %v4167_v39, %s4951_s26  ;;  %s4253_s26 = sld [smem:[#allocation12 + $0xc]]  ;;  %v1127_v2 = vmul.f32 %v1126_v61, %v4171_v8  ;;  %v1399_v46 = vstv %s4214_s27  ;;  %s4340_s27 = sld [smem:[#allocation9 + $0xf]] }
 0x1ac   : > { %v1108_v15 = vadd.f32 %v1107_v63, %v1101_v28  ;;  %1720 = vrot.lane.b32.xlu0 %v4219_v36, %s4956_s9  ;;  %v1232_v63 = vstv %s4222_s0  ;;  %v4283_v8 = vsel %vm348_vm4, %v1921_v20, 0.0  ;;  %v1136_v9 = vmul.f32 %v1135_v29, %v4198_v58  ;;  %s4359_s0 = sld [smem:[#allocation9 + $0x7]] }
 0x1ad   : > { %v1198_v17 = vadd.f32 %v1197_v5, %v1194_v30  ;;  %v1220_v40 = vpop.permute.xlu1 %1219  ;;  %v1209_v13 = vpop.permute.xlu0 %1208  ;;  %v1146_v30 = vstv %s4232_s30  ;;  %v4303_v58 = vmul.f32 %v1399_v46, %v3619_v56  ;;  %v1243_v61 = vstv %s4241_s4  ;;  %s4363_s30 = sld [smem:[#allocation9 + $0x16]]  ;;  %s4381_s4 = sld [smem:[#allocation9 + $0x25]] }
 0x1ae   : > { %v1117_v60 = vadd.f32 %v1116_v25, %v1108_v15  ;;  %v1221_v34 = vsel %vm343_vm9, %v1220_v40, 0.0  ;;  %v1210_v38 = vsel %vm342_vm8, %v1209_v13, 0.0  ;;  %v1738_v56 = vrot.slane %v3595_v52, 3 }
 0x1af   : > { %v1205_v54 = vadd.f32 %v1204_v10, %v1198_v17  ;;  %v1213_v43 = vmul.f32 %v1212_v16, %v1210_v38  ;;  %1528 = vrot.lane.b32.xlu1 %v4155_v51, %s4955_s17  ;;  %v1237_v10 = vmul.f32 %v1236_v22, %v3537_v27  ;;  %v1224_v15 = vmul.f32 %v1223_v19, %v1221_v34 }
 0x1b0   : > { %v1121_v5 = vadd.f32 %v1120_v33, %v1117_v60  ;;  %1334 = vrot.lane.b32.xlu0 %v4249_v26, %s4953_s11  ;;  %v1602_v16 = vstv %s4236_s22  ;;  %v1150_v27 = vstv %s4245_s5  ;;  %v1147_v20 = vmul.f32 %v1146_v30, %v4194_v41  ;;  %s4403_s5 = sld [smem:[#allocation9 + $0x26]] }
 0x1b1   : > { %v1214_v21 = vadd.f32 %v1213_v43, %v1205_v54  ;;  %v1240_v1 = vpop.permute.xlu1 %1239  ;;  %v1229_v28 = vpop.permute.xlu0 %1228  ;;  %v1154_v22 = vstv %s4253_s26  ;;  %v1162_v29 = vstv %s4263_s23  ;;  %v1166_v41 = vstv %s4268_s7  ;;  %s4408_s26 = sld [smem:[#allocation9 + $0x1f]]  ;;  %s4423_s22 = sld [smem:[#allocation9 + $0x2e]] }
 0x1b2   : > { %v1128_v33 = vadd.f32 %v1127_v2, %v1121_v5  ;;  %v1241_v57 = vsel %vm346_vm11, %v1240_v1, 0.0  ;;  %v1230_v45 = vsel %vm345_vm10, %v1229_v28, 0.0  ;;  %v1250_v5 = vstv %s4277_s8  ;;  %s4427_s23 = sld [smem:[#allocation9 + $0x35]]  ;;  %s4436_s7 = sld [smem:[#allocation9 + $0x2f]] }
 0x1b3   : > { %v1218_v25 = vadd.f32 %v1217_v0, %v1214_v21  ;;  %1537 = vrot.lane.b32.xlu1 %v4275_v50, %s4953_s11  ;;  %v1233_v40 = vmul.f32 %v1232_v63, %v1230_v45  ;;  %v1158_v0 = vstv %s4261_s16  ;;  %v1244_v19 = vmul.f32 %v1243_v61, %v1241_v57  ;;  %s4412_s16 = sld [smem:[#allocation9 + $0x2d]] }
 0x1b4   : > { %v1137_v53 = vadd.f32 %v1136_v9, %v1128_v33  ;;  %1923 = vrot.lane.b32.xlu0 %v4283_v8, %s4956_s9  ;;  %v1257_v21 = vstv %s4285_s12  ;;  %v4336_v63 = vsel %vm349_vm5, %v1738_v56, 0.0  ;;  %s4338_s9 = sld [smem:[#allocation9 + $0x6]]  ;;  %v1264_v9 = vstv %s4292_s15  ;;  %s4438_s8 = sld [smem:[#allocation9 + $0x3d]] }
 0x1b5   : > { %v1225_v17 = vadd.f32 %v1224_v15, %v1218_v25  ;;  %v1254_v13 = vpop.permute.xlu1 %1253  ;;  %v1247_v38 = vpop.permute.xlu0 %1246  ;;  %v1268_v45 = vstv %s4294_s2  ;;  %v1275_v15 = vstv %s4300_s3  ;;  %v1406_v61 = vstv %s4309_s29  ;;  %s4441_s12 = sld [smem:[#allocation9 + $0x36]]  ;;  %s4452_s2 = sld [smem:[#allocation9 + $0x37]] }
 0x1b6   : > { %v1141_v60 = vadd.f32 %v4229_v42, %v1137_v53  ;;  %v1255_v34 = vsel %vm342_vm8, %v1254_v13, 0.0  ;;  %v1248_v43 = vsel %vm339_vm6, %v1247_v38, 0.0  ;;  %v1941_v42 = vrot.slane %v3623_v47, 3  ;;  %s4449_s15 = sld [smem:[#allocation9 + $0x3e]]  ;;  %s4455_s3 = sld [smem:[#allocation9 + $0x45]] }
 0x1b7   : > { %v1234_v54 = vadd.f32 %v1233_v40, %v1225_v17  ;;  %1345 = vrot.lane.b32.xlu1 %v4249_v26, %s4954_s1  ;;  %v1251_v30 = vmul.f32 %v1250_v5, %v1248_v43  ;;  %v1258_v40 = vmul.f32 %v1257_v21, %v1255_v34  ;;  %v1269_v56 = vmul.f32 %v1268_v45, %v3400_v24  ;;  %s4463_s29 = sld [smem:[#allocation9 + $0x46]] }
 0x1b8   : > { %v1148_v2 = vadd.f32 %v1147_v20, %v1141_v60  ;;  %1731 = vrot.lane.b32.xlu0 %v4219_v36, %s4955_s17  ;;  %v4357_v17 = vsel %vm349_vm5, %v1941_v42, 0.0  ;;  %v1415_v60 = vstv %s4315_s10  ;;  %s4476_s10 = sld [smem:[#allocation9 + $0x4e]] }
 0x1b9   : > { %v1238_v46 = vadd.f32 %v1237_v10, %v1234_v54  ;;  %v1272_v1 = vpop.permute.xlu1 %1271  ;;  %v1261_v57 = vpop.permute.xlu0 %1260 }
 0x1ba   : > { %v1151_v28 = vadd.f32 %v1150_v27, %v1148_v2  ;;  %v1273_v33 = vsel %vm346_vm11, %v1272_v1, 0.0  ;;  %v1262_v25 = vsel %vm345_vm10, %v1261_v57, 0.0  ;;  %v1396_v27 = vstv %s4311_s13  ;;  %s4467_s13 = sld [smem:[#allocation9 + $0x4d]] }
 0x1bb   : > { %v1245_v10 = vadd.f32 %v1244_v19, %v1238_v46  ;;  %1934 = vrot.lane.b32.xlu1 %v4283_v8, %s4955_s17  ;;  %v1265_v18 = vmul.f32 %v1264_v9, %v1262_v25  ;;  %s4373_s17 = sld [smem:[#allocation9 + $0x17]]  ;;  %v1599_v21 = vstv %s4338_s9  ;;  %v1276_v57 = vmul.f32 %v1275_v15, %v1273_v33 }
 0x1bc   : > { %v1152_v53 = vmax.f32 %v1151_v28, 0.0  ;;  %1740 = vrot.lane.b32.xlu0 %v4336_v63, %s4953_s11  ;;  %v1802_v33 = vstv %s4359_s0  ;;  %s4478_s9 = sld [smem:[#allocation9 + $0x3f]]  ;;  %s4489_s0 = sld [smem:[#allocation9 + $0x5d]] }
 0x1bd   : > { %v1252_v13 = vadd.f32 %v1251_v30, %v1245_v10  ;;  %v1403_v20 = vpop.permute.xlu1 %1402  ;;  %v1393_v5 = vpop.permute.xlu0 %1392 }
 0x1be   : > { %v1155_v38 = vmul.f32 %v1154_v22, %v1152_v53  ;;  %v1159_v54 = vmul.f32 %v1158_v0, %v1152_v53  ;;  %v1163_v43 = vmul.f32 %v1162_v29, %v1152_v53  ;;  %v1167_v2 = vmul.f32 %v1166_v41, %v1152_v53 }
 0x1bf   : > { %v1259_v19 = vadd.f32 %v1258_v40, %v1252_v13  ;;  %v1404_v42 = vsel %vm340_vm7, %v1403_v20, 0.0  ;;  %v1394_v34 = vsel %vm339_vm6, %v1393_v5, 0.0  ;;  %1943 = vrot.lane.b32.xlu1 %v4357_v17, %s4953_s11  ;;  %s4384_s11 = sld [smem:[#allocation9 + $0x1e]] }
 0x1c0   : > { %v1407_v24 = vmul.f32 %v1406_v61, %v1404_v42  ;;  %v1397_v46 = vmul.f32 %v1396_v27, %v1394_v34  ;;  %1548 = vrot.lane.b32.xlu0 %v4275_v50, %s4954_s1  ;;  %v4376_v22 = vadd.f32 %v1155_v38, %v4116_v12  ;;  %v4379_v0 = vadd.f32 %v1159_v54, %v4119_v35 }
 0x1c1   : > { %v1266_v29 = vadd.f32 %v1265_v18, %v1259_v19  ;;  %v1412_v41 = vpop.permute.xlu1 %1411  ;;  %v4387_v1 = vadd.f32 %v1163_v43, %v4127_v32  ;;  %v4390_v28 = vadd.f32 %v1167_v2, %v4138_v23  ;;  %v1805_v12 = vstv %s4340_s27  ;;  %v1596_v45 = vpop.permute.xlu0 %1595  ;;  %s4481_s27 = sld [smem:[#allocation9 + $0x55]] }
 0x1c2   : > { %v1401_v9 = vadd.f32 %v4303_v58, %v1397_v46  ;;  %v1413_v35 = vsel %vm342_vm8, %v1412_v41, 0.0  ;;  %v1597_v25 = vsel %vm339_vm6, %v1596_v45, 0.0  ;;  %v1603_v32 = vmul.f32 %v1602_v16, %v3651_v48 }
 0x1c3   : > { %v1270_v10 = vadd.f32 %v1269_v56, %v1266_v29  ;;  %v1416_v30 = vmul.f32 %v1415_v60, %v1413_v35  ;;  %1954 = vrot.lane.b32.xlu1 %v4357_v17, %s4954_s1  ;;  %v1600_v58 = vmul.f32 %v1599_v21, %v1597_v25  ;;  %v1806_v15 = vmul.f32 %v1805_v12, %v3678_v31 }
 0x1c4   : > { %v1408_v23 = vadd.f32 %v1407_v24, %v1401_v9  ;;  %1751 = vrot.lane.b32.xlu0 %v4336_v63, %s4954_s1  ;;  %v1609_v61 = vstv %s4363_s30  ;;  %s4420_s1 = sld [smem:[#allocation9 + $0x27]]  ;;  %v1812_v60 = vstv %s4373_s17  ;;  %v1419_v38 = vstv %s4381_s4  ;;  %s4503_s4 = sld [smem:[#allocation9 + $0x56]] }
 0x1c5   : > { %v1799_v53 = vpop.permute.xlu1 %1798  ;;  %v4414_v48 = vadd.f32 %v1276_v57, %v1270_v10  ;;  %v1606_v40 = vpop.permute.xlu0 %1605  ;;  %v1604_v31 = vadd.f32 %v1603_v32, %v1600_v58  ;;  %v1618_v2 = vstv %s4384_s11  ;;  %v1420_v24 = vmul.f32 %v1419_v38, %v3647_v62  ;;  %s4492_s30 = sld [smem:[#allocation9 + $0x47]] }
 0x1c6   : > { %v1417_v16 = vadd.f32 %v1416_v30, %v1408_v23  ;;  %v1800_v27 = vsel %vm339_vm6, %v1799_v53, 0.0  ;;  %v1607_v56 = vsel %vm340_vm7, %v1606_v40, 0.0  ;;  %v1622_v46 = vstv %s4403_s5  ;;  %s4499_s17 = sld [smem:[#allocation9 + $0x4f]]  ;;  %s4513_s5 = sld [smem:[#allocation9 + $0x65]] }
 0x1c7   : > { %v1803_v13 = vmul.f32 %v1802_v33, %v1800_v27  ;;  %v1610_v20 = vmul.f32 %v1609_v61, %v1607_v56  ;;  %v1821_v41 = vstv %s4408_s26  ;;  %v1426_v9 = vstv %s4412_s16  ;;  %s4511_s11 = sld [smem:[#allocation9 + $0x57]]  ;;  %s4516_s26 = sld [smem:[#allocation9 + $0x5e]] }
 0x1c8   : > { %v1623_v57 = vmul.f32 %v1622_v46, %v3706_v37  ;;  %v1421_v32 = vadd.f32 %v1420_v24, %v1417_v16  ;;  %v1629_v58 = vstv %s4423_s22  ;;  %v1435_v53 = vstv %s4427_s23  ;;  %s4523_s16 = sld [smem:[#allocation9 + $0x6d]]  ;;  %s4534_s22 = sld [smem:[#allocation9 + $0x7c]] }
 0x1c9   : > { %v1807_v54 = vadd.f32 %v1806_v15, %v1803_v13  ;;  %v1809_v43 = vpop.permute.xlu1 %1808  ;;  %v1611_v5 = vadd.f32 %v1610_v20, %v1604_v31  ;;  %v1615_v18 = vpop.permute.xlu0 %1614  ;;  %v1832_v20 = vstv %s4436_s7  ;;  %v1642_v24 = vstv %s4449_s15  ;;  %s4536_s23 = sld [smem:[#allocation9 + $0x66]]  ;;  %s4539_s7 = sld [smem:[#allocation9 + $0x5f]] }
 0x1ca   : > { %v1810_v19 = vsel %vm340_vm7, %v1809_v43, 0.0  ;;  %v1616_v34 = vsel %vm342_vm8, %v1615_v18, 0.0  ;;  %v1825_v25 = vstv %s4420_s1  ;;  %v1638_v43 = vstv %s4441_s12  ;;  %s4526_s1 = sld [smem:[#allocation9 + $0x74]]  ;;  %s4550_s12 = sld [smem:[#allocation9 + $0x75]] }
 0x1cb   : > { %v1813_v42 = vmul.f32 %v1812_v60, %v1810_v19  ;;  %v1619_v29 = vmul.f32 %v1618_v2, %v1616_v34  ;;  %v1826_v40 = vmul.f32 %v1825_v25, %v3728_v55  ;;  %v1439_v60 = vstv %s4438_s8  ;;  %s4547_s8 = sld [smem:[#allocation9 + $0x6e]]  ;;  %s4558_s15 = sld [smem:[#allocation9 + $0x7d]] }
 0x1cc   : > { %v1440_v34 = vmul.f32 %v1439_v60, %v3759_v14  ;;  %v1643_v14 = vmul.f32 %v1642_v24, %v3793_v49  ;;  %v1649_v25 = vstv %s4463_s29  ;;  %s4572_s29 = sld [smem:[#allocation9 + $0x6f]] }
 0x1cd   : > { %v1814_v21 = vadd.f32 %v1813_v42, %v1807_v54  ;;  %v1818_v12 = vpop.permute.xlu1 %1817  ;;  %v1620_v35 = vadd.f32 %v1619_v29, %v1611_v5  ;;  %v1423_v62 = vpop.permute.xlu0 %1422  ;;  %v1841_v29 = vstv %s4452_s2  ;;  %s4560_s2 = sld [smem:[#allocation9 + $0x67]] }
 0x1ce   : > { %v1819_v45 = vsel %vm342_vm8, %v1818_v12, 0.0  ;;  %v1424_v30 = vsel %vm343_vm9, %v1423_v62, 0.0  ;;  %v1446_v12 = vstv %s4455_s3  ;;  %s4563_s3 = sld [smem:[#allocation9 + $0x84]] }
 0x1cf   : > { %v1822_v10 = vmul.f32 %v1821_v41, %v1819_v45  ;;  %v1427_v23 = vmul.f32 %v1426_v9, %v1424_v30  ;;  %v1624_v16 = vadd.f32 %v1623_v57, %v1620_v35 }
 0x1d1   : > { %v1823_v33 = vadd.f32 %v1822_v10, %v1814_v21  ;;  %v1626_v15 = vpop.permute.xlu1 %1625  ;;  %v1428_v37 = vadd.f32 %v1427_v23, %v1421_v32  ;;  %v1432_v27 = vpop.permute.xlu0 %1431 }
 0x1d2   : > { %v1627_v61 = vsel %vm343_vm9, %v1626_v15, 0.0  ;;  %v1433_v56 = vsel %vm345_vm10, %v1432_v27, 0.0 }
 0x1d3   : > { %v1630_v13 = vmul.f32 %v1629_v58, %v1627_v61  ;;  %v1436_v31 = vmul.f32 %v1435_v53, %v1433_v56  ;;  %v1827_v19 = vadd.f32 %v1826_v40, %v1823_v33  ;;  %v1453_v58 = vstv %s4467_s13  ;;  %s4575_s13 = sld [smem:[#allocation9 + $0x76]] }
 0x1d4   : > { %v1656_v40 = vstv %s4476_s10  ;;  %s4581_s10 = sld [smem:[#allocation9 + $0x8c]] }
 0x1d5   : > { %v1631_v38 = vadd.f32 %v1630_v13, %v1624_v16  ;;  %v1829_v54 = vpop.permute.xlu1 %1828  ;;  %v1437_v2 = vadd.f32 %v1436_v31, %v1428_v37  ;;  %v1635_v5 = vpop.permute.xlu0 %1634  ;;  %v1845_v16 = vstv %s4478_s9  ;;  %v1460_v31 = vstv %s4481_s27  ;;  %s4585_s9 = sld [smem:[#allocation9 + $0x7e]]  ;;  %s4588_s27 = sld [smem:[#allocation9 + $0x85]] }
 0x1d6   : > { %v1830_v55 = vsel %vm343_vm9, %v1829_v54, 0.0  ;;  %v1636_v42 = vsel %vm345_vm10, %v1635_v5, 0.0  ;;  %v1467_v5 = vstv %s4489_s0  ;;  %s4596_s0 = sld [smem:[#allocation9 + $0x94]] }
 0x1d7   : > { %v1833_v18 = vmul.f32 %v1832_v20, %v1830_v55  ;;  %v1639_v46 = vmul.f32 %v1638_v43, %v1636_v42  ;;  %v1441_v10 = vadd.f32 %v1440_v34, %v1437_v2  ;;  %v1846_v2 = vmul.f32 %v1845_v16, %v3816_v59 }
 0x1d8   : > { %v1852_v42 = vstv %s4492_s30  ;;  %s4599_s30 = sld [smem:[#allocation9 + $0x77]] }
 0x1d9   : > { %v1834_v41 = vadd.f32 %v1833_v18, %v1827_v19  ;;  %v1838_v21 = vpop.permute.xlu1 %1837  ;;  %v1640_v9 = vadd.f32 %v1639_v46, %v1631_v38  ;;  %v1443_v45 = vpop.permute.xlu0 %1442 }
 0x1da   : > { %v1839_v35 = vsel %vm345_vm10, %v1838_v21, 0.0  ;;  %v1444_v57 = vsel %vm346_vm11, %v1443_v45, 0.0  ;;  %v1663_v45 = vstv %s4503_s4  ;;  %s4609_s4 = sld [smem:[#allocation9 + $0x7f]] }
 0x1db   : > { %v1842_v62 = vmul.f32 %v1841_v29, %v1839_v35  ;;  %v1447_v30 = vmul.f32 %v1446_v12, %v1444_v57  ;;  %v1644_v53 = vadd.f32 %v1643_v14, %v1640_v9  ;;  %v1859_v12 = vstv %s4499_s17  ;;  %s4606_s17 = sld [smem:[#allocation9 + $0x8d]] }
 0x1dd   : > { %v1843_v32 = vadd.f32 %v1842_v62, %v1834_v41  ;;  %v1646_v23 = vpop.permute.xlu1 %1645  ;;  %v1448_v33 = vadd.f32 %v1447_v30, %v1441_v10  ;;  %v1450_v15 = vpop.permute.xlu0 %1449 }
 0x1de   : > { %v1647_v49 = vsel %vm346_vm11, %v1646_v23, 0.0  ;;  %v1451_v61 = vsel %vm339_vm6, %v1450_v15, 0.0  ;;  %v1471_v23 = vstv %s4513_s5  ;;  %s4620_s5 = sld [smem:[#allocation9 + $0x95]] }
 0x1df   : > { %v1650_v37 = vmul.f32 %v1649_v25, %v1647_v49  ;;  %v1454_v27 = vmul.f32 %v1453_v58, %v1451_v61  ;;  %v1847_v41 = vadd.f32 %v1846_v2, %v1843_v32  ;;  %v1866_v32 = vstv %s4511_s11  ;;  %s4612_s11 = sld [smem:[#allocation9 + $0x86]] }
 0x1e0   : > { %v1670_v49 = vstv %s4516_s26  ;;  %s4623_s26 = sld [smem:[#allocation9 + $0x9c]] }
 0x1e1   : > { %v1651_v13 = vadd.f32 %v1650_v37, %v1644_v53  ;;  %v1653_v56 = vpop.permute.xlu1 %1652  ;;  %v1455_v20 = vadd.f32 %v1454_v27, %v1448_v33  ;;  %v1457_v38 = vpop.permute.xlu0 %1456 }
 0x1e2   : > { %v1654_v60 = vsel %vm339_vm6, %v1653_v56, 0.0  ;;  %v1458_v43 = vsel %vm342_vm8, %v1457_v38, 0.0 }
 0x1e3   : > { %v1657_v54 = vmul.f32 %v1656_v40, %v1654_v60  ;;  %v1461_v55 = vmul.f32 %v1460_v31, %v1458_v43  ;;  %v1472_v40 = vmul.f32 %v1471_v23, %v3566_v4  ;;  %v1877_v23 = vstv %s4560_s2  ;;  %s4661_s2 = sld [smem:[#allocation9 + $0x97]] }
 0x1e5   : > { %v1658_v19 = vadd.f32 %v1657_v54, %v1651_v13  ;;  %v1464_v18 = vpop.permute.xlu1 %1463  ;;  %v1462_v34 = vadd.f32 %v1461_v55, %v1455_v20  ;;  %v1849_v46 = vpop.permute.xlu0 %1848  ;;  %v1478_v13 = vstv %s4523_s16  ;;  %v1282_v20 = vstv %s4526_s1  ;;  %s4630_s16 = sld [smem:[#allocation9 + $0xa4]]  ;;  %s4633_s1 = sld [smem:[#allocation9 + $0x9d]] }
 0x1e6   : > { %v1465_v24 = vsel %vm345_vm10, %v1464_v18, 0.0  ;;  %v1850_v59 = vsel %vm346_vm11, %v1849_v46, 0.0 }
 0x1e7   : > { %v1468_v29 = vmul.f32 %v1467_v5, %v1465_v24  ;;  %v1853_v21 = vmul.f32 %v1852_v42, %v1850_v59  ;;  %v1289_v5 = vstv %s4534_s22  ;;  %s4635_s22 = sld [smem:[#allocation9 + $0x8e]] }
 0x1e9   : > { %v1469_v9 = vadd.f32 %v1468_v29, %v1462_v34  ;;  %v1856_v35 = vpop.permute.xlu1 %1855  ;;  %v1854_v14 = vadd.f32 %v1853_v21, %v1847_v41  ;;  %v1873_v34 = vstv %s4539_s7  ;;  %s4645_s7 = sld [smem:[#allocation9 + $0x8f]] }
 0x1ea   : > { %v1857_v62 = vsel %vm339_vm6, %v1856_v35, 0.0  ;;  %v1660_v57 = vpop.permute.xlu0 %1659 }
 0x1eb   : > { %v1860_v10 = vmul.f32 %v1859_v12, %v1857_v62  ;;  %v1661_v30 = vsel %vm342_vm8, %v1660_v57, 0.0  ;;  %v1473_v43 = vadd.f32 %v1472_v40, %v1469_v9  ;;  %v1681_v9 = vstv %s4547_s8  ;;  %s4648_s8 = sld [smem:[#allocation9 + $0xac]] }
 0x1ec   : > { %v1664_v25 = vmul.f32 %v1663_v45, %v1661_v30  ;;  %v1878_v40 = vmul.f32 %v1877_v23, %v3623_v47 }
 0x1ed   : > { %v1861_v58 = vadd.f32 %v1860_v10, %v1854_v14  ;;  %v1863_v33 = vpop.permute.xlu1 %1862 }
 0x1ee   : > { %v1665_v15 = vadd.f32 %v1664_v25, %v1658_v19  ;;  %v1864_v53 = vsel %vm342_vm8, %v1863_v33, 0.0  ;;  %v1667_v37 = vpop.permute.xlu0 %1666  ;;  %v1674_v19 = vstv %s4536_s23  ;;  %s4638_s23 = sld [smem:[#allocation9 + $0x87]] }
 0x1ef   : > { %v1867_v61 = vmul.f32 %v1866_v32, %v1864_v53  ;;  %v1668_v27 = vsel %vm345_vm10, %v1667_v37, 0.0  ;;  %v1675_v21 = vmul.f32 %v1674_v19, %v3595_v52  ;;  %v1492_v32 = vstv %s4558_s15  ;;  %s4658_s15 = sld [smem:[#allocation9 + $0xa5]] }
 0x1f0   : > { %v1671_v16 = vmul.f32 %v1670_v49, %v1668_v27  ;;  %v1298_v49 = vstv %s4563_s3  ;;  %s4665_s3 = sld [smem:[#allocation9 + $0x9e]] }
 0x1f1   : > { %v1868_v56 = vadd.f32 %v1867_v61, %v1861_v58  ;;  %v1475_v31 = vpop.permute.xlu1 %1474 }
 0x1f2   : > { %v1672_v60 = vadd.f32 %v1671_v16, %v1665_v15  ;;  %v1476_v38 = vsel %vm346_vm11, %v1475_v31, 0.0  ;;  %v1279_v54 = vpop.permute.xlu0 %1278 }
 0x1f3   : > { %v1479_v2 = vmul.f32 %v1478_v13, %v1476_v38  ;;  %v1280_v4 = vsel %vm343_vm9, %v1279_v54, 0.0  ;;  %v1884_v13 = vstv %s4572_s29  ;;  %s4675_s29 = sld [smem:[#allocation9 + $0xad]] }
 0x1f4   : > { %v1283_v55 = vmul.f32 %v1282_v20, %v1280_v4  ;;  %v1676_v10 = vadd.f32 %v1675_v21, %v1672_v60  ;;  %v1688_v20 = vstv %s4575_s13  ;;  %v1302_v4 = vstv %s4581_s10  ;;  %s4678_s13 = sld [smem:[#allocation9 + $0xb4]] }
 0x1f5   : > { %v1480_v18 = vadd.f32 %v1479_v2, %v1473_v43  ;;  %v1286_v42 = vpop.permute.xlu1 %1285  ;;  %s4686_s10 = sld [smem:[#allocation9 + $0xbc]] }
 0x1f6   : > { %v1284_v24 = vadd.f32 %v1283_v55, %v4414_v48  ;;  %v1287_v46 = vsel %vm340_vm7, %v1286_v42, 0.0  ;;  %v1870_v29 = vpop.permute.xlu0 %1869  ;;  %v1485_v48 = vstv %s4550_s12  ;;  %v1501_v42 = vstv %s4588_s27  ;;  %s4651_s12 = sld [smem:[#allocation9 + $0x96]] }
 0x1f7   : > { %v1290_v59 = vmul.f32 %v1289_v5, %v1287_v46  ;;  %v1871_v41 = vsel %vm345_vm10, %v1870_v29, 0.0  ;;  %v1695_v5 = vstv %s4585_s9  ;;  %v1303_v29 = vmul.f32 %v1302_v4, %v4014_v11  ;;  %s4689_s9 = sld [smem:[#allocation9 + $0xb5]]  ;;  %s4691_s27 = sld [smem:[#allocation9 + $0xa6]] }
 0x1f8   : > { %v1874_v12 = vmul.f32 %v1873_v34, %v1871_v41  ;;  %v1708_v4 = vstv %s4635_s22  ;;  %s4727_s22 = sld [smem:[#allocation9 + $0xbf]] }
 0x1f9   : > { %v1291_v35 = vadd.f32 %v1290_v59, %v1284_v24  ;;  %v1678_v45 = vpop.permute.xlu1 %1677 }
 0x1fa   : > { %v1875_v14 = vadd.f32 %v1874_v12, %v1868_v56  ;;  %v1679_v62 = vsel %vm346_vm11, %v1678_v45, 0.0  ;;  %v1482_v57 = vpop.permute.xlu0 %1481  ;;  %v1309_v12 = vstv %s4596_s0  ;;  %v1891_v45 = vstv %s4599_s30  ;;  %s4694_s0 = sld [smem:[#allocation9 + $0x9f]] }
 0x1fb   : > { %v1682_v30 = vmul.f32 %v1681_v9, %v1679_v62  ;;  %v1483_v52 = vsel %vm343_vm9, %v1482_v57, 0.0  ;;  %s4701_s30 = sld [smem:[#allocation9 + $0xa7]] }
 0x1fc   : > { %v1486_v25 = vmul.f32 %v1485_v48, %v1483_v52  ;;  %v1879_v43 = vadd.f32 %v1878_v40, %v1875_v14  ;;  %v1512_v40 = vstv %s4620_s5  ;;  %s4717_s5 = sld [smem:[#allocation10 + $0x4]] }
 0x1fd   : > { %v1683_v58 = vadd.f32 %v1682_v30, %v1676_v10  ;;  %v1489_v33 = vpop.permute.xlu1 %1488  ;;  %v1505_v30 = vstv %s4606_s17  ;;  %s4704_s17 = sld [smem:[#allocation9 + $0xc4]] }
 0x1fe   : > { %v1487_v15 = vadd.f32 %v1486_v25, %v1480_v18  ;;  %v1490_v53 = vsel %vm340_vm7, %v1489_v33, 0.0  ;;  %v1295_v37 = vpop.permute.xlu0 %1294  ;;  %v1898_v25 = vstv %s4609_s4  ;;  %s4707_s4 = sld [smem:[#allocation9 + $0xae]] }
 0x1ff   : > { %v1493_v61 = vmul.f32 %v1492_v32, %v1490_v53  ;;  %v1296_v27 = vsel %vm345_vm10, %v1295_v37, 0.0  ;;  %v1506_v53 = vmul.f32 %v1505_v30, %v4061_v3 }
 0x200   : > { %v1299_v16 = vmul.f32 %v1298_v49, %v1296_v27 }
 0x201   : > { %v1494_v56 = vadd.f32 %v1493_v61, %v1487_v15  ;;  %v1881_v31 = vpop.permute.xlu1 %1880 }
 0x202   : > { %v1300_v60 = vadd.f32 %v1299_v16, %v1291_v35  ;;  %v1882_v38 = vsel %vm346_vm11, %v1881_v31, 0.0  ;;  %v1685_v54 = vpop.permute.xlu0 %1684 }
 0x203   : > { %v1885_v2 = vmul.f32 %v1884_v13, %v1882_v38  ;;  %v1686_v47 = vsel %vm343_vm9, %v1685_v54, 0.0 }
 0x204   : > { %v1689_v55 = vmul.f32 %v1688_v20, %v1686_v47  ;;  %v1304_v62 = vadd.f32 %v1303_v29, %v1300_v60  ;;  %v1521_v47 = vstv %s4633_s1  ;;  %s4725_s1 = sld [smem:[#allocation9 + $0xb6]] }
 0x205   : > { %v1886_v19 = vadd.f32 %v1885_v2, %v1879_v43  ;;  %v1692_v18 = vpop.permute.xlu1 %1691  ;;  %v1322_v43 = vstv %s4630_s16  ;;  %s4722_s16 = sld [smem:[#allocation9 + $0xbe]] }
 0x206   : > { %v1690_v34 = vadd.f32 %v1689_v55, %v1683_v58  ;;  %v1693_v24 = vsel %vm340_vm7, %v1692_v18, 0.0  ;;  %v1498_v46 = vpop.permute.xlu0 %1497  ;;  %v1704_v58 = vstv %s4612_s11  ;;  %s4709_s11 = sld [smem:[#allocation9 + $0xbd]] }
 0x207   : > { %v1696_v59 = vmul.f32 %v1695_v5, %v1693_v24  ;;  %v1499_v41 = vsel %vm345_vm10, %v1498_v46, 0.0  ;;  %v1323_v24 = vmul.f32 %v1322_v43, %v4134_v6 }
 0x208   : > { %v1502_v21 = vmul.f32 %v1501_v42, %v1499_v41  ;;  %v1911_v41 = vstv %s4645_s7  ;;  %s4736_s7 = sld [smem:[#allocation12 + $0x11]] }
 0x209   : > { %v1697_v9 = vadd.f32 %v1696_v59, %v1690_v34  ;;  %v1306_v35 = vpop.permute.xlu1 %1305  ;;  %v1709_v59 = vmul.f32 %v1708_v4, %v4099_v7  ;;  %v1912_v7 = vmul.f32 %v1911_v41, %v4167_v39  ;;  %v1724_v39 = vstv %s4665_s3  ;;  %s4760_s3 = sld [smem:[#allocation9 + $0xc7]] }
 0x20a   : > { %v1503_v48 = vadd.f32 %v1502_v21, %v1494_v56  ;;  %v1307_v11 = vsel %vm346_vm11, %v1306_v35, 0.0  ;;  %v1888_v14 = vpop.permute.xlu0 %1887  ;;  %v1318_v56 = vstv %s4623_s26  ;;  %s4719_s26 = sld [smem:[#allocation9 + $0xaf]] }
 0x20b   : > { %v1310_v57 = vmul.f32 %v1309_v12, %v1307_v11  ;;  %v1889_v10 = vsel %vm343_vm9, %v1888_v14, 0.0  ;;  %v1329_v12 = vstv %s4648_s8  ;;  %s4741_s8 = sld [smem:[#allocation12 + $0x12]] }
 0x20c   : > { %v1892_v52 = vmul.f32 %v1891_v45, %v1889_v10  ;;  %v1507_v60 = vadd.f32 %v1506_v53, %v1503_v48  ;;  %v1715_v45 = vstv %s4651_s12  ;;  %v1525_v10 = vstv %s4658_s15  ;;  %s4743_s12 = sld [smem:[#allocation12 + $0x13]]  ;;  %s4748_s15 = sld [smem:[#allocation9 + $0xb7]] }
 0x20d   : > { %v1311_v32 = vadd.f32 %v1310_v57, %v1304_v62  ;;  %v1895_v23 = vpop.permute.xlu1 %1894 }
 0x20e   : > { %v1893_v33 = vadd.f32 %v1892_v52, %v1886_v19  ;;  %v1896_v49 = vsel %vm340_vm7, %v1895_v23, 0.0  ;;  %v1701_v15 = vpop.permute.xlu0 %1700  ;;  %v1907_v19 = vstv %s4638_s23  ;;  %s4731_s23 = sld [smem:[#allocation12 + $0x10]] }
 0x20f   : > { %v1899_v37 = vmul.f32 %v1898_v25, %v1896_v49  ;;  %v1702_v61 = vsel %vm345_vm10, %v1701_v15, 0.0  ;;  %v1918_v25 = vstv %s4661_s2  ;;  %v1526_v15 = vmul.f32 %v1525_v10, %v4155_v51  ;;  %s4753_s2 = sld [smem:[#allocation9 + $0xc5]] }
 0x210   : > { %v1705_v27 = vmul.f32 %v1704_v58, %v1702_v61 }
 0x211   : > { %v1900_v16 = vadd.f32 %v1899_v37, %v1893_v33  ;;  %v1509_v13 = vpop.permute.xlu1 %1508 }
 0x212   : > { %v1706_v3 = vadd.f32 %v1705_v27, %v1697_v9  ;;  %v1510_v31 = vsel %vm346_vm11, %v1509_v13, 0.0  ;;  %v1315_v20 = vpop.permute.xlu0 %1314 }
 0x213   : > { %v1513_v38 = vmul.f32 %v1512_v40, %v1510_v31  ;;  %v1316_v54 = vsel %vm342_vm8, %v1315_v20, 0.0  ;;  %v1532_v40 = vstv %s4675_s29  ;;  %s4762_s29 = sld [smem:[#allocation9 + $0xc6]] }
 0x214   : > { %v1319_v2 = vmul.f32 %v1318_v56, %v1316_v54  ;;  %v1710_v30 = vadd.f32 %v1709_v59, %v1706_v3  ;;  %v1338_v56 = vstv %s4678_s13  ;;  %v1342_v54 = vstv %s4686_s10  ;;  %s4773_s13 = sld [smem:[#allocation10 + $0x5]]  ;;  %s4778_s10 = sld [smem:[#allocation12 + $0x14]] }
 0x215   : > { %v1514_v55 = vadd.f32 %v1513_v38, %v1507_v60  ;;  %v1518_v5 = vpop.permute.xlu1 %1517  ;;  %v1931_v59 = vstv %s4701_s30  ;;  %s4792_s30 = sld [smem:[#allocation12 + $0x16]] }
 0x216   : > { %v1320_v18 = vadd.f32 %v1319_v2, %v1311_v32  ;;  %v1519_v42 = vsel %vm342_vm8, %v1518_v5, 0.0  ;;  %v1904_v34 = vpop.permute.xlu0 %1903  ;;  %v1541_v2 = vstv %s4689_s9  ;;  %v1927_v5 = vstv %s4694_s0  ;;  %s4780_s9 = sld [smem:[#allocation12 + $0x15]]  ;;  %s4786_s0 = sld [smem:[#allocation10 + $0x6]] }
 0x217   : > { %v1522_v46 = vmul.f32 %v1521_v47, %v1519_v42  ;;  %v1905_v29 = vsel %vm345_vm10, %v1904_v34, 0.0  ;;  %v1728_v47 = vstv %s4691_s27  ;;  %v1343_v34 = vmul.f32 %v1342_v54, %v4249_v26  ;;  %s4784_s27 = sld [smem:[#allocation10 + $0x7]] }
 0x218   : > { %v1908_v21 = vmul.f32 %v1907_v19, %v1905_v29  ;;  %v1324_v14 = vadd.f32 %v1323_v24, %v1320_v18  ;;  %v1729_v29 = vmul.f32 %v1728_v47, %v4219_v36 }
 0x219   : > { %v1523_v9 = vadd.f32 %v1522_v46, %v1514_v55  ;;  %v1326_v35 = vpop.permute.xlu1 %1325 }
 0x21a   : > { %v1909_v48 = vadd.f32 %v1908_v21, %v1900_v16  ;;  %v1327_v6 = vsel %vm343_vm9, %v1326_v35, 0.0  ;;  %v1712_v11 = vpop.permute.xlu0 %1711  ;;  %v1349_v21 = vstv %s4704_s17  ;;  %v1545_v35 = vstv %s4709_s11  ;;  %s4794_s17 = sld [smem:[#allocation12 + $0x17]]  ;;  %s4798_s11 = sld [smem:[#allocation12 + $0x1d]] }
 0x21b   : > { %v1330_v62 = vmul.f32 %v1329_v12, %v1327_v6  ;;  %v1713_v57 = vsel %vm346_vm11, %v1712_v11, 0.0  ;;  %v1527_v20 = vadd.f32 %v1526_v15, %v1523_v9  ;;  %v1735_v9 = vstv %s4707_s4  ;;  %s4796_s4 = sld [smem:[#allocation12 + $0x1c]] }
 0x21c   : > { %v1716_v52 = vmul.f32 %v1715_v45, %v1713_v57  ;;  %v1913_v53 = vadd.f32 %v1912_v7, %v1909_v48  ;;  %v1932_v6 = vmul.f32 %v1931_v59, %v4283_v8 }
 0x21d   : > { %v1331_v32 = vadd.f32 %v1330_v62, %v1324_v14  ;;  %v1915_v23 = vpop.permute.xlu1 %1914  ;;  %v1353_v62 = vstv %s4717_s5  ;;  %s4803_s5 = sld [smem:[#allocation12 + $0x1e]] }
 0x21e   : > { %v1717_v58 = vadd.f32 %v1716_v52, %v1710_v30  ;;  %v1916_v33 = vsel %vm346_vm11, %v1915_v23, 0.0  ;;  %v1721_v49 = vpop.permute.xlu0 %1720  ;;  %v1938_v30 = vstv %s4719_s26  ;;  %v1546_v52 = vmul.f32 %v1545_v35, %v4275_v50  ;;  %s4805_s26 = sld [smem:[#allocation12 + $0x1f]] }
 0x21f   : > { %v1919_v37 = vmul.f32 %v1918_v25, %v1916_v33  ;;  %v1722_v61 = vsel %vm342_vm8, %v1721_v49, 0.0  ;;  %v1748_v25 = vstv %s4722_s16  ;;  %v1744_v23 = vstv %s4725_s1  ;;  %s4812_s16 = sld [smem:[#allocation12 + $0x18]]  ;;  %s4814_s1 = sld [smem:[#allocation12 + $0x19]] }
 0x220   : > { %v1725_v27 = vmul.f32 %v1724_v39, %v1722_v61  ;;  %v1951_v39 = vstv %s4727_s22  ;;  %s4820_s22 = sld [smem:[#allocation12 + $0x1a]]  ;;  %v1572_v44 = vstv %s4794_s17 }
 0x221   : > { %v1920_v16 = vadd.f32 %v1919_v37, %v1913_v53  ;;  %v1529_v13 = vpop.permute.xlu1 %1528 }
 0x222   : > { %v1726_v51 = vadd.f32 %v1725_v27, %v1717_v58  ;;  %v1530_v3 = vsel %vm343_vm9, %v1529_v13, 0.0  ;;  %v1335_v31 = vpop.permute.xlu0 %1334  ;;  %v1357_v58 = vstv %s4731_s23  ;;  %v1361_v27 = vstv %s4736_s7  ;;  %s4822_s23 = sld [smem:[#allocation12 + $0x1b]]  ;;  %s2441_s7 = sshll.u32 %s2811_s28, 9 }
 0x223   : > { %v1533_v60 = vmul.f32 %v1532_v40, %v1530_v3  ;;  %v1336_v38 = vsel %vm339_vm6, %v1335_v31, 0.0  ;;  %v1365_v40 = vstv %s4741_s8  ;;  %v1947_v31 = vstv %s4748_s15  ;;  %s4957_s8 = sshll.u32 %s2956_s25, 5  ;;  %s1996_s28 = scalar_lea.sflag [#allocation4], %s2956_s25 }
 0x224   : > { %v1339_v43 = vmul.f32 %v1338_v56, %v1336_v38  ;;  %v1730_v57 = vadd.f32 %v1729_v29, %v1726_v51  ;;  %v1749_v56 = vmul.f32 %v1748_v25, %v4336_v63 }
 0x225   : > { %v1534_v4 = vadd.f32 %v1533_v60, %v1527_v20  ;;  %v1538_v55 = vpop.permute.xlu1 %1537  ;;  %v1952_v60 = vmul.f32 %v1951_v39, %v4357_v17  ;;  %v1763_v39 = vstv %s4812_s16 }
 0x226   : > { %v1340_v19 = vadd.f32 %v1339_v43, %v1331_v32  ;;  %v1539_v18 = vsel %vm339_vm6, %v1538_v55, 0.0  ;;  %v1924_v42 = vpop.permute.xlu0 %1923  ;;  %v1552_v43 = vstv %s4753_s2 }
 0x227   : > { %v1542_v24 = vmul.f32 %v1541_v2, %v1539_v18  ;;  %v1925_v46 = vsel %vm342_vm8, %v1924_v42, 0.0  ;;  %v1755_v18 = vstv %s4762_s29  ;;  %s4849_s29 = scalar_lea.hbm %s4902_s6, %s2441_s7 }
 0x228   : > { %v1928_v41 = vmul.f32 %v1927_v5, %v1925_v46  ;;  %v1344_v11 = vadd.f32 %v1343_v34, %v1340_v19  ;;  %v1958_v19 = vstv %s4760_s3 }
 0x229   : > { %v4745_v12 = vadd.f32 %v1542_v24, %v1534_v4  ;;  %v1346_v26 = vpop.permute.xlu1 %1345 }
 0x22a   : > { %v1929_v45 = vadd.f32 %v1928_v41, %v1920_v16  ;;  %v1347_v36 = vsel %vm340_vm7, %v1346_v26, 0.0  ;;  %v1732_v48 = vpop.permute.xlu0 %1731  ;;  %v1369_v16 = vstv %s4743_s12  ;;  %s333_s12 = scalar_lea.vmem [#allocation13], %s4957_s8 }
 0x22b   : > { %v1350_v7 = vmul.f32 %v1349_v21, %v1347_v36  ;;  %v1733_v14 = vsel %vm343_vm9, %v1732_v48, 0.0  ;;  %v1547_v41 = vadd.f32 %v1546_v52, %v4745_v12  ;;  %v1962_v36 = vstv %s4784_s27  ;;  %s2009_s15 = sshll.u32 %s333_s12, 4  ;;  %s4851_s15 = int_to_ptr.vmem [resolvable:$true] %s2009_s15 }
 0x22c   : > { %v1736_v10 = vmul.f32 %v1735_v9, %v1733_v14  ;;  %v1933_v37 = vadd.f32 %v1932_v6, %v1929_v45  ;;  %v1759_v48 = vstv %s4786_s0  ;;  %v1560_v6 = vstv %s4778_s10  ;;  %s2749_s10 = smov [#allocation13]  }
 0x22d   : > { %v1351_v8 = vadd.f32 %v1350_v7, %v1344_v11  ;;  %v1935_v32 = vpop.permute.xlu1 %1934  ;;  %v1970_v52 = vstv %s4798_s11 }
 0x22e   : > { %v1737_v33 = vadd.f32 %v1736_v10, %v1730_v57  ;;  %v1936_v49 = vsel %vm343_vm9, %v1935_v32, 0.0  ;;  %v1741_v15 = vpop.permute.xlu0 %1740  ;;  %v1568_v57 = vstv %s4792_s30  ;;  %v1966_v10 = vstv %s4796_s4 }
 0x22f   : > { %v1354_v53 = vadd.f32 %v1353_v62, %v1351_v8  ;;  %v1939_v61 = vmul.f32 %v1938_v30, %v1936_v49  ;;  %v1742_v50 = vsel %vm339_vm6, %v1741_v15, 0.0  ;;  %v1564_v62 = vstv %s4780_s9  ;;  %s2659_s9 = sshll.u32 %s2749_s10, 4  ;;  %s2660_s9 = int_to_ptr.vmem [resolvable:$false] %s2659_s9 }
 0x230   : > { %v1745_v13 = vmul.f32 %v1744_v23, %v1742_v50  ;;  %v1974_v32 = vstv %s4803_s5  ;;  %v1978_v23 = vstv %s4805_s26  ;;  %v1775_v50 = vstv %s4822_s23  ;;  %s2661_s27 = scalar_lea.vmem %s2660_s9, 1024  ;;  %p2662_p9 = scmp.lt.s32.totalorder %s4851_s15, %s2660_s9 }
 0x231   : > { %v1355_v51 = vmax.f32 %v1354_v53, 0.0  ;;  %v1940_v3 = vadd.f32 %v1939_v61, %v1933_v37  ;;  %v1944_v20 = vpop.permute.xlu1 %1943  ;;  %v1771_v61 = vstv %s4820_s22 }
 0x232   : > { %v1746_v38 = vadd.f32 %v1745_v13, %v1737_v33  ;;  %v1945_v54 = vsel %vm339_vm6, %v1944_v20, 0.0  ;;  %v1549_v63 = vpop.permute.xlu0 %1548 }
 0x233   : > { %v1358_v2 = vmul.f32 %v1357_v58, %v1355_v51  ;;  %v1362_v47 = vmul.f32 %v1361_v27, %v1355_v51  ;;  %v1366_v4 = vmul.f32 %v1365_v40, %v1355_v51  ;;  %v1370_v55 = vmul.f32 %v1369_v16, %v1355_v51 }
 0x234   : > { %v1948_v17 = vmul.f32 %v1947_v31, %v1945_v54  ;;  %v1550_v5 = vsel %vm340_vm7, %v1549_v63, 0.0  ;;  %v1750_v35 = vadd.f32 %v1749_v56, %v1746_v38  ;;  %v1767_v58 = vstv %s4814_s1 }
 0x235   : > { %v1359_v42 = vadd.f32 %v1358_v2, %v4376_v22  ;;  %v1363_v34 = vadd.f32 %v1362_v47, %v4379_v0  ;;  %v1367_v24 = vadd.f32 %v1366_v4, %v4387_v1  ;;  %v1371_v46 = vadd.f32 %v1370_v55, %v4390_v28  ;;  %v1955_v29 = vpop.permute.xlu1 %1954  ;;  %v2429_v55 = vld [vmem:[%s2962_s19 + $0x8] sm:$0xff] }
 0x236   : > { %v1949_v59 = vadd.f32 %v1948_v17, %v1940_v3  ;;  %v1553_v21 = vmul.f32 %v1552_v43, %v1550_v5  ;;  %v1956_v22 = vsel %vm340_vm7, %v1955_v29, 0.0  ;;  %v1752_v0 = vpop.permute.xlu0 %1751  ;;  %v1556_v1 = vstv %s4773_s13  ;;  %v2431_v17 = vld [vmem:[%s2962_s19 + $0x10] sm:$0xff]  ;;  %v2433_v5 = vld [vmem:[%s2962_s19 + $0x18] sm:$0xff]  ;;  %s2655_s13 = scalar_lea.vmem %s4851_s15, 512 }
 0x237   : > { %v1959_v28 = vmul.f32 %v1958_v19, %v1956_v22  ;;  %v1753_v26 = vsel %vm340_vm7, %v1752_v0, 0.0  ;;  %p2656_p13 = scmp.ne.s32.totalorder %s4851_s15, %s2655_s13  ;;  %p2663_p10 = scmp.lt.s32.totalorder %s2661_s27, %s2655_s13 }
 0x238   : > { %v1554_v12 = vadd.f32 %v1553_v21, %v1547_v41  ;;  %v1953_v9 = vadd.f32 %v1952_v60, %v1949_v59  ;;  %v1756_v45 = vmul.f32 %v1755_v18, %v1753_v26 }
 0x239   : > { %p2657_p4 = pnand %p2656_p13, %p4958_p2  ;;  %p2664_p11 = por %p2663_p10, %p2662_p9 }
 0x23a   : > { %v1557_v11 = vadd.f32 %v1556_v1, %v1554_v12  ;;  %v1960_v7 = vadd.f32 %v1959_v28, %v1953_v9  ;;  %v1757_v14 = vadd.f32 %v1756_v45, %v1750_v35 }
 0x23b   : > { %p2658_p5 = pneg %p2657_p4 }
 0x23c   : > { %v1558_v30 = vmax.f32 %v1557_v11, 0.0  ;;  %v1963_v25 = vadd.f32 %v1962_v36, %v1960_v7  ;;  %v1760_v8 = vadd.f32 %v1759_v48, %v1757_v14 }
 0x23d   : > { %p2665_p8 = pnand %p2664_p11, %p2658_p5 }
 0x23e   : > { %v1561_v33 = vmul.f32 %v1560_v6, %v1558_v30  ;;  %v1565_v49 = vmul.f32 %v1564_v62, %v1558_v30  ;;  %v1569_v15 = vmul.f32 %v1568_v57, %v1558_v30  ;;  %v1573_v53 = vmul.f32 %v1572_v44, %v1558_v30 }
 0x23f   : > { %v1964_v37 = vmax.f32 %v1963_v25, 0.0  ;;  %v1761_v27 = vmax.f32 %v1760_v8, 0.0 }
 0x240   : > { %v1562_v40 = vadd.f32 %v1561_v33, %v1359_v42  ;;  %v1566_v16 = vadd.f32 %v1565_v49, %v1363_v34  ;;  %v1570_v13 = vadd.f32 %v1569_v15, %v1367_v24  ;;  %v1574_v56 = vadd.f32 %v1573_v53, %v1371_v46  ;;  %v2549_v24 = vld [vmem:[%s2962_s19] sm:$0xff] }
 0x241   : > { %v1764_v51 = vmul.f32 %v1763_v39, %v1761_v27  ;;  %v1768_v3 = vmul.f32 %v1767_v58, %v1761_v27  ;;  %v1772_v31 = vmul.f32 %v1771_v61, %v1761_v27  ;;  %v1776_v20 = vmul.f32 %v1775_v50, %v1761_v27 }
 0x242   : > { %v1967_v60 = vmul.f32 %v1966_v10, %v1964_v37  ;;  %v1971_v38 = vmul.f32 %v1970_v52, %v1964_v37  ;;  %v1975_v54 = vmul.f32 %v1974_v32, %v1964_v37  ;;  %v1979_v43 = vmul.f32 %v1978_v23, %v1964_v37 }
 0x243   : > { %v1765_v63 = vadd.f32 %v1764_v51, %v1562_v40  ;;  %v1769_v2 = vadd.f32 %v1768_v3, %v1566_v16  ;;  %v1773_v47 = vadd.f32 %v1772_v31, %v1570_v13  ;;  %v1777_v4 = vadd.f32 %v1776_v20, %v1574_v56 }
 0x245   : > { %v1968_v19 = vadd.f32 %v1967_v60, %v1765_v63  ;;  %v1972_v18 = vadd.f32 %v1971_v38, %v1769_v2  ;;  %v1976_v42 = vadd.f32 %v1975_v54, %v1773_v47  ;;  %v1980_v34 = vadd.f32 %v1979_v43, %v1777_v4 }
 0x247   : > { %v1981_v46 = vadd.f32 %v2549_v24, %v1968_v19  ;;  %v1984_v29 = vadd.f32 %v2429_v55, %v1972_v18  ;;  %v1988_v59 = vadd.f32 %v2431_v17, %v1976_v42  ;;  %v1992_v41 = vadd.f32 %v2433_v5, %v1980_v34 }
 0x249   : > { %1982 = vst [vmem:[%s333_s12] sm:$0xff] %v1981_v46  ;;  %2430 = vst [vmem:[%s333_s12 + $0x8] sm:$0xff] %v1984_v29 }
 0x24a   : > { %2432 = vst [vmem:[%s333_s12 + $0x10] sm:$0xff] %v1988_v59  ;;  %2434 = vst [vmem:[%s333_s12 + $0x18] sm:$0xff] %v1992_v41 }
 0x24b   : > { %2668 = shalt.err (!%p2665_p8)
}
 0x24c   : > { %s2669_s19 = scalar_lea.hbm %s4849_s29, 512  ;;  %s2673_s17 = scalar_lea.hbm %s4902_s6, 1024 }
 0x24d   : > { %p2670_p6 = scmp.ne.s32.totalorder %s4849_s29, %s2669_s19  ;;  %p2674_p7 = scmp.lt.u32.totalorder %s4849_s29, %s4902_s6 }
 0x24e   : > { %p2675_p12 = scmp.lt.u32.totalorder %s2673_s17, %s2669_s19  ;;  %p2677_p13 = scmp.lt.u32.totalorder %s2669_s19, %s4849_s29 }
 0x24f   : > { %p2671_p1 = pnand %p2670_p6, %p4958_p2 }
 0x250   : > { %p2676_p0 = por %p2675_p12, %p2674_p7 }
 0x251   : > { %p2672_p3 = pneg %p2671_p1 }
 0x252   : > { %p2678_p4 = por %p2677_p13, %p2676_p0 }
 0x254   : > { %p2679_p5 = pnand %p2678_p4, %p2672_p3 }
 0x256   : > { %2682 = shalt.err (!%p2679_p5)
}
 0x257   : > { %s2750_s5 = smov 128   ;;  %s2751_s26 = smov 8  }
 0x258   : > { %2464 = dma.vmem_to_hbm [thread:$0]  (%p4958_p2), %s4851_s15, 512, %s4849_s29, %s1996_s28, %s2750_s5, %s2750_s5, %s2751_s26  }
 0x259 PF: > { %s2024_s16 = sand.u32 1, %s2721_s21   ;;  %p4959_p9 = scmp.ne.s32.totalorder %s4941_s20, 0 }
 0x25a   : > { %p4960_p10 = scmp.ge.s32.totalorder %s2733_s24, 2  ;;  %s2025_s1 = scalar_lea.sflag [#allocation4], %s2024_s16 }
 0x25c   : > { %p2487_p11 = pnand %p4960_p10, %p4959_p9 }
 0x25e   : > { %2716 = dma.done.wait (!%p2487_p11), %s2025_s1, 512  }
 0x25f   : > { %2718 = vsyncadd (!%p2487_p11), %s2025_s1, 4294966784  ;;  %s4961_s21 = sld [smem:[#allocation19_spill]]  ;;  %s4962_s22 = sld [smem:[#allocation20_spill]] }
 0x260   : > { %s4963_s23 = sld [smem:[#allocation21_spill]]  ;;  %p22_p8 = scmp.ge.s32.totalorder %s2883_s14, 4  }
 0x261   : > { %s4964_s24 = smov %s2883_s14 }
 0x262   :  { %24 = sbr.rel (!%p22_p8) target bundleno = 15 (0xf), region = 116 }
 0x269   :  { %2030 = vsyncpa [#allocation3], 1 }
 0x26a   :  { %2032 = vsyncpa [#allocation3 + $0x1], 1 }
 0x26b   :  { %2033 = vsyncpa [#allocation4], 1 }
 0x26c   :  { %2035 = vsyncpa [#allocation4 + $0x1], 1 }
 0x26d   :  { %2036 = vsyncpa [#allocation5], 1 }
 0x26e   :  { %2038 = vsyncpa [#allocation5 + $0x1], 1 }
 0x26f   :  { %2039 = vsyncpa [#allocation8], 1 }
 0x270   :  { %2040 = vsyncpa [#allocation11], 1 }

</bundles_post_ra>
